<compile_context>
chip_gen: v7x
topology: tpu7x:2x2x1
jax: 0.10.0
libtpu: 0.0.40
codegen_flags: <defaults>
</compile_context>

<pallas_src>
import jax
import jax.numpy as jnp
from jax import lax
from jax.experimental import pallas as pl
from jax.experimental.pallas import tpu as pltpu


def fused_forward(x114, x109, x103, w1, w2, gamma, beta, *, tile_hw=512, eps=1e-5):
    N, C, H, W = x109.shape
    HW = H * W
    P_total = N * HW

    # ---- spatial tile selection: multiple of 128 lanes whenever possible ----
    lane = 128
    tile_req = max(lane, (int(tile_hw) // lane) * lane)
    if HW <= lane:
        TILE = HW                                   # tiny spatial extent
    elif HW % lane == 0:
        TILE = min(tile_req, HW)                    # exact tiling, no mask
    else:
        TILE = min(tile_req, (HW // lane) * lane)   # masked last tile
    T = -(-HW // TILE)
    needs_mask = (HW % TILE) != 0

    fold_scale = (N == 1)   # x114 has no batch dependence -> fold into W1 columns

    # ---- wrapper-side reshapes / casts (free reshapes, bf16 activation I/O) ----
    x109_r = x109.reshape(N, C, HW).astype(jnp.bfloat16)
    x103_r = x103.reshape(N, C, HW).astype(jnp.bfloat16)
    w1_m = w1.reshape(C, C)
    if fold_scale:
        # W1 @ diag(s) @ x  ==  (W1 * s[None, :]) @ x
        w1_m = w1_m * x114.reshape(1, C)
    w1_b = w1_m.astype(jnp.bfloat16)
    w2_b = w2.reshape(C, C).astype(jnp.bfloat16)
    gamma_r = gamma.reshape(C, 1).astype(jnp.float32)
    beta_r = beta.reshape(C, 1).astype(jnp.float32)
    scale = None if fold_scale else x114.reshape(N, C, 1).astype(jnp.float32)

    inv_p = 1.0 / float(P_total)

    # ---- VMEM budget (generation-aware) and y-cache decision ----
    try:
        vmem_cap = int(pltpu.get_tpu_info().vmem_capacity_bytes)
    except Exception:
        vmem_cap = 64 << 20                         # v7x physical lower bound
    vmem_budget = int(0.75 * vmem_cap)

    blk_bf16 = C * TILE * 2
    blk_f32 = C * TILE * 4
    weights_bytes = 2 * (C * C * 2)                 # W1 + W2, bf16
    base_est = (2 * 2 * blk_bf16                    # x109 + x103, double buffered
                + 2 * blk_f32                       # f32 output, double buffered
                + 2 * weights_bytes                 # resident weights (double buffered)
                + 4 * C * 128 * 4                   # stats / a / b scratch
                + 6 * blk_f32)                      # temporaries headroom
    ycache_bytes = N * T * C * TILE * 2
    cache_y = ((base_est + ycache_bytes + (4 << 20)) <= vmem_budget
               and TILE % 128 == 0 and C % 16 == 0)
    est = base_est + (ycache_bytes if cache_y else 0)
    vmem_limit = int(min(max(est + (4 << 20), 32 << 20), vmem_budget))

    # ---- kernel ----
    def kernel(*refs):
        i = 0
        if not fold_scale:
            scale_ref = refs[i]; i += 1
        else:
            scale_ref = None
        x109_ref = refs[i]; i += 1
        x103_ref = refs[i]; i += 1
        w1_ref = refs[i]; i += 1
        w2_ref = refs[i]; i += 1
        gamma_ref = refs[i]; i += 1
        beta_ref = refs[i]; i += 1
        o_ref = refs[i]; i += 1
        sum_ref = refs[i]; i += 1
        sumsq_ref = refs[i]; i += 1
        a_ref = refs[i]; i += 1
        b_ref = refs[i]; i += 1
        ycache_ref = refs[i] if cache_y else None

        phase = pl.program_id(0)
        n = pl.program_id(1)
        t = pl.program_id(2)

        def compute_y():
            x = x109_ref[0]                                      # (C, TILE) bf16
            if not fold_scale:
                x = (x * scale_ref[0]).astype(jnp.bfloat16)      # per-channel scale
            # conv2d37 (1x1, no bias): W1 @ x, contracting Cin (no W^T materialized)
            y = lax.dot_general(w1_ref[...], x,
                                dimension_numbers=(((1,), (0,)), ((), ())),
                                preferred_element_type=jnp.float32)   # (C, TILE) f32
            if needs_mask:
                # Zero out-of-range spatial columns of the last tile so that BN
                # stats are exact; OOB output columns are dropped on write-back.
                col = lax.broadcasted_iota(jnp.int32, y.shape, 1) + t * TILE
                y = jnp.where(col < HW, y, 0.0)
            return y

        @pl.when(phase == 0)
        def _stats():
            @pl.when(jnp.logical_and(n == 0, t == 0))
            def _init():
                sum_ref[...] = jnp.zeros_like(sum_ref)
                sumsq_ref[...] = jnp.zeros_like(sumsq_ref)

            y = compute_y()
            if cache_y:
                ycache_ref[n * T + t] = y.astype(jnp.bfloat16)

            # Per-lane element-wise accumulation (VPU only); the cross-lane XLU
            # reduction happens once at the phase boundary.
            y2 = y * y
            if TILE % 128 == 0:
                s = y[:, 0:128]
                s2 = y2[:, 0:128]
                for k in range(1, TILE // 128):
                    s = s + y[:, k * 128:(k + 1) * 128]
                    s2 = s2 + y2[:, k * 128:(k + 1) * 128]
                sum_ref[...] += s
                sumsq_ref[...] += s2
            else:
                sum_ref[:, 0:1] += jnp.sum(y, axis=1, keepdims=True)
                sumsq_ref[:, 0:1] += jnp.sum(y2, axis=1, keepdims=True)

        @pl.when(phase == 1)
        def _emit():
            @pl.when(jnp.logical_and(n == 0, t == 0))
            def _finalize():
                # Single-pass stats: var = E[y^2] - E[y]^2 in f32 (mild cancellation
                # risk only when |mean| >> std; fine at BN pre-activation scales).
                tot = jnp.sum(sum_ref[...], axis=1, keepdims=True)      # (C, 1)
                tot2 = jnp.sum(sumsq_ref[...], axis=1, keepdims=True)   # (C, 1)
                mean = tot * inv_p
                var = tot2 * inv_p - mean * mean
                a = gamma_ref[...] * lax.rsqrt(var + eps)
                a_ref[...] = a
                b_ref[...] = beta_ref[...] - mean * a

            if cache_y:
                y = ycache_ref[n * T + t]          # (C, TILE) bf16, computed in phase 0
            else:
                y = compute_y()                    # fallback: recompute (cache too big)
            y_bn = y * a_ref[...] + b_ref[...]     # f32 broadcast over lanes
            # residual add + ReLU, cast to bf16 for the second MXU matmul
            z = jnp.maximum(x103_ref[0] + y_bn, 0.0).astype(jnp.bfloat16)
            # conv2d38 (1x1, no bias): W2 @ z
            out = lax.dot_general(w2_ref[...], z,
                                  dimension_numbers=(((1,), (0,)), ((), ())),
                                  preferred_element_type=jnp.float32)
            o_ref[0] = out.astype(o_ref.dtype)

    # TODO(synk): BatchNorm running_mean/running_var momentum updates (training-
    # mode buffer side effect) are not materialized; only the forward output is.

    # ---- BlockSpecs / index maps ----
    if cache_y:
        # x109 / scale only needed in phase 0; pin phase-1 blocks to the last
        # block fetched in phase 0 so no redundant DMAs are issued in phase 1.
        x109_map = lambda p, n, t: (n * (1 - p) + (N - 1) * p, 0,
                                    t * (1 - p) + (T - 1) * p)
        scale_map = lambda p, n, t: (n * (1 - p) + (N - 1) * p, 0, 0)
    else:
        x109_map = lambda p, n, t: (n, 0, t)
        scale_map = lambda p, n, t: (n, 0, 0)
    # x103 / output only needed in phase 1; pin phase-0 blocks to (0,0,0) so
    # phase 0 issues no x103 DMAs and never writes back uninitialized output.
    x103_map = lambda p, n, t: (n * p, 0, t * p)
    out_map = lambda p, n, t: (n * p, 0, t * p)
    const2_map = lambda p, n, t: (0, 0)

    inputs = []
    in_specs = []
    if not fold_scale:
        inputs.append(scale)
        in_specs.append(pl.BlockSpec((1, C, 1), scale_map))
    inputs += [x109_r, x103_r, w1_b, w2_b, gamma_r, beta_r]
    in_specs += [
        pl.BlockSpec((1, C, TILE), x109_map),
        pl.BlockSpec((1, C, TILE), x103_map),
        pl.BlockSpec((C, C), const2_map),     # W1 (resident)
        pl.BlockSpec((C, C), const2_map),     # W2 (resident)
        pl.BlockSpec((C, 1), const2_map),     # gamma
        pl.BlockSpec((C, 1), const2_map),     # beta
    ]

    scratch_shapes = [
        pltpu.VMEM((C, 128), jnp.float32),    # per-lane partial sum(y)
        pltpu.VMEM((C, 128), jnp.float32),    # per-lane partial sum(y*y)
        pltpu.VMEM((C, 1), jnp.float32),      # a = gamma * rsqrt(var + eps)
        pltpu.VMEM((C, 1), jnp.float32),      # b = beta - mean * a
    ]
    if cache_y:
        scratch_shapes.append(pltpu.VMEM((N * T, C, TILE), jnp.bfloat16))  # y cache

    grid_spec = pltpu.PrefetchScalarGridSpec(
        num_scalar_prefetch=0,
        grid=(2, N, T),   # (phase, batch, spatial tile); phase outermost, sequential
        in_specs=in_specs,
        out_specs=pl.BlockSpec((1, C, TILE), out_map),
        scratch_shapes=scratch_shapes,
    )

    out = pl.pallas_call(
        kernel,
        out_shape=jax.ShapeDtypeStruct((N, C, HW), jnp.float32),
        grid_spec=grid_spec,
        compiler_params=pltpu.CompilerParams(
            # Stats scratch accumulates across (n, t) and the phases are ordered,
            # so every axis must stay sequential on a single TensorCore.
            dimension_semantics=("arbitrary", "arbitrary", "arbitrary"),
            vmem_limit_bytes=vmem_limit),
    )(*inputs)

    return out.reshape(N, C, H, W)


def reference_forward(x114, x109, x103, w1, w2, gamma, beta, eps=1e-5):
    N, C, H, W = x109.shape
    x115 = x114 * x109
    y = jnp.einsum('oc,nchw->nohw', w1.reshape(C, C), x115)
    mean = jnp.mean(y, axis=(0, 2, 3), keepdims=True)
    var = jnp.mean((y - mean) ** 2, axis=(0, 2, 3), keepdims=True)
    y = (y - mean) / jnp.sqrt(var + eps) * gamma.reshape(1, C, 1, 1) + beta.reshape(1, C, 1, 1)
    z = jnp.maximum(x103 + y, 0.0)
    return jnp.einsum('oc,nchw->nohw', w2.reshape(C, C), z)


if __name__ == "__main__":
    def run_case(key, N, C, H, W, tile_hw=512):
        k1, k2, k3, k4, k5, k6, k7 = jax.random.split(key, 7)
        x114 = jax.random.normal(k1, (N, C, 1, 1), jnp.float32)   # per-channel scale
        x109 = jax.random.normal(k2, (N, C, H, W), jnp.float32)
        x103 = jax.random.normal(k3, (N, C, H, W), jnp.float32)
        w1 = jax.random.normal(k4, (C, C, 1, 1), jnp.float32) * 0.05
        w2 = jax.random.normal(k5, (C, C, 1, 1), jnp.float32) * 0.05
        gamma = 1.0 + 0.1 * jax.random.normal(k6, (C,), jnp.float32)
        beta = 0.1 * jax.random.normal(k7, (C,), jnp.float32)

        out = fused_forward(x114, x109, x103, w1, w2, gamma, beta, tile_hw=tile_hw)
        out = jax.block_until_ready(out)
        ref = reference_forward(x114, x109, x103, w1, w2, gamma, beta)
        assert out.shape == (N, C, H, W)
        err = float(jnp.max(jnp.abs(out - ref)))
        # bf16 activation streams + bf16 MXU operands (f32 accumulation).
        assert jnp.allclose(out, ref, atol=1e-1, rtol=1e-1), err

    key = jax.random.PRNGKey(0)
    ka, kb = jax.random.split(key)
    # Case A: batched input, exact 128-multiple spatial extent (no mask),
    #         scale kept as a kernel input, y cached in VMEM.
    run_case(ka, N=2, C=256, H=16, W=16)
    # Case B: production-style N=1 path: scale folded into W1, HW=400 is not a
    #         128-multiple -> TILE=384, 2 tiles, masked last tile + y cache.
    run_case(kb, N=1, C=128, H=20, W=20)

    print("KERNEL_OK")
</pallas_src>

<mosaic_0001>
module attributes {stable_mosaic.version = 11 : i64} {
  func.func @kernel(%arg0: i32, %arg1: i32, %arg2: i32, %arg3: memref<1x256x1xf32, #tpu.memory_space<vmem>>, %arg4: memref<1x256x256xbf16, #tpu.memory_space<vmem>>, %arg5: memref<1x256x256xbf16, #tpu.memory_space<vmem>>, %arg6: memref<256x256xbf16, #tpu.memory_space<vmem>>, %arg7: memref<256x256xbf16, #tpu.memory_space<vmem>>, %arg8: memref<256x1xf32, #tpu.memory_space<vmem>>, %arg9: memref<256x1xf32, #tpu.memory_space<vmem>>, %arg10: memref<1x256x256xf32, #tpu.memory_space<vmem>>, %arg11: memref<256x128xf32, #tpu.memory_space<vmem>>, %arg12: memref<256x128xf32, #tpu.memory_space<vmem>>, %arg13: memref<256x1xf32, #tpu.memory_space<vmem>>, %arg14: memref<256x1xf32, #tpu.memory_space<vmem>>, %arg15: memref<2x256x256xbf16, #tpu.memory_space<vmem>>) attributes {dimension_semantics = [#tpu.dimension_semantics<arbitrary>, #tpu.dimension_semantics<arbitrary>, #tpu.dimension_semantics<arbitrary>], iteration_bounds = array<i64: 2, 2, 1>, scalar_prefetch = 0 : i64, scratch_operands = 5 : i64, tpu.core_type = #tpu.core_type<tc>, window_params = [{transform_indices = @transform_0, window_bounds = array<i64: 1, 256, 1>}, {transform_indices = @transform_1, window_bounds = array<i64: 1, 256, 256>}, {transform_indices = @transform_2, window_bounds = array<i64: 1, 256, 256>}, {pipeline_mode = #tpu.pipeline_mode<synchronous>, transform_indices = @transform_3, window_bounds = array<i64: 256, 256>}, {pipeline_mode = #tpu.pipeline_mode<synchronous>, transform_indices = @transform_4, window_bounds = array<i64: 256, 256>}, {pipeline_mode = #tpu.pipeline_mode<synchronous>, transform_indices = @transform_5, window_bounds = array<i64: 256, 1>}, {pipeline_mode = #tpu.pipeline_mode<synchronous>, transform_indices = @transform_6, window_bounds = array<i64: 256, 1>}, {transform_indices = @transform_7, window_bounds = array<i64: 1, 256, 256>}]} {
    %c0_i32 = arith.constant 0 : i32
    %0 = arith.cmpi eq, %arg0, %c0_i32 : i32
    %1 = arith.extui %0 : i1 to i32
    %c0_i32_0 = arith.constant 0 : i32
    %2 = arith.cmpi ne, %1, %c0_i32_0 : i32
    scf.if %2 {
      %c0_i32_2 = arith.constant 0 : i32
      %6 = arith.cmpi eq, %arg1, %c0_i32_2 : i32
      %c0_i32_3 = arith.constant 0 : i32
      %7 = arith.cmpi eq, %arg2, %c0_i32_3 : i32
      %8 = arith.andi %6, %7 : i1
      %9 = arith.extui %8 : i1 to i32
      %c0_i32_4 = arith.constant 0 : i32
      %10 = arith.cmpi ne, %9, %c0_i32_4 : i32
      scf.if %10 {
        %cst_23 = arith.constant 0.000000e+00 : f32
        %41 = vector.broadcast %cst_23 : f32 to vector<256x128xf32>
        %c0_24 = arith.constant 0 : index
        %c0_25 = arith.constant 0 : index
        %42 = vector.load %arg11[%c0_24, %c0_25] : memref<256x128xf32, #tpu.memory_space<vmem>>, vector<256x128xf32>
        tpu.vector_store %arg11[%c0_24, %c0_25], %41 {strides = array<i32>} : memref<256x128xf32, #tpu.memory_space<vmem>>, vector<256x128xf32>,
        %cst_26 = arith.constant 0.000000e+00 : f32
        %43 = vector.broadcast %cst_26 : f32 to vector<256x128xf32>
        %c0_27 = arith.constant 0 : index
        %c0_28 = arith.constant 0 : index
        %44 = vector.load %arg12[%c0_27, %c0_28] : memref<256x128xf32, #tpu.memory_space<vmem>>, vector<256x128xf32>
        tpu.vector_store %arg12[%c0_27, %c0_28], %43 {strides = array<i32>} : memref<256x128xf32, #tpu.memory_space<vmem>>, vector<256x128xf32>,
      } else {
      }
      %c0 = arith.constant 0 : index
      %c0_5 = arith.constant 0 : index
      %c0_6 = arith.constant 0 : index
      %11 = vector.load %arg4[%c0, %c0_5, %c0_6] : memref<1x256x256xbf16, #tpu.memory_space<vmem>>, vector<1x256x256xbf16>
      %12 = vector.shape_cast %11 : vector<1x256x256xbf16> to vector<256x256xbf16>
      %c0_7 = arith.constant 0 : index
      %c0_8 = arith.constant 0 : index
      %c0_9 = arith.constant 0 : index
      %13 = vector.load %arg3[%c0_7, %c0_8, %c0_9] : memref<1x256x1xf32, #tpu.memory_space<vmem>>, vector<1x256x1xf32>
      %14 = vector.shape_cast %13 : vector<1x256x1xf32> to vector<256x1xf32>
      %15 = arith.extf %12 : vector<256x256xbf16> to vector<256x256xf32>
      %16 = vector.broadcast %14 : vector<256x1xf32> to vector<256x256xf32>
      %17 = arith.mulf %15, %16 : vector<256x256xf32>
      %18 = arith.truncf %17 : vector<256x256xf32> to vector<256x256xbf16>
      %c0_10 = arith.constant 0 : index
      %c0_11 = arith.constant 0 : index
      %19 = vector.load %arg6[%c0_10, %c0_11] : memref<256x256xbf16, #tpu.memory_space<vmem>>, vector<256x256xbf16>
      %cst = arith.constant dense<0.000000e+00> : vector<256x256xf32>
      %20 = tpu.matmul %19, %18, %cst {dimension_numbers = #tpu.dot_dimension_numbers<[1], [0], [0], [1], [0, 0, 1, 1], [], []>} : vector<256x256xbf16>, vector<256x256xbf16>, vector<256x256xf32> -> vector<256x256xf32>
      %21 = arith.truncf %20 : vector<256x256xf32> to vector<256x256xbf16>
      %c1_i32_12 = arith.constant 1 : i32
      %22 = arith.muli %arg1, %c1_i32_12 : i32
      %23 = arith.addi %22, %arg2 : i32
      %24 = arith.index_cast %23 : i32 to index
      %c0_13 = arith.constant 0 : index
      %c0_14 = arith.constant 0 : index
      %25 = vector.load %arg15[%24, %c0_13, %c0_14] : memref<2x256x256xbf16, #tpu.memory_space<vmem>>, vector<1x256x256xbf16>
      %26 = vector.shape_cast %25 : vector<1x256x256xbf16> to vector<256x256xbf16>
      %27 = vector.shape_cast %21 : vector<256x256xbf16> to vector<1x256x256xbf16>
      tpu.vector_store %arg15[%24, %c0_13, %c0_14], %27 {strides = array<i32>} : memref<2x256x256xbf16, #tpu.memory_space<vmem>>, vector<1x256x256xbf16>,
      %28 = arith.mulf %20, %20 : vector<256x256xf32>
      %29 = vector.extract_strided_slice %20 {offsets = [0, 0], sizes = [256, 128], strides = [1, 1]} : vector<256x256xf32> to vector<256x128xf32>
      %30 = vector.extract_strided_slice %28 {offsets = [0, 0], sizes = [256, 128], strides = [1, 1]} : vector<256x256xf32> to vector<256x128xf32>
      %31 = vector.extract_strided_slice %20 {offsets = [0, 128], sizes = [256, 128], strides = [1, 1]} : vector<256x256xf32> to vector<256x128xf32>
      %32 = arith.addf %29, %31 : vector<256x128xf32>
      %33 = vector.extract_strided_slice %28 {offsets = [0, 128], sizes = [256, 128], strides = [1, 1]} : vector<256x256xf32> to vector<256x128xf32>
      %34 = arith.addf %30, %33 : vector<256x128xf32>
      %c0_15 = arith.constant 0 : index
      %c0_16 = arith.constant 0 : index
      %35 = vector.load %arg11[%c0_15, %c0_16] : memref<256x128xf32, #tpu.memory_space<vmem>>, vector<256x128xf32>
      %36 = arith.addf %35, %32 : vector<256x128xf32>
      %c0_17 = arith.constant 0 : index
      %c0_18 = arith.constant 0 : index
      %37 = vector.load %arg11[%c0_17, %c0_18] : memref<256x128xf32, #tpu.memory_space<vmem>>, vector<256x128xf32>
      tpu.vector_store %arg11[%c0_17, %c0_18], %36 {strides = array<i32>} : memref<256x128xf32, #tpu.memory_space<vmem>>, vector<256x128xf32>,
      %c0_19 = arith.constant 0 : index
      %c0_20 = arith.constant 0 : index
      %38 = vector.load %arg12[%c0_19, %c0_20] : memref<256x128xf32, #tpu.memory_space<vmem>>, vector<256x128xf32>
      %39 = arith.addf %38, %34 : vector<256x128xf32>
      %c0_21 = arith.constant 0 : index
      %c0_22 = arith.constant 0 : index
      %40 = vector.load %arg12[%c0_21, %c0_22] : memref<256x128xf32, #tpu.memory_space<vmem>>, vector<256x128xf32>
      tpu.vector_store %arg12[%c0_21, %c0_22], %39 {strides = array<i32>} : memref<256x128xf32, #tpu.memory_space<vmem>>, vector<256x128xf32>,
    } else {
    }
    %c1_i32 = arith.constant 1 : i32
    %3 = arith.cmpi eq, %arg0, %c1_i32 : i32
    %4 = arith.extui %3 : i1 to i32
    %c0_i32_1 = arith.constant 0 : i32
    %5 = arith.cmpi ne, %4, %c0_i32_1 : i32
    scf.if %5 {
      %c0_i32_2 = arith.constant 0 : i32
      %6 = arith.cmpi eq, %arg1, %c0_i32_2 : i32
      %c0_i32_3 = arith.constant 0 : i32
      %7 = arith.cmpi eq, %arg2, %c0_i32_3 : i32
      %8 = arith.andi %6, %7 : i1
      %9 = arith.extui %8 : i1 to i32
      %c0_i32_4 = arith.constant 0 : i32
      %10 = arith.cmpi ne, %9, %c0_i32_4 : i32
      scf.if %10 {
        %c0_20 = arith.constant 0 : index
        %c0_21 = arith.constant 0 : index
        %35 = vector.load %arg11[%c0_20, %c0_21] : memref<256x128xf32, #tpu.memory_space<vmem>>, vector<256x128xf32>
        %cst_22 = arith.constant dense<0.000000e+00> : vector<256xf32>
        %36 = vector.multi_reduction <add>, %35, %cst_22 [1] : vector<256x128xf32> to vector<256xf32>
        %37 = vector.shape_cast %36 : vector<256xf32> to vector<256x1xf32>
        %c0_23 = arith.constant 0 : index
        %c0_24 = arith.constant 0 : index
        %38 = vector.load %arg12[%c0_23, %c0_24] : memref<256x128xf32, #tpu.memory_space<vmem>>, vector<256x128xf32>
        %cst_25 = arith.constant dense<0.000000e+00> : vector<256xf32>
        %39 = vector.multi_reduction <add>, %38, %cst_25 [1] : vector<256x128xf32> to vector<256xf32>
        %40 = vector.shape_cast %39 : vector<256xf32> to vector<256x1xf32>
        %cst_26 = arith.constant 0.001953125 : f32
        %41 = vector.broadcast %cst_26 : f32 to vector<256x1xf32>
        %42 = arith.mulf %37, %41 : vector<256x1xf32>
        %cst_27 = arith.constant 0.001953125 : f32
        %43 = vector.broadcast %cst_27 : f32 to vector<256x1xf32>
        %44 = arith.mulf %40, %43 : vector<256x1xf32>
        %45 = arith.mulf %42, %42 : vector<256x1xf32>
        %46 = arith.subf %44, %45 : vector<256x1xf32>
        %c0_28 = arith.constant 0 : index
        %c0_29 = arith.constant 0 : index
        %47 = vector.load %arg8[%c0_28, %c0_29] : memref<256x1xf32, #tpu.memory_space<vmem>>, vector<256x1xf32>
        %cst_30 = arith.constant 9.99999974E-6 : f32
        %48 = vector.broadcast %cst_30 : f32 to vector<256x1xf32>
        %49 = arith.addf %46, %48 : vector<256x1xf32>
        %50 = math.rsqrt %49 : vector<256x1xf32>
        %51 = arith.mulf %47, %50 : vector<256x1xf32>
        %c0_31 = arith.constant 0 : index
        %c0_32 = arith.constant 0 : index
        %52 = vector.load %arg13[%c0_31, %c0_32] : memref<256x1xf32, #tpu.memory_space<vmem>>, vector<256x1xf32>
        tpu.vector_store %arg13[%c0_31, %c0_32], %51 {strides = array<i32>} : memref<256x1xf32, #tpu.memory_space<vmem>>, vector<256x1xf32>,
        %c0_33 = arith.constant 0 : index
        %c0_34 = arith.constant 0 : index
        %53 = vector.load %arg9[%c0_33, %c0_34] : memref<256x1xf32, #tpu.memory_space<vmem>>, vector<256x1xf32>
        %54 = arith.mulf %42, %51 : vector<256x1xf32>
        %55 = arith.subf %53, %54 : vector<256x1xf32>
        %c0_35 = arith.constant 0 : index
        %c0_36 = arith.constant 0 : index
        %56 = vector.load %arg14[%c0_35, %c0_36] : memref<256x1xf32, #tpu.memory_space<vmem>>, vector<256x1xf32>
        tpu.vector_store %arg14[%c0_35, %c0_36], %55 {strides = array<i32>} : memref<256x1xf32, #tpu.memory_space<vmem>>, vector<256x1xf32>,
      } else {
      }
      %c1_i32_5 = arith.constant 1 : i32
      %11 = arith.muli %arg1, %c1_i32_5 : i32
      %12 = arith.addi %11, %arg2 : i32
      %13 = arith.index_cast %12 : i32 to index
      %c0 = arith.constant 0 : index
      %c0_6 = arith.constant 0 : index
      %14 = vector.load %arg15[%13, %c0, %c0_6] : memref<2x256x256xbf16, #tpu.memory_space<vmem>>, vector<1x256x256xbf16>
      %15 = vector.shape_cast %14 : vector<1x256x256xbf16> to vector<256x256xbf16>
      %c0_7 = arith.constant 0 : index
      %c0_8 = arith.constant 0 : index
      %16 = vector.load %arg13[%c0_7, %c0_8] : memref<256x1xf32, #tpu.memory_space<vmem>>, vector<256x1xf32>
      %17 = arith.extf %15 : vector<256x256xbf16> to vector<256x256xf32>
      %18 = vector.broadcast %16 : vector<256x1xf32> to vector<256x256xf32>
      %19 = arith.mulf %17, %18 : vector<256x256xf32>
      %c0_9 = arith.constant 0 : index
      %c0_10 = arith.constant 0 : index
      %20 = vector.load %arg14[%c0_9, %c0_10] : memref<256x1xf32, #tpu.memory_space<vmem>>, vector<256x1xf32>
      %21 = vector.broadcast %20 : vector<256x1xf32> to vector<256x256xf32>
      %22 = arith.addf %19, %21 : vector<256x256xf32>
      %c0_11 = arith.constant 0 : index
      %c0_12 = arith.constant 0 : index
      %c0_13 = arith.constant 0 : index
      %23 = vector.load %arg5[%c0_11, %c0_12, %c0_13] : memref<1x256x256xbf16, #tpu.memory_space<vmem>>, vector<1x256x256xbf16>
      %24 = vector.shape_cast %23 : vector<1x256x256xbf16> to vector<256x256xbf16>
      %25 = arith.extf %24 : vector<256x256xbf16> to vector<256x256xf32>
      %26 = arith.addf %25, %22 : vector<256x256xf32>
      %cst = arith.constant 0.000000e+00 : f32
      %27 = vector.broadcast %cst : f32 to vector<256x256xf32>
      %28 = arith.maximumf %26, %27 : vector<256x256xf32>
      %29 = arith.truncf %28 : vector<256x256xf32> to vector<256x256xbf16>
      %c0_14 = arith.constant 0 : index
      %c0_15 = arith.constant 0 : index
      %30 = vector.load %arg7[%c0_14, %c0_15] : memref<256x256xbf16, #tpu.memory_space<vmem>>, vector<256x256xbf16>
      %cst_16 = arith.constant dense<0.000000e+00> : vector<256x256xf32>
      %31 = tpu.matmul %30, %29, %cst_16 {dimension_numbers = #tpu.dot_dimension_numbers<[1], [0], [0], [1], [0, 0, 1, 1], [], []>} : vector<256x256xbf16>, vector<256x256xbf16>, vector<256x256xf32> -> vector<256x256xf32>
      %c0_17 = arith.constant 0 : index
      %c0_18 = arith.constant 0 : index
      %c0_19 = arith.constant 0 : index
      %32 = vector.load %arg10[%c0_17, %c0_18, %c0_19] : memref<1x256x256xf32, #tpu.memory_space<vmem>>, vector<1x256x256xf32>
      %33 = vector.shape_cast %32 : vector<1x256x256xf32> to vector<256x256xf32>
      %34 = vector.shape_cast %31 : vector<256x256xf32> to vector<1x256x256xf32>
      tpu.vector_store %arg10[%c0_17, %c0_18, %c0_19], %34 {strides = array<i32>} : memref<1x256x256xf32, #tpu.memory_space<vmem>>, vector<1x256x256xf32>,
    } else {
    }
    return
  }
  func.func @transform_0(%arg0: i32, %arg1: i32, %arg2: i32) -> (i32, i32, i32) {
    %c1_i32 = arith.constant 1 : i32
    %0 = arith.subi %c1_i32, %arg0 : i32
    %1 = arith.muli %arg1, %0 : i32
    %c1_i32_0 = arith.constant 1 : i32
    %2 = arith.muli %c1_i32_0, %arg0 : i32
    %3 = arith.addi %1, %2 : i32
    %c0_i32 = arith.constant 0 : i32
    %c0_i32_1 = arith.constant 0 : i32
    %c0_i32_2 = arith.constant 0 : i32
    return %3, %c0_i32, %c0_i32_1 : i32, i32, i32
  }
  func.func @transform_1(%arg0: i32, %arg1: i32, %arg2: i32) -> (i32, i32, i32) {
    %c1_i32 = arith.constant 1 : i32
    %0 = arith.subi %c1_i32, %arg0 : i32
    %1 = arith.muli %arg1, %0 : i32
    %c1_i32_0 = arith.constant 1 : i32
    %2 = arith.muli %c1_i32_0, %arg0 : i32
    %3 = arith.addi %1, %2 : i32
    %c1_i32_1 = arith.constant 1 : i32
    %4 = arith.subi %c1_i32_1, %arg0 : i32
    %5 = arith.muli %arg2, %4 : i32
    %c0_i32 = arith.constant 0 : i32
    %6 = arith.muli %c0_i32, %arg0 : i32
    %7 = arith.addi %5, %6 : i32
    %c0_i32_2 = arith.constant 0 : i32
    %c0_i32_3 = arith.constant 0 : i32
    return %3, %c0_i32_2, %7 : i32, i32, i32
  }
  func.func @transform_2(%arg0: i32, %arg1: i32, %arg2: i32) -> (i32, i32, i32) {
    %0 = arith.muli %arg1, %arg0 : i32
    %1 = arith.muli %arg2, %arg0 : i32
    %c0_i32 = arith.constant 0 : i32
    %c0_i32_0 = arith.constant 0 : i32
    return %0, %c0_i32, %1 : i32, i32, i32
  }
  func.func @transform_3(%arg0: i32, %arg1: i32, %arg2: i32) -> (i32, i32) {
    %c0_i32 = arith.constant 0 : i32
    %c0_i32_0 = arith.constant 0 : i32
    %c0_i32_1 = arith.constant 0 : i32
    return %c0_i32, %c0_i32_0 : i32, i32
  }
  func.func @transform_4(%arg0: i32, %arg1: i32, %arg2: i32) -> (i32, i32) {
    %c0_i32 = arith.constant 0 : i32
    %c0_i32_0 = arith.constant 0 : i32
    %c0_i32_1 = arith.constant 0 : i32
    return %c0_i32, %c0_i32_0 : i32, i32
  }
  func.func @transform_5(%arg0: i32, %arg1: i32, %arg2: i32) -> (i32, i32) {
    %c0_i32 = arith.constant 0 : i32
    %c0_i32_0 = arith.constant 0 : i32
    %c0_i32_1 = arith.constant 0 : i32
    return %c0_i32, %c0_i32_0 : i32, i32
  }
  func.func @transform_6(%arg0: i32, %arg1: i32, %arg2: i32) -> (i32, i32) {
    %c0_i32 = arith.constant 0 : i32
    %c0_i32_0 = arith.constant 0 : i32
    %c0_i32_1 = arith.constant 0 : i32
    return %c0_i32, %c0_i32_0 : i32, i32
  }
  func.func @transform_7(%arg0: i32, %arg1: i32, %arg2: i32) -> (i32, i32, i32) {
    %0 = arith.muli %arg1, %arg0 : i32
    %1 = arith.muli %arg2, %arg0 : i32
    %c0_i32 = arith.constant 0 : i32
    %c0_i32_0 = arith.constant 0 : i32
    return %0, %c0_i32, %1 : i32, i32, i32
  }
}

</mosaic_0001>

<bundles_post_ra>
// kernel: tpu_custom_call.1
= control target key start
LH: loop header
LB: loop body
LE: loop exit
PB: predicated region body
PF: predicated region fallthrough
CT: control target
= control target key end

     0   :  { %12 = vsyncpa [#allocation8], 0  ;;  %s5501_s0 = inlined_call_operand.vmem [shape: f32[2,256,1], index: 0, kind: input, shape index: {}]   ;;  %s5502_s1 = inlined_call_operand.vmem [shape: bf16[2,256,256], index: 1, kind: input, shape index: {}]   ;;  %s5503_s2 = inlined_call_operand.vmem [shape: bf16[2,256,256], index: 2, kind: input, shape index: {}]   ;;  %s5504_s3 = inlined_call_operand.hbm [shape: bf16[256,256], index: 3, kind: input, shape index: {}]   ;;  %s5505_s4 = inlined_call_operand.hbm [shape: bf16[256,256], index: 4, kind: input, shape index: {}]   ;;  %s5506_s5 = inlined_call_operand.vmem [shape: f32[256,1], index: 5, kind: input, shape index: {}]   ;;  %s5507_s6 = inlined_call_operand.vmem [shape: f32[256,1], index: 6, kind: input, shape index: {}]   ;;  %s5508_s7 = inlined_call_operand.hbm [shape: f32[2,256,256], index: 7, kind: output, shape index: {}]  }
   0x1   :  { %13 = vsyncpa [#allocation11], 0 }
   0x2   :  { %14 = vsyncpa [#allocation9], 0 }
   0x3   :  { %16 = vsyncpa [#allocation9 + $0x1], 0  ;;  %s4436_s24 = smov 0   ;;  %s4438_s25 = smov 0  }
   0x4   :  { %s4440_s26 = smov 0   ;;  %s4442_s27 = smov 0  }
   0x5   :  { %s4444_s28 = smov 0   ;;  %s4446_s29 = smov 0  }
   0x6   :  { %s4448_s30 = smov 0   ;;  %s4450_s8 = smov 0  }
   0x7 LB: > { %5520 = sst [smem:[#allocation16_spill]] %s4364_s26  ;;  %s3798_s9 = sadd.s32 4294967295, %s4384_s8   ;;  %s4384_s8 = sphi %s4450_s8, %s22_s8   ;;  %s4380_s30 = sphi %s4448_s30, %s5543_s30   ;;  %s4376_s29 = sphi %s4446_s29, %s5542_s29   ;;  %s4372_s28 = sphi %s4444_s28, %s5541_s28   ;;  %s4368_s27 = sphi %s4442_s27, %s5540_s27   ;;  %s4364_s26 = sphi %s4440_s26, %s5539_s26   ;;  %s4360_s25 = sphi %s4438_s25, %s5545_s25   ;;  %s4356_s24 = sphi %s4436_s24, %s5544_s24  }
   0x8   : > { %5521 = sst [smem:[#allocation17_spill]] %s4376_s29  ;;  %s3799_s10 = sadd.s32 4294967294, %s4384_s8  }
   0x9   : > { %5522 = sst [smem:[#allocation18_spill]] %s4380_s30  ;;  %s37_s11 = sadd.s32 1, %s4376_s29 }
   0xa   : > { %s41_s12 = sadd.s32 1, %s4380_s30  ;;  %p39_p0 = scmp.ge.s32.totalorder %s37_s11, 2 }
   0xb   : > { %s229_s13 = smul.u32 %s4376_s29, %s4380_s30  ;;  %s238_s14 = sadd.s32 1, %s4364_s26 }
   0xc   : > { %p248_p1 = scmp.ne.s32.totalorder %s4364_s26, %s4360_s25  ;;  %s5547_s11 = smov (%p39_p0, %s37_s11), 0 }
   0xd   : > { %5523 = sst [smem:[#allocation19_spill]] %s5547_s11  ;;  %s5549_s12 = smov (!%p39_p0, %s41_s12), %s4380_s30 }
   0xe   : > { %p249_p2 = scmp.eq.s32.totalorder %s3798_s9, 3  ;;  %p254_p3 = scmp.ne.s32.totalorder %s4360_s25, %s4356_s24 }
   0xf   : > { %p43_p4 = scmp.ge.s32.totalorder %s5549_s12, 2  ;;  %p255_p5 = scmp.eq.s32.totalorder %s3799_s10, 3 }
  0x10   : > { %p4490_p6 = por %p249_p2, %p248_p1  ;;  %p3800_p7 = scmp.ge.s32.totalorder %s4384_s8, 1 }
  0x11   : > { %s5551_s12 = smov (%p43_p4, %s5549_s12), 0  ;;  %p4497_p8 = por %p255_p5, %p254_p3 }
  0x12   : > { %s5524_s15 = scalar_select %p4490_p6, 1, 0 }
  0x13   : > { %5525 = sst [smem:[#allocation20_spill]] %s5551_s12  ;;  %p262_p9 = scmp.lt.s32.totalorder %s4384_s8, 5 }
  0x14   : > { %s5526_s16 = scalar_select %p4497_p8, 1, 0 }
  0x15   : > { %s231_s17 = smul.u32 %s5551_s12, %s5547_s11  ;;  %p4504_p10 = pnand %p3800_p7, %p262_p9 }
  0x16   : > { %p4508_p11 = scmp.eq.s32.totalorder %s3798_s9, 0  ;;  %s4386_s21 = smov [#allocation7]  }
  0x17   : > { %s5527_s18 = scalar_select %p4504_p10, 1, 0 }
  0x18   : > { %s5528_s19 = scalar_select %p4508_p11, 1, 0 }
  0x19   : > { %s233_s20 = ssub.s32 %s229_s13, %s231_s17  ;;  %p3973_p13 = pneg %p4504_p10 }
  0x1a   : > { %p236_p12 = scmp.eq.s32.totalorder %s233_s20, 0  ;;  %s274_s22 = sshll.u32 %s4386_s21, 4  ;;  %s275_s22 = int_to_ptr.vmem [resolvable:$true] %s274_s22 }
  0x1b   : > { %p4519_p0 = pnand %p4508_p11, %p3973_p13  ;;  %s4387_s9 = smov [#allocation10]  }
  0x1c   : > { %s4515_s23 = scalar_select %p236_p12, %s4364_s26, %s238_s14  }
  0x1d   : > { %s287_s12 = sshll.u32 %s4387_s9, 4  ;;  %s4226_s13 = scalar_lea.hbm %s5504_s3, 4096  ;;  %s288_s12 = int_to_ptr.vmem [resolvable:$true] %s287_s12 }
  0x1e   : > { %5529 = sst [smem:[#allocation21_spill]] %s4515_s23  ;;  %p4227_p1 = scmp.ne.s32.totalorder %s5504_s3, %s4226_s13 }
  0x1f   : > { %p4228_p2 = pneg %p4519_p0  ;;  %p4233_p5 = scmp.lt.u32.totalorder %s4226_s13, %s5504_s3 }
  0x21   : > { %p4229_p3 = pnand %p4228_p2, %p4227_p1 }
  0x23   : > { %p4230_p4 = pneg %p4229_p3 }
  0x25   : > { %p4235_p7 = pnand %p4233_p5, %p4230_p4 }
  0x27   : > { %4238 = shalt.err (!%p4235_p7)
}
  0x28   : > { %s4239_s9 = scalar_lea.vmem %s275_s22, 4096  ;;  %p4247_p8 = scmp.lt.s32.totalorder %s275_s22, %s275_s22 }
  0x29   : > { %p4240_p9 = scmp.ne.s32.totalorder %s275_s22, %s4239_s9  ;;  %p4248_p6 = scmp.lt.s32.totalorder %s4239_s9, %s4239_s9 }
  0x2b   : > { %p4242_p12 = pnand %p4240_p9, %p4228_p2  ;;  %p4249_p11 = por %p4248_p6, %p4247_p8 }
  0x2d   : > { %p4243_p13 = pneg %p4242_p12 }
  0x2f   : > { %p4250_p10 = pnand %p4249_p11, %p4243_p13 }
  0x31   : > { %4253 = shalt.err (!%p4250_p10)
}
  0x32   : > { %s4388_s30 = smov 128   ;;  %s4389_s11 = smov 8  }
  0x33   : > { %3976 = dma.hbm_to_vmem [thread:$0]  (!%p4519_p0), %s5504_s3, 4096, %s275_s22, [#allocation8], %s4388_s30, %s4388_s30, %s4389_s11  }
  0x34   : > { %s4254_s21 = scalar_lea.hbm %s5505_s4, 4096 }
  0x35   : > { %p4255_p6 = scmp.ne.s32.totalorder %s5505_s4, %s4254_s21  ;;  %p4261_p11 = scmp.lt.u32.totalorder %s4254_s21, %s5505_s4 }
  0x37   : > { %p4257_p8 = pnand %p4255_p6, %p4228_p2 }
  0x39   : > { %p4258_p10 = pneg %p4257_p8 }
  0x3b   : > { %p4263_p1 = pnand %p4261_p11, %p4258_p10 }
  0x3d   : > { %4266 = shalt.err (!%p4263_p1)
}
  0x3e   : > { %s4267_s22 = scalar_lea.vmem %s288_s12, 4096  ;;  %p4275_p7 = scmp.lt.s32.totalorder %s288_s12, %s288_s12 }
  0x3f   : > { %p4268_p3 = scmp.ne.s32.totalorder %s288_s12, %s4267_s22  ;;  %p4276_p9 = scmp.lt.s32.totalorder %s4267_s22, %s4267_s22 }
  0x41   : > { %p4270_p4 = pnand %p4268_p3, %p4228_p2  ;;  %p4277_p12 = por %p4276_p9, %p4275_p7 }
  0x43   : > { %p4271_p5 = pneg %p4270_p4 }
  0x45   : > { %p4278_p13 = pnand %p4277_p12, %p4271_p5 }
  0x47   : > { %4281 = shalt.err (!%p4278_p13)
}
  0x48   : > { %3979 = dma.hbm_to_vmem [thread:$0]  (!%p4519_p0), %s5505_s4, 4096, %s288_s12, [#allocation11], %s4388_s30, %s4388_s30, %s4389_s11  }
  0x49   : > { %p5531_p6 = scmp.ne.s32.totalorder %s5527_s18, 0 }
  0x4a   : > { %p5532_p8 = scmp.ne.s32.totalorder (!%p5531_p6), %s5528_s19, 0 }
  0x4b   : > { %361 = sbr.rel (%p5531_p6) target bundleno = 1486 (0x5ce), region = 48 }
  0x52   : > { %4343 = dma.done.wait (%p5532_p8), [#allocation8], 4096  }
  0x53   : > { %4345 = vsyncadd (%p5532_p8), [#allocation8], 4294963200 }
  0x54   : > { %4347 = dma.done.wait (%p5532_p8), [#allocation11], 4096  }
  0x55   : > { %4349 = vsyncadd (%p5532_p8), [#allocation11], 4294963200  ;;  %s5518_s26 = sand.u32 1, %s4360_s25   ;;  %s424_s12 = ssub.s32 1, %s4372_s28 }
  0x56   : > { %s3807_s18 = sshll.u32 %s5518_s26, 9  ;;  %s425_s10 = smul.u32 %s4368_s27, %s424_s12 }
  0x57   : > { %s4582_s30 = smul.u32 %s4368_s27, %s4372_s28  ;;  %s4602_s26 = scalar_lea.vmem [#allocation12], %s3807_s18 }
  0x58   : > { %s426_s11 = sadd.s32 %s4372_s28, %s425_s10  ;;  %p3814_p10 = scmp.ne.s32.totalorder %s4372_s28, 0 }
  0x59   : > { %p427_p0 = scmp.lt.s32.totalorder %s426_s11, 1  ;;  %p456_p2 = scmp.lt.s32.totalorder %s4582_s30, 1 }
  0x5a   : > { %473 = sbr.rel (%p3814_p10) target bundleno = 613 (0x265), region = 60  ;;  %p474_p11 = scmp.eq.s32.totalorder (!%p3814_p10), %s4368_s27, 0 }
  0x5b   : > { %s5553_s11 = smov (!%p427_p0, %s426_s11), 1 }
  0x5c   : > { %s457_s19 = scalar_select %p456_p2, %s4582_s30, 1 }
  0x5d   : > { %s3891_s13 = sshll.u32 %s5553_s11, 8 }
  0x5e   : > { %s4590_s14 = scalar_lea.vmem %s5501_s0, %s3891_s13  ;;  %s4595_s22 = scalar_lea.vmem %s5502_s1, %s3891_s13 }
  0x5f   : > { %s3893_s29 = sshll.u32 %s457_s19, 8 }
  0x60   : > { %s4600_s10 = scalar_lea.vmem %s5503_s2, %s3893_s29 }
  0x61   : > { %479 = sbr.rel (!%p474_p11) target bundleno = 130 (0x82), region = 64  ;;  %v4390_v0 = vmov (%p474_p11), 0.0  }
  0x62   : > { %480 = vst [vmem:[#allocation2] sm:$0xff] (%p474_p11), %v4390_v0  ;;  %481 = vst [vmem:[#allocation2 + $0x8] sm:$0xff] (%p474_p11), %v4390_v0 }
  0x63   : > { %482 = vst [vmem:[#allocation2 + $0x10] sm:$0xff] (%p474_p11), %v4390_v0  ;;  %483 = vst [vmem:[#allocation2 + $0x18] sm:$0xff] (%p474_p11), %v4390_v0 }
  0x64   : > { %484 = vst [vmem:[#allocation2 + $0x20] sm:$0xff] (%p474_p11), %v4390_v0  ;;  %485 = vst [vmem:[#allocation2 + $0x28] sm:$0xff] (%p474_p11), %v4390_v0 }
  0x65   : > { %486 = vst [vmem:[#allocation2 + $0x30] sm:$0xff] (%p474_p11), %v4390_v0  ;;  %487 = vst [vmem:[#allocation2 + $0x38] sm:$0xff] (%p474_p11), %v4390_v0 }
  0x66   : > { %488 = vst [vmem:[#allocation2 + $0x40] sm:$0xff] (%p474_p11), %v4390_v0  ;;  %489 = vst [vmem:[#allocation2 + $0x48] sm:$0xff] (%p474_p11), %v4390_v0 }
  0x67   : > { %490 = vst [vmem:[#allocation2 + $0x50] sm:$0xff] (%p474_p11), %v4390_v0  ;;  %491 = vst [vmem:[#allocation2 + $0x58] sm:$0xff] (%p474_p11), %v4390_v0 }
  0x68   : > { %492 = vst [vmem:[#allocation2 + $0x60] sm:$0xff] %v4390_v0  ;;  %493 = vst [vmem:[#allocation2 + $0x68] sm:$0xff] %v4390_v0 }
  0x69   : > { %494 = vst [vmem:[#allocation2 + $0x70] sm:$0xff] %v4390_v0  ;;  %495 = vst [vmem:[#allocation2 + $0x78] sm:$0xff] %v4390_v0 }
  0x6a   : > { %496 = vst [vmem:[#allocation2 + $0x80] sm:$0xff] %v4390_v0  ;;  %497 = vst [vmem:[#allocation2 + $0x88] sm:$0xff] %v4390_v0 }
  0x6b   : > { %498 = vst [vmem:[#allocation2 + $0x90] sm:$0xff] %v4390_v0  ;;  %499 = vst [vmem:[#allocation2 + $0x98] sm:$0xff] %v4390_v0 }
  0x6c   : > { %500 = vst [vmem:[#allocation2 + $0xa0] sm:$0xff] %v4390_v0  ;;  %501 = vst [vmem:[#allocation2 + $0xa8] sm:$0xff] %v4390_v0 }
  0x6d   : > { %502 = vst [vmem:[#allocation2 + $0xb0] sm:$0xff] %v4390_v0  ;;  %503 = vst [vmem:[#allocation2 + $0xb8] sm:$0xff] %v4390_v0 }
  0x6e   : > { %504 = vst [vmem:[#allocation2 + $0xc0] sm:$0xff] %v4390_v0  ;;  %505 = vst [vmem:[#allocation2 + $0xc8] sm:$0xff] %v4390_v0 }
  0x6f   : > { %506 = vst [vmem:[#allocation2 + $0xd0] sm:$0xff] %v4390_v0  ;;  %507 = vst [vmem:[#allocation2 + $0xd8] sm:$0xff] %v4390_v0 }
  0x70   : > { %508 = vst [vmem:[#allocation2 + $0xe0] sm:$0xff] %v4390_v0  ;;  %509 = vst [vmem:[#allocation2 + $0xe8] sm:$0xff] %v4390_v0 }
  0x71   : > { %510 = vst [vmem:[#allocation2 + $0xf0] sm:$0xff] %v4390_v0  ;;  %511 = vst [vmem:[#allocation2 + $0xf8] sm:$0xff] %v4390_v0 }
  0x72   : > { %512 = vst [vmem:[#allocation3] sm:$0xff] %v4390_v0  ;;  %513 = vst [vmem:[#allocation3 + $0x8] sm:$0xff] %v4390_v0 }
  0x73   : > { %514 = vst [vmem:[#allocation3 + $0x10] sm:$0xff] %v4390_v0  ;;  %515 = vst [vmem:[#allocation3 + $0x18] sm:$0xff] %v4390_v0 }
  0x74   : > { %516 = vst [vmem:[#allocation3 + $0x20] sm:$0xff] %v4390_v0  ;;  %517 = vst [vmem:[#allocation3 + $0x28] sm:$0xff] %v4390_v0 }
  0x75   : > { %518 = vst [vmem:[#allocation3 + $0x30] sm:$0xff] %v4390_v0  ;;  %519 = vst [vmem:[#allocation3 + $0x38] sm:$0xff] %v4390_v0 }
  0x76   : > { %520 = vst [vmem:[#allocation3 + $0x40] sm:$0xff] %v4390_v0  ;;  %521 = vst [vmem:[#allocation3 + $0x48] sm:$0xff] %v4390_v0 }
  0x77   : > { %522 = vst [vmem:[#allocation3 + $0x50] sm:$0xff] %v4390_v0  ;;  %523 = vst [vmem:[#allocation3 + $0x58] sm:$0xff] %v4390_v0 }
  0x78   : > { %524 = vst [vmem:[#allocation3 + $0x60] sm:$0xff] %v4390_v0  ;;  %525 = vst [vmem:[#allocation3 + $0x68] sm:$0xff] %v4390_v0 }
  0x79   : > { %526 = vst [vmem:[#allocation3 + $0x70] sm:$0xff] %v4390_v0  ;;  %527 = vst [vmem:[#allocation3 + $0x78] sm:$0xff] %v4390_v0 }
  0x7a   : > { %528 = vst [vmem:[#allocation3 + $0x80] sm:$0xff] %v4390_v0  ;;  %529 = vst [vmem:[#allocation3 + $0x88] sm:$0xff] %v4390_v0 }
  0x7b   : > { %530 = vst [vmem:[#allocation3 + $0x90] sm:$0xff] %v4390_v0  ;;  %531 = vst [vmem:[#allocation3 + $0x98] sm:$0xff] %v4390_v0 }
  0x7c   : > { %532 = vst [vmem:[#allocation3 + $0xa0] sm:$0xff] %v4390_v0  ;;  %533 = vst [vmem:[#allocation3 + $0xa8] sm:$0xff] %v4390_v0 }
  0x7d   : > { %534 = vst [vmem:[#allocation3 + $0xb0] sm:$0xff] %v4390_v0  ;;  %535 = vst [vmem:[#allocation3 + $0xb8] sm:$0xff] %v4390_v0 }
  0x7e   : > { %536 = vst [vmem:[#allocation3 + $0xc0] sm:$0xff] %v4390_v0  ;;  %537 = vst [vmem:[#allocation3 + $0xc8] sm:$0xff] %v4390_v0 }
  0x7f   : > { %538 = vst [vmem:[#allocation3 + $0xd0] sm:$0xff] %v4390_v0  ;;  %539 = vst [vmem:[#allocation3 + $0xd8] sm:$0xff] %v4390_v0 }
  0x80   : > { %540 = vst [vmem:[#allocation3 + $0xe0] sm:$0xff] %v4390_v0  ;;  %541 = vst [vmem:[#allocation3 + $0xe8] sm:$0xff] %v4390_v0 }
  0x81   : > { %542 = vst [vmem:[#allocation3 + $0xf0] sm:$0xff] %v4390_v0  ;;  %543 = vst [vmem:[#allocation3 + $0xf8] sm:$0xff] %v4390_v0 }
  0x82 PF: > { %v578_v1 = vld [vmem:[%s4590_s14 + $0x10] sm:$0xff]  ;;  %v576_v2 = vld [vmem:[%s4590_s14] sm:$0xff]  ;;  %v4391_v3 = vmov 0   ;;  %v579_v4 = vld [vmem:[%s4590_s14 + $0x18] sm:$0xff]  ;;  %s3895_s18 = sshll.u32 %s4368_s27, 8 }
  0x83   : > { %4063 = vset.pattern.permute.xlu1 %v4391_v3  ;;  %4062 = vset.pattern.permute.xlu0 %v4391_v3  ;;  %v577_v5 = vld [vmem:[%s4590_s14 + $0x8] sm:$0xff]  ;;  %v580_v7 = vld [vmem:[%s4590_s14 + $0x20] sm:$0xff]  ;;  %v583_v8 = vld [vmem:[%s4590_s14 + $0x38] sm:$0xff]  ;;  %s4735_s11 = scalar_lea.vmem [#allocation6], %s3895_s18 }
  0x84   : > { %684 = vperm.xlu1 %4063, %v578_v1   ;;  %674 = vperm.xlu0 %4062, %v576_v2   ;;  %v581_v6 = vld [vmem:[%s4590_s14 + $0x28] sm:$0xff]  ;;  %v582_v9 = vld [vmem:[%s4590_s14 + $0x30] sm:$0xff]  ;;  %v584_v11 = vld [vmem:[%s4590_s14 + $0x40] sm:$0xff] }
  0x85   : > { %v585_v10 = vld [vmem:[%s4590_s14 + $0x48] sm:$0xff]  ;;  %v587_v12 = vld [vmem:[%s4590_s14 + $0x58] sm:$0xff]  ;;  %v586_v13 = vld [vmem:[%s4590_s14 + $0x50] sm:$0xff] }
  0x86   : > { %v589_v14 = vld [vmem:[%s4590_s14 + $0x68] sm:$0xff]  ;;  %v588_v15 = vld [vmem:[%s4590_s14 + $0x60] sm:$0xff]  ;;  %v591_v16 = vld [vmem:[%s4590_s14 + $0x78] sm:$0xff] }
  0x87   : > { %v590_v17 = vld [vmem:[%s4590_s14 + $0x70] sm:$0xff]  ;;  %v593_v18 = vld [vmem:[%s4590_s14 + $0x88] sm:$0xff]  ;;  %v592_v19 = vld [vmem:[%s4590_s14 + $0x80] sm:$0xff] }
  0x88   : > { %689 = vperm.xlu1 %4063, %v579_v4   ;;  %679 = vperm.xlu0 %4062, %v577_v5   ;;  %v595_v20 = vld [vmem:[%s4590_s14 + $0x98] sm:$0xff]  ;;  %v594_v21 = vld [vmem:[%s4590_s14 + $0x90] sm:$0xff]  ;;  %v597_v22 = vld [vmem:[%s4590_s14 + $0xa8] sm:$0xff] }
  0x89   : > { %v596_v23 = vld [vmem:[%s4590_s14 + $0xa0] sm:$0xff]  ;;  %v599_v24 = vld [vmem:[%s4590_s14 + $0xb8] sm:$0xff]  ;;  %v598_v25 = vld [vmem:[%s4590_s14 + $0xb0] sm:$0xff] }
  0x8a   : > { %v601_v26 = vld [vmem:[%s4590_s14 + $0xc8] sm:$0xff]  ;;  %v600_v27 = vld [vmem:[%s4590_s14 + $0xc0] sm:$0xff]  ;;  %v603_v28 = vld [vmem:[%s4590_s14 + $0xd8] sm:$0xff] }
  0x8b   : > { %v602_v29 = vld [vmem:[%s4590_s14 + $0xd0] sm:$0xff]  ;;  %v605_v30 = vld [vmem:[%s4590_s14 + $0xe8] sm:$0xff]  ;;  %v604_v31 = vld [vmem:[%s4590_s14 + $0xe0] sm:$0xff] }
  0x8c   : > { %699 = vperm.xlu1 %4063, %v581_v6   ;;  %694 = vperm.xlu0 %4062, %v580_v7   ;;  %v607_v32 = vld [vmem:[%s4590_s14 + $0xf8] sm:$0xff]  ;;  %v606_v33 = vld [vmem:[%s4590_s14 + $0xf0] sm:$0xff]  ;;  %v4066_v34 = vld [vmem:[#allocation7 + $0x4] ss:$8 sps:$4 sm:$0xff]  }
  0x8d   : > { %v4069_v35 = vld [vmem:[#allocation7 + $0x84] ss:$8 sps:$4 sm:$0xff]   ;;  %1152 = vmatprep.mubr.bf16.mxu0 %v4066_v34  ;;  %v546_v36 = vld [vmem:[%s4595_s22 + $0x10] sm:$0xff]  ;;  %v547_v38 = vld [vmem:[%s4595_s22 + $0x18] sm:$0xff] }
  0x8e   : > { %1232 = vmatprep.mubr.bf16.mxu1 %v4069_v35  ;;  %v544_v37 = vld [vmem:[%s4595_s22] sm:$0xff]  ;;  %v545_v39 = vld [vmem:[%s4595_s22 + $0x8] sm:$0xff]  ;;  %v613_v41 = vunpack.c.h.bf16 %v546_v36  ;;  %v615_v45 = vunpack.c.h.bf16 %v547_v38  ;;  %v612_v50 = vunpack.c.l.bf16 %v546_v36  ;;  %v614_v51 = vunpack.c.l.bf16 %v547_v38  ;;  %v551_v62 = vld [vmem:[%s4595_s22 + $0x38] sm:$0xff] }
  0x8f   : > { %v608_v43 = vunpack.c.l.bf16 %v544_v37  ;;  %v609_v44 = vunpack.c.h.bf16 %v544_v37  ;;  %v610_v46 = vunpack.c.l.bf16 %v545_v39  ;;  %v611_v47 = vunpack.c.h.bf16 %v545_v39  ;;  %v549_v48 = vld [vmem:[%s4595_s22 + $0x28] sm:$0xff]  ;;  %v548_v49 = vld [vmem:[%s4595_s22 + $0x20] sm:$0xff]  ;;  %v550_v63 = vld [vmem:[%s4595_s22 + $0x30] sm:$0xff] }
  0x90   : > { %709 = vperm.xlu1 %4063, %v583_v8   ;;  %704 = vperm.xlu0 %4062, %v582_v9   ;;  %v619_v56 = vunpack.c.h.bf16 %v549_v48  ;;  %v617_v57 = vunpack.c.h.bf16 %v548_v49  ;;  %v618_v0 = vunpack.c.l.bf16 %v549_v48  ;;  %v616_v7 = vunpack.c.l.bf16 %v548_v49 }
  0x91   : > { %v623_v8 = vunpack.c.h.bf16 %v551_v62 }
  0x94   : > { %719 = vperm.xlu1 %4063, %v585_v10   ;;  %714 = vperm.xlu0 %4062, %v584_v11  }
  0x98   : > { %729 = vperm.xlu1 %4063, %v587_v12   ;;  %724 = vperm.xlu0 %4062, %v586_v13   ;;  %v621_v12 = vunpack.c.h.bf16 %v550_v63  ;;  %v553_v13 = vld [vmem:[%s4595_s22 + $0x48] sm:$0xff] }
  0x9c   : > { %739 = vperm.xlu1 %4063, %v589_v14   ;;  %734 = vperm.xlu0 %4062, %v588_v15   ;;  %v552_v14 = vld [vmem:[%s4595_s22 + $0x40] sm:$0xff]  ;;  %v622_v15 = vunpack.c.l.bf16 %v551_v62 }
  0xa0   : > { %749 = vperm.xlu1 %4063, %v591_v16   ;;  %744 = vperm.xlu0 %4062, %v590_v17   ;;  %v620_v16 = vunpack.c.l.bf16 %v550_v63 }
  0xa4   : > { %759 = vperm.xlu1 %4063, %v593_v18   ;;  %754 = vperm.xlu0 %4062, %v592_v19  }
  0xa8   : > { %769 = vperm.xlu1 %4063, %v595_v20   ;;  %764 = vperm.xlu0 %4062, %v594_v21  }
  0xac   : > { %779 = vperm.xlu1 %4063, %v597_v22   ;;  %774 = vperm.xlu0 %4062, %v596_v23   ;;  %v627_v22 = vunpack.c.h.bf16 %v553_v13 }
  0xb0   : > { %789 = vperm.xlu1 %4063, %v599_v24   ;;  %784 = vperm.xlu0 %4062, %v598_v25  }
  0xb4   : > { %799 = vperm.xlu1 %4063, %v601_v26   ;;  %794 = vperm.xlu0 %4062, %v600_v27   ;;  %v625_v26 = vunpack.c.h.bf16 %v552_v14  ;;  %v555_v27 = vld [vmem:[%s4595_s22 + $0x58] sm:$0xff] }
  0xb5   : > { %v631_v36 = vunpack.c.h.bf16 %v555_v27 }
  0xb8   : > { %809 = vperm.xlu1 %4063, %v603_v28   ;;  %804 = vperm.xlu0 %4062, %v602_v29   ;;  %v554_v28 = vld [vmem:[%s4595_s22 + $0x50] sm:$0xff]  ;;  %v626_v29 = vunpack.c.l.bf16 %v553_v13 }
  0xbc   : > { %819 = vperm.xlu1 %4063, %v605_v30   ;;  %814 = vperm.xlu0 %4062, %v604_v31   ;;  %v624_v30 = vunpack.c.l.bf16 %v552_v14 }
  0xc0   : > { %829 = vperm.xlu1 %4063, %v607_v32   ;;  %824 = vperm.xlu0 %4062, %v606_v33  }
 0x103   : > { %v685_v40 = vpop.permute.xlu1 %684  ;;  %v675_v42 = vpop.permute.xlu0 %674 }
 0x104   : > { %v837_v52 = vmul.f32 %v685_v40, %v613_v41  ;;  %v832_v53 = vmul.f32 %v675_v42, %v608_v43  ;;  %v833_v58 = vmul.f32 %v675_v42, %v609_v44  ;;  %v836_v3 = vmul.f32 %v685_v40, %v612_v50  ;;  %v557_v41 = vld [vmem:[%s4595_s22 + $0x68] sm:$0xff]  ;;  %v556_v42 = vld [vmem:[%s4595_s22 + $0x60] sm:$0xff] }
 0x105   : > { %v629_v40 = vunpack.c.h.bf16 %v554_v28  ;;  %v630_v43 = vunpack.c.l.bf16 %v555_v27  ;;  %v628_v44 = vunpack.c.l.bf16 %v554_v28  ;;  %v635_v50 = vunpack.c.h.bf16 %v557_v41 }
 0x107   : > { %v690_v54 = vpop.permute.xlu1 %689  ;;  %v680_v55 = vpop.permute.xlu0 %679 }
 0x108   : > { %v839_v59 = vmul.f32 %v690_v54, %v615_v45  ;;  %v834_v60 = vmul.f32 %v680_v55, %v610_v46  ;;  %v835_v61 = vmul.f32 %v680_v55, %v611_v47  ;;  %v838_v4 = vmul.f32 %v690_v54, %v614_v51  ;;  %v559_v55 = vld [vmem:[%s4595_s22 + $0x78] sm:$0xff] }
 0x109   : > { %v633_v54 = vunpack.c.h.bf16 %v556_v42 }
 0x10a   : > { %v897_v1 = vpack.c.bf16 %v835_v61, %v833_v58  ;;  %v896_v2 = vpack.c.bf16 %v834_v60, %v832_v53  ;;  %v899_v9 = vpack.c.bf16 %v839_v59, %v837_v52  ;;  %v898_v17 = vpack.c.bf16 %v838_v4, %v836_v3 }
 0x10b   : > { %v700_v5 = vpop.permute.xlu1 %699  ;;  %v695_v6 = vpop.permute.xlu0 %694  ;;  %v632_v58 = vunpack.c.l.bf16 %v556_v42 }
 0x10c   : > { %v843_v10 = vmul.f32 %v700_v5, %v619_v56  ;;  %v841_v11 = vmul.f32 %v695_v6, %v617_v57  ;;  %1120 = vmatprep.subr.bf16.mxu0 %v897_v1  ;;  %3899 = vmatprep.subr.bf16.mxu1 %v897_v1  ;;  %v842_v18 = vmul.f32 %v700_v5, %v618_v0  ;;  %v558_v56 = vld [vmem:[%s4595_s22 + $0x70] sm:$0xff]  ;;  %v634_v57 = vunpack.c.l.bf16 %v557_v41  ;;  %v561_v5 = vld [vmem:[%s4595_s22 + $0x88] sm:$0xff] }
 0x10d   : > { %1121 = vmatpush1.bf16.msra.mxu0 %v896_v2  ;;  %3915 = vmatpush1.bf16.msra.mxu1 %v896_v2  ;;  %v840_v19 = vmul.f32 %v695_v6, %v616_v7  ;;  %v639_v0 = vunpack.c.h.bf16 %v559_v55  ;;  %v637_v4 = vunpack.c.h.bf16 %v558_v56  ;;  %v560_v6 = vld [vmem:[%s4595_s22 + $0x80] sm:$0xff]  ;;  %v638_v7 = vunpack.c.l.bf16 %v559_v55 }
 0x10e   : > { %1122 = vmatprep.subr.bf16.mxu0 %v899_v9  ;;  %3900 = vmatprep.subr.bf16.mxu1 %v899_v9  ;;  %v901_v23 = vpack.c.bf16 %v843_v10, %v841_v11  ;;  %v643_v14 = vunpack.c.h.bf16 %v561_v5 }
 0x10f   : > { %v710_v20 = vpop.permute.xlu1 %709  ;;  %v705_v21 = vpop.permute.xlu0 %704  ;;  %v900_v31 = vpack.c.bf16 %v842_v18, %v840_v19  ;;  %v641_v18 = vunpack.c.h.bf16 %v560_v6  ;;  %v563_v19 = vld [vmem:[%s4595_s22 + $0x98] sm:$0xff] }
 0x110   : > { %v847_v24 = vmul.f32 %v710_v20, %v623_v8  ;;  %v845_v25 = vmul.f32 %v705_v21, %v621_v12  ;;  %v846_v32 = vmul.f32 %v710_v20, %v622_v15  ;;  %v844_v33 = vmul.f32 %v705_v21, %v620_v16  ;;  %v562_v20 = vld [vmem:[%s4595_s22 + $0x90] sm:$0xff] }
 0x111   : > { %1123 = vmatpush1.bf16.msra.mxu0 %v898_v17  ;;  %3916 = vmatpush1.bf16.msra.mxu1 %v898_v17  ;;  %v636_v8 = vunpack.c.l.bf16 %v558_v56  ;;  %v642_v21 = vunpack.c.l.bf16 %v561_v5  ;;  %v647_v28 = vunpack.c.h.bf16 %v563_v19 }
 0x112   : > { %1124 = vmatprep.subr.bf16.mxu0 %v901_v23  ;;  %3901 = vmatprep.subr.bf16.mxu1 %v901_v23  ;;  %v903_v37 = vpack.c.bf16 %v847_v24, %v845_v25  ;;  %v902_v45 = vpack.c.bf16 %v846_v32, %v844_v33  ;;  %v645_v32 = vunpack.c.h.bf16 %v562_v20  ;;  %v565_v33 = vld [vmem:[%s4595_s22 + $0xa8] sm:$0xff] }
 0x113   : > { %v720_v34 = vpop.permute.xlu1 %719  ;;  %v715_v35 = vpop.permute.xlu0 %714  ;;  %v651_v42 = vunpack.c.h.bf16 %v565_v33 }
 0x114   : > { %v851_v38 = vmul.f32 %v720_v34, %v627_v22  ;;  %v849_v39 = vmul.f32 %v715_v35, %v625_v26  ;;  %v850_v46 = vmul.f32 %v720_v34, %v626_v29  ;;  %v848_v47 = vmul.f32 %v715_v35, %v624_v30  ;;  %v564_v34 = vld [vmem:[%s4595_s22 + $0xa0] sm:$0xff] }
 0x115   : > { %1125 = vmatpush1.bf16.msra.mxu0 %v900_v31  ;;  %3917 = vmatpush1.bf16.msra.mxu1 %v900_v31  ;;  %v640_v22 = vunpack.c.l.bf16 %v560_v6  ;;  %v646_v35 = vunpack.c.l.bf16 %v563_v19 }
 0x116   : > { %1126 = vmatprep.subr.bf16.mxu0 %v903_v37  ;;  %3902 = vmatprep.subr.bf16.mxu1 %v903_v37  ;;  %v905_v51 = vpack.c.bf16 %v851_v38, %v849_v39  ;;  %v904_v59 = vpack.c.bf16 %v850_v46, %v848_v47  ;;  %v649_v46 = vunpack.c.h.bf16 %v564_v34  ;;  %v567_v47 = vld [vmem:[%s4595_s22 + $0xb8] sm:$0xff] }
 0x117   : > { %v730_v48 = vpop.permute.xlu1 %729  ;;  %v725_v49 = vpop.permute.xlu0 %724  ;;  %v655_v56 = vunpack.c.h.bf16 %v567_v47 }
 0x118   : > { %v855_v52 = vmul.f32 %v730_v48, %v631_v36  ;;  %v853_v53 = vmul.f32 %v725_v49, %v629_v40  ;;  %v854_v60 = vmul.f32 %v730_v48, %v630_v43  ;;  %v852_v61 = vmul.f32 %v725_v49, %v628_v44  ;;  %v566_v48 = vld [vmem:[%s4595_s22 + $0xb0] sm:$0xff] }
 0x119   : > { %1127 = vmatpush1.bf16.msra.mxu0 %v902_v45  ;;  %3918 = vmatpush1.bf16.msra.mxu1 %v902_v45  ;;  %v644_v36 = vunpack.c.l.bf16 %v562_v20  ;;  %v650_v49 = vunpack.c.l.bf16 %v565_v33 }
 0x11a   : > { %1128 = vmatprep.subr.bf16.mxu0 %v905_v51  ;;  %3903 = vmatprep.subr.bf16.mxu1 %v905_v51  ;;  %v907_v1 = vpack.c.bf16 %v855_v52, %v853_v53  ;;  %v906_v9 = vpack.c.bf16 %v854_v60, %v852_v61  ;;  %v653_v60 = vunpack.c.h.bf16 %v566_v48  ;;  %v569_v61 = vld [vmem:[%s4595_s22 + $0xc8] sm:$0xff] }
 0x11b   : > { %v740_v62 = vpop.permute.xlu1 %739  ;;  %v735_v63 = vpop.permute.xlu0 %734  ;;  %v659_v6 = vunpack.c.h.bf16 %v569_v61 }
 0x11c   : > { %v859_v2 = vmul.f32 %v740_v62, %v635_v50  ;;  %v857_v3 = vmul.f32 %v735_v63, %v633_v54  ;;  %v858_v10 = vmul.f32 %v740_v62, %v634_v57  ;;  %v856_v11 = vmul.f32 %v735_v63, %v632_v58  ;;  %v568_v62 = vld [vmem:[%s4595_s22 + $0xc0] sm:$0xff] }
 0x11d   : > { %1129 = vmatpush1.bf16.msra.mxu0 %v904_v59  ;;  %3919 = vmatpush1.bf16.msra.mxu1 %v904_v59  ;;  %v648_v50 = vunpack.c.l.bf16 %v564_v34  ;;  %v654_v63 = vunpack.c.l.bf16 %v567_v47 }
 0x11e   : > { %1130 = vmatprep.subr.bf16.mxu0 %v907_v1  ;;  %3904 = vmatprep.subr.bf16.mxu1 %v907_v1  ;;  %v909_v15 = vpack.c.bf16 %v859_v2, %v857_v3  ;;  %v908_v23 = vpack.c.bf16 %v858_v10, %v856_v11  ;;  %v657_v10 = vunpack.c.h.bf16 %v568_v62  ;;  %v571_v11 = vld [vmem:[%s4595_s22 + $0xd8] sm:$0xff] }
 0x11f   : > { %v750_v12 = vpop.permute.xlu1 %749  ;;  %v745_v13 = vpop.permute.xlu0 %744  ;;  %v663_v20 = vunpack.c.h.bf16 %v571_v11 }
 0x120   : > { %v863_v16 = vmul.f32 %v750_v12, %v639_v0  ;;  %v861_v17 = vmul.f32 %v745_v13, %v637_v4  ;;  %v862_v24 = vmul.f32 %v750_v12, %v638_v7  ;;  %v860_v25 = vmul.f32 %v745_v13, %v636_v8  ;;  %v570_v12 = vld [vmem:[%s4595_s22 + $0xd0] sm:$0xff] }
 0x121   : > { %1131 = vmatpush1.bf16.msra.mxu0 %v906_v9  ;;  %3920 = vmatpush1.bf16.msra.mxu1 %v906_v9  ;;  %v652_v0 = vunpack.c.l.bf16 %v566_v48  ;;  %v658_v13 = vunpack.c.l.bf16 %v569_v61 }
 0x122   : > { %1132 = vmatprep.subr.bf16.mxu0 %v909_v15  ;;  %3905 = vmatprep.subr.bf16.mxu1 %v909_v15  ;;  %v911_v29 = vpack.c.bf16 %v863_v16, %v861_v17  ;;  %v910_v37 = vpack.c.bf16 %v862_v24, %v860_v25  ;;  %v661_v24 = vunpack.c.h.bf16 %v570_v12  ;;  %v573_v25 = vld [vmem:[%s4595_s22 + $0xe8] sm:$0xff] }
 0x123   : > { %v760_v26 = vpop.permute.xlu1 %759  ;;  %v755_v27 = vpop.permute.xlu0 %754  ;;  %v667_v34 = vunpack.c.h.bf16 %v573_v25 }
 0x124   : > { %v867_v30 = vmul.f32 %v760_v26, %v643_v14  ;;  %v865_v31 = vmul.f32 %v755_v27, %v641_v18  ;;  %v866_v38 = vmul.f32 %v760_v26, %v642_v21  ;;  %v864_v39 = vmul.f32 %v755_v27, %v640_v22  ;;  %v572_v26 = vld [vmem:[%s4595_s22 + $0xe0] sm:$0xff] }
 0x125   : > { %1133 = vmatpush1.bf16.msra.mxu0 %v908_v23  ;;  %3921 = vmatpush1.bf16.msra.mxu1 %v908_v23  ;;  %v656_v14 = vunpack.c.l.bf16 %v568_v62  ;;  %v662_v27 = vunpack.c.l.bf16 %v571_v11  ;;  %v4078_v11 = vld [vmem:[#allocation7 + $0xa4] ss:$8 sps:$4 sm:$0xff]  }
 0x126   : > { %1134 = vmatprep.subr.bf16.mxu0 %v911_v29  ;;  %3906 = vmatprep.subr.bf16.mxu1 %v911_v29  ;;  %v913_v43 = vpack.c.bf16 %v867_v30, %v865_v31  ;;  %v912_v51 = vpack.c.bf16 %v866_v38, %v864_v39  ;;  %v665_v38 = vunpack.c.h.bf16 %v572_v26  ;;  %v575_v39 = vld [vmem:[%s4595_s22 + $0xf8] sm:$0xff] }
 0x127   : > { %v770_v40 = vpop.permute.xlu1 %769  ;;  %v765_v41 = vpop.permute.xlu0 %764  ;;  %v671_v48 = vunpack.c.h.bf16 %v575_v39 }
 0x128   : > { %v871_v44 = vmul.f32 %v770_v40, %v647_v28  ;;  %v869_v45 = vmul.f32 %v765_v41, %v645_v32  ;;  %v870_v52 = vmul.f32 %v770_v40, %v646_v35  ;;  %v868_v53 = vmul.f32 %v765_v41, %v644_v36  ;;  %v574_v40 = vld [vmem:[%s4595_s22 + $0xf0] sm:$0xff] }
 0x129   : > { %1135 = vmatpush1.bf16.msra.mxu0 %v910_v37  ;;  %3922 = vmatpush1.bf16.msra.mxu1 %v910_v37  ;;  %v660_v28 = vunpack.c.l.bf16 %v570_v12  ;;  %v666_v41 = vunpack.c.l.bf16 %v573_v25  ;;  %v4080_v12 = vld [vmem:[#allocation7 + $0x20] ss:$8 sps:$4 sm:$0xff]   ;;  %v4099_v25 = vld [vmem:[#allocation7 + $0xd0] ss:$8 sps:$4 sm:$0xff]  }
 0x12a   : > { %1136 = vmatprep.subr.bf16.mxu0 %v913_v43  ;;  %3907 = vmatprep.subr.bf16.mxu1 %v913_v43  ;;  %v915_v57 = vpack.c.bf16 %v871_v44, %v869_v45  ;;  %v914_v1 = vpack.c.bf16 %v870_v52, %v868_v53  ;;  %v669_v52 = vunpack.c.h.bf16 %v574_v40  ;;  %v670_v53 = vunpack.c.l.bf16 %v575_v39 }
 0x12b   : > { %v780_v54 = vpop.permute.xlu1 %779  ;;  %v775_v55 = vpop.permute.xlu0 %774 }
 0x12c   : > { %v875_v58 = vmul.f32 %v780_v54, %v651_v42  ;;  %v873_v59 = vmul.f32 %v775_v55, %v649_v46  ;;  %v874_v2 = vmul.f32 %v780_v54, %v650_v49  ;;  %v872_v3 = vmul.f32 %v775_v55, %v648_v50 }
 0x12d   : > { %1137 = vmatpush1.bf16.msra.mxu0 %v912_v51  ;;  %3923 = vmatpush1.bf16.msra.mxu1 %v912_v51  ;;  %v664_v42 = vunpack.c.l.bf16 %v572_v26  ;;  %v4100_v26 = vld [vmem:[#allocation7 + $0x64] ss:$8 sps:$4 sm:$0xff]  }
 0x12e   : > { %1138 = vmatprep.subr.bf16.mxu0 %v915_v57  ;;  %3908 = vmatprep.subr.bf16.mxu1 %v915_v57  ;;  %v917_v7 = vpack.c.bf16 %v875_v58, %v873_v59  ;;  %v916_v15 = vpack.c.bf16 %v874_v2, %v872_v3  ;;  %v668_v59 = vunpack.c.l.bf16 %v574_v40 }
 0x12f   : > { %v790_v4 = vpop.permute.xlu1 %789  ;;  %v785_v5 = vpop.permute.xlu0 %784 }
 0x130   : > { %v879_v8 = vmul.f32 %v790_v4, %v655_v56  ;;  %v877_v9 = vmul.f32 %v785_v5, %v653_v60  ;;  %v878_v16 = vmul.f32 %v790_v4, %v654_v63  ;;  %v876_v17 = vmul.f32 %v785_v5, %v652_v0  ;;  %v4064_v4 = vld [vmem:[#allocation7] ss:$8 sps:$4 sm:$0xff]  }
 0x131   : > { %1139 = vmatpush1.bf16.msra.mxu0 %v914_v1  ;;  %3924 = vmatpush1.bf16.msra.mxu1 %v914_v1  ;;  %v4067_v5 = vld [vmem:[#allocation7 + $0x80] ss:$8 sps:$4 sm:$0xff]  }
 0x132   : > { %1140 = vmatprep.subr.bf16.mxu0 %v917_v7  ;;  %3909 = vmatprep.subr.bf16.mxu1 %v917_v7  ;;  %v919_v21 = vpack.c.bf16 %v879_v8, %v877_v9  ;;  %v918_v29 = vpack.c.bf16 %v878_v16, %v876_v17  ;;  %v4072_v7 = vld [vmem:[#allocation7 + $0x94] ss:$8 sps:$4 sm:$0xff]   ;;  %v4074_v8 = vld [vmem:[#allocation7 + $0x10] ss:$8 sps:$4 sm:$0xff]  }
 0x133   : > { %v800_v18 = vpop.permute.xlu1 %799  ;;  %v795_v19 = vpop.permute.xlu0 %794  ;;  %v4075_v9 = vld [vmem:[#allocation7 + $0x90] ss:$8 sps:$4 sm:$0xff]  }
 0x134   : > { %v883_v22 = vmul.f32 %v800_v18, %v659_v6  ;;  %v881_v23 = vmul.f32 %v795_v19, %v657_v10  ;;  %v882_v30 = vmul.f32 %v800_v18, %v658_v13  ;;  %v880_v31 = vmul.f32 %v795_v19, %v656_v14  ;;  %v4070_v6 = vld [vmem:[#allocation7 + $0x14] ss:$8 sps:$4 sm:$0xff]   ;;  %v4076_v10 = vld [vmem:[#allocation7 + $0x24] ss:$8 sps:$4 sm:$0xff]   ;;  %v4081_v13 = vld [vmem:[#allocation7 + $0xa0] ss:$8 sps:$4 sm:$0xff]  }
 0x135   : > { %1141 = vmatpush1.bf16.msra.mxu0 %v916_v15  ;;  %3925 = vmatpush1.bf16.msra.mxu1 %v916_v15  ;;  %v4082_v14 = vld [vmem:[#allocation7 + $0x34] ss:$8 sps:$4 sm:$0xff]   ;;  %v4086_v16 = vld [vmem:[#allocation7 + $0x30] ss:$8 sps:$4 sm:$0xff]   ;;  %v4088_v18 = vld [vmem:[#allocation7 + $0x44] ss:$8 sps:$4 sm:$0xff]  }
 0x136   : > { %1142 = vmatprep.subr.bf16.mxu0 %v919_v21  ;;  %3910 = vmatprep.subr.bf16.mxu1 %v919_v21  ;;  %v921_v35 = vpack.c.bf16 %v883_v22, %v881_v23  ;;  %v920_v43 = vpack.c.bf16 %v882_v30, %v880_v31  ;;  %v4084_v15 = vld [vmem:[#allocation7 + $0xb4] ss:$8 sps:$4 sm:$0xff]   ;;  %v4087_v17 = vld [vmem:[#allocation7 + $0xb0] ss:$8 sps:$4 sm:$0xff]   ;;  %v4090_v19 = vld [vmem:[#allocation7 + $0xc4] ss:$8 sps:$4 sm:$0xff]  }
 0x137   : > { %v810_v32 = vpop.permute.xlu1 %809  ;;  %v805_v33 = vpop.permute.xlu0 %804  ;;  %v4093_v21 = vld [vmem:[#allocation7 + $0xc0] ss:$8 sps:$4 sm:$0xff]   ;;  %v4094_v22 = vld [vmem:[#allocation7 + $0x54] ss:$8 sps:$4 sm:$0xff]  }
 0x138   : > { %v887_v36 = vmul.f32 %v810_v32, %v663_v20  ;;  %v885_v37 = vmul.f32 %v805_v33, %v661_v24  ;;  %v886_v44 = vmul.f32 %v810_v32, %v662_v27  ;;  %v884_v45 = vmul.f32 %v805_v33, %v660_v28  ;;  %v4092_v20 = vld [vmem:[#allocation7 + $0x40] ss:$8 sps:$4 sm:$0xff]   ;;  %v4096_v23 = vld [vmem:[#allocation7 + $0xd4] ss:$8 sps:$4 sm:$0xff]   ;;  %v4098_v24 = vld [vmem:[#allocation7 + $0x50] ss:$8 sps:$4 sm:$0xff]  }
 0x139   : > { %1143 = vmatpush1.bf16.msra.mxu0 %v918_v29  ;;  %3926 = vmatpush1.bf16.msra.mxu1 %v918_v29  ;;  %v4102_v27 = vld [vmem:[#allocation7 + $0xe4] ss:$8 sps:$4 sm:$0xff]   ;;  %v4104_v28 = vld [vmem:[#allocation7 + $0x60] ss:$8 sps:$4 sm:$0xff]   ;;  %v4106_v30 = vld [vmem:[#allocation7 + $0x74] ss:$8 sps:$4 sm:$0xff]  }
 0x13a   : > { %1144 = vmatprep.subr.bf16.mxu0 %v921_v35  ;;  %3911 = vmatprep.subr.bf16.mxu1 %v921_v35  ;;  %v923_v49 = vpack.c.bf16 %v887_v36, %v885_v37  ;;  %v922_v54 = vpack.c.bf16 %v886_v44, %v884_v45  ;;  %v4105_v29 = vld [vmem:[#allocation7 + $0xe0] ss:$8 sps:$4 sm:$0xff]   ;;  %v4108_v31 = vld [vmem:[#allocation7 + $0xf4] ss:$8 sps:$4 sm:$0xff]   ;;  %v4110_v32 = vld [vmem:[#allocation7 + $0x70] ss:$8 sps:$4 sm:$0xff]  }
 0x13b   : > { %v820_v46 = vpop.permute.xlu1 %819  ;;  %v815_v47 = vpop.permute.xlu0 %814  ;;  %v4111_v33 = vld [vmem:[#allocation7 + $0xf0] ss:$8 sps:$4 sm:$0xff]   ;;  %v1605_v45 = vld [vmem:[#allocation3] sm:$0xff] }
 0x13c   : > { %v891_v50 = vmul.f32 %v820_v46, %v667_v34  ;;  %v889_v51 = vmul.f32 %v815_v47, %v665_v38  ;;  %v890_v55 = vmul.f32 %v820_v46, %v666_v41  ;;  %v888_v56 = vmul.f32 %v815_v47, %v664_v42  ;;  %v1509_v38 = vld [vmem:[#allocation2] sm:$0xff] }
 0x13d   : > { %1145 = vmatpush1.bf16.msra.mxu0 %v920_v43  ;;  %3927 = vmatpush1.bf16.msra.mxu1 %v920_v43  ;;  %v1525_v43 = vld [vmem:[#allocation2 + $0x80] sm:$0xff] }
 0x13e   : > { %1146 = vmatprep.subr.bf16.mxu0 %v923_v49  ;;  %3912 = vmatprep.subr.bf16.mxu1 %v923_v49  ;;  %v925_v60 = vpack.c.bf16 %v891_v50, %v889_v51  ;;  %v924_v63 = vpack.c.bf16 %v890_v55, %v888_v56 }
 0x13f   : > { %v830_v57 = vpop.permute.xlu1 %829  ;;  %v825_v58 = vpop.permute.xlu0 %824 }
 0x140   : > { %v895_v61 = vmul.f32 %v830_v57, %v671_v48  ;;  %v893_v62 = vmul.f32 %v825_v58, %v669_v52  ;;  %v894_v0 = vmul.f32 %v830_v57, %v670_v53  ;;  %v892_v1 = vmul.f32 %v825_v58, %v668_v59 }
 0x141   : > { %1147 = vmatpush1.bf16.msra.mxu0 %v922_v54  ;;  %3928 = vmatpush1.bf16.msra.mxu1 %v922_v54  ;;  %v1621_v54 = vld [vmem:[#allocation3 + $0x80] sm:$0xff] }
 0x142   : > { %1148 = vmatprep.subr.bf16.mxu0 %v925_v60  ;;  %3913 = vmatprep.subr.bf16.mxu1 %v925_v60  ;;  %v927_v2 = vpack.c.bf16 %v895_v61, %v893_v62  ;;  %v926_v3 = vpack.c.bf16 %v894_v0, %v892_v1  ;;  %v1510_v62 = vld [vmem:[#allocation2 + $0x8] sm:$0xff] }
 0x143   : > { %v1606_v1 = vld [vmem:[#allocation3 + $0x8] sm:$0xff] }
 0x145   : > { %1149 = vmatpush1.bf16.msra.mxu0 %v924_v63  ;;  %3929 = vmatpush1.bf16.msra.mxu1 %v924_v63 }
 0x146   : > { %1150 = vmatprep.subr.bf16.mxu0 %v927_v2  ;;  %3914 = vmatprep.subr.bf16.mxu1 %v927_v2 }
 0x149   : > { %1151 = vmatpush1.bf16.msra.mxu0 %v926_v3  ;;  %3930 = vmatpush1.bf16.msra.mxu1 %v926_v3 }
 0x14c   : > { %1153 = vmatmul.mubr.bf16.vlgmr.msra.gmra.mrb[0].mxu0 %v4064_v4  ;;  %1233 = vmatmul.mubr.bf16.vlgmr.msra.gmra.mrb[0].mxu1 %v4067_v5  ;;  %v1526_v4 = vld [vmem:[#allocation2 + $0x88] sm:$0xff] }
 0x14d   : > { %1162 = vmatprep.mubr.bf16.mxu0 %v4070_v6  ;;  %1242 = vmatprep.mubr.bf16.mxu1 %v4072_v7 }
 0x154   : > { %1163 = vmatmul.mubr.bf16.gmra.mrb[4].mxu0 %v4074_v8  ;;  %1243 = vmatmul.mubr.bf16.gmra.mrb[4].mxu1 %v4075_v9  ;;  %v1622_v8 = vld [vmem:[#allocation3 + $0x88] sm:$0xff] }
 0x155   : > { %1172 = vmatprep.mubr.bf16.mxu0 %v4076_v10  ;;  %1252 = vmatprep.mubr.bf16.mxu1 %v4078_v11 }
 0x15c   : > { %1173 = vmatmul.mubr.bf16.gmra.mrb[8].mxu0 %v4080_v12  ;;  %1253 = vmatmul.mubr.bf16.gmra.mrb[8].mxu1 %v4081_v13 }
 0x15d   : > { %1182 = vmatprep.mubr.bf16.mxu0 %v4082_v14  ;;  %1262 = vmatprep.mubr.bf16.mxu1 %v4084_v15 }
 0x164   : > { %1183 = vmatmul.mubr.bf16.gmra.mrb[12].mxu0 %v4086_v16  ;;  %1263 = vmatmul.mubr.bf16.gmra.mrb[12].mxu1 %v4087_v17  ;;  %v1511_v17 = vld [vmem:[#allocation2 + $0x10] sm:$0xff] }
 0x165   : > { %1192 = vmatprep.mubr.bf16.mxu0 %v4088_v18  ;;  %1272 = vmatprep.mubr.bf16.mxu1 %v4090_v19 }
 0x16c   : > { %1193 = vmatmul.mubr.bf16.gmra.mrb[16].mxu0 %v4092_v20  ;;  %1273 = vmatmul.mubr.bf16.gmra.mrb[16].mxu1 %v4093_v21 }
 0x16d   : > { %1202 = vmatprep.mubr.bf16.mxu0 %v4094_v22  ;;  %1282 = vmatprep.mubr.bf16.mxu1 %v4096_v23  ;;  %v1527_v23 = vld [vmem:[#allocation2 + $0x90] sm:$0xff] }
 0x174   : > { %1203 = vmatmul.mubr.bf16.gmra.mrb[20].mxu0 %v4098_v24  ;;  %1283 = vmatmul.mubr.bf16.gmra.mrb[20].mxu1 %v4099_v25  ;;  %v1607_v25 = vld [vmem:[#allocation3 + $0x10] sm:$0xff] }
 0x175   : > { %1212 = vmatprep.mubr.bf16.mxu0 %v4100_v26  ;;  %1292 = vmatprep.mubr.bf16.mxu1 %v4102_v27 }
 0x17c   : > { %1213 = vmatmul.mubr.bf16.gmra.mrb[24].mxu0 %v4104_v28  ;;  %1293 = vmatmul.mubr.bf16.gmra.mrb[24].mxu1 %v4105_v29 }
 0x17d   : > { %1222 = vmatprep.mubr.bf16.mxu0 %v4106_v30  ;;  %1302 = vmatprep.mubr.bf16.mxu1 %v4108_v31 }
 0x184   : > { %1223 = vmatmul.mubr.bf16.gmra.mrb[28].mxu0 %v4110_v32  ;;  %1303 = vmatmul.mubr.bf16.gmra.mrb[28].mxu1 %v4111_v33 }
 0x21f   : > { %v1154_v34 = vpop.f32.mrb[0].mxu0  ;;  %v1234_v36 = vpop.f32.mrb[0].mxu1 }
 0x220   : > { %v1381_v35 = vmul.f32 %v1154_v34, %v1154_v34  ;;  %v1156_v37 = vpop.f32.mrb[1].mxu0  ;;  %v1413_v39 = vmul.f32 %v1234_v36, %v1234_v36  ;;  %v1236_v42 = vpop.f32.mrb[1].mxu1 }
 0x221   : > { %v1382_v40 = vmul.f32 %v1156_v37, %v1156_v37  ;;  %v1445_v41 = vadd.f32 %v1156_v37, %v1154_v34  ;;  %v1158_v44 = vpop.f32.mrb[2].mxu0  ;;  %v1414_v46 = vmul.f32 %v1236_v42, %v1236_v42  ;;  %v1461_v47 = vadd.f32 %v1236_v42, %v1234_v36  ;;  %v1238_v50 = vpop.f32.mrb[2].mxu1 }
 0x222   : > { %v1313_v48 = vpack.c.bf16 %v1158_v44, %v1154_v34  ;;  %v1383_v49 = vmul.f32 %v1158_v44, %v1158_v44  ;;  %v1160_v51 = vpop.f32.mrb[3].mxu0  ;;  %v1329_v55 = vpack.c.bf16 %v1238_v50, %v1234_v36  ;;  %v1415_v56 = vmul.f32 %v1238_v50, %v1238_v50  ;;  %v1240_v57 = vpop.f32.mrb[3].mxu1  ;;  %v1623_v34 = vld [vmem:[#allocation3 + $0x90] sm:$0xff] }
 0x223   : > { %v1477_v52 = vadd.f32 %v1382_v40, %v1381_v35  ;;  %v1541_v53 = vadd.f32 %v1509_v38, %v1445_v41  ;;  %v1493_v58 = vadd.f32 %v1414_v46, %v1413_v39  ;;  %v1557_v59 = vadd.f32 %v1525_v43, %v1461_v47 }
 0x224   : > { %1349 = vst [vmem:[%s4735_s11] sm:$0xff] %v1313_v48  ;;  %v1314_v60 = vpack.c.bf16 %v1160_v51, %v1156_v37  ;;  %v1384_v61 = vmul.f32 %v1160_v51, %v1160_v51  ;;  %1365 = vst [vmem:[%s4735_s11 + $0x80] sm:$0xff] %v1329_v55  ;;  %v1446_v0 = vadd.f32 %v1160_v51, %v1158_v44  ;;  %v1528_v48 = vld [vmem:[#allocation2 + $0x98] sm:$0xff] }
 0x225   : > { %1573 = vst [vmem:[#allocation2] sm:$0xff] %v1541_v53  ;;  %v1637_v63 = vadd.f32 %v1605_v45, %v1477_v52  ;;  %v1330_v2 = vpack.c.bf16 %v1240_v57, %v1236_v42  ;;  %v1416_v3 = vmul.f32 %v1240_v57, %v1240_v57  ;;  %1589 = vst [vmem:[#allocation2 + $0x80] sm:$0xff] %v1557_v59  ;;  %v1512_v42 = vld [vmem:[#allocation2 + $0x18] sm:$0xff] }
 0x226   : > { %v1653_v5 = vadd.f32 %v1621_v54, %v1493_v58  ;;  %1350 = vst [vmem:[%s4735_s11 + $0x8] sm:$0xff] %v1314_v60  ;;  %v1478_v6 = vadd.f32 %v1384_v61, %v1383_v49  ;;  %v1462_v7 = vadd.f32 %v1240_v57, %v1238_v50  ;;  %v1542_v9 = vadd.f32 %v1510_v62, %v1446_v0  ;;  %v1608_v45 = vld [vmem:[#allocation3 + $0x18] sm:$0xff]  ;;  %v1513_v61 = vld [vmem:[#allocation2 + $0x20] sm:$0xff] }
 0x227   : > { %1669 = vst [vmem:[#allocation3] sm:$0xff] %v1637_v63  ;;  %1366 = vst [vmem:[%s4735_s11 + $0x88] sm:$0xff] %v1330_v2  ;;  %v1494_v10 = vadd.f32 %v1416_v3, %v1415_v56  ;;  %v1164_v11 = vpop.f32.mrb[4].mxu0  ;;  %v1244_v15 = vpop.f32.mrb[4].mxu1  ;;  %v1624_v52 = vld [vmem:[#allocation3 + $0x98] sm:$0xff]  ;;  %v1529_v3 = vld [vmem:[#allocation2 + $0xa0] sm:$0xff] }
 0x228   : > { %1685 = vst [vmem:[#allocation3 + $0x80] sm:$0xff] %v1653_v5  ;;  %v1638_v12 = vadd.f32 %v1606_v1, %v1478_v6  ;;  %v1558_v13 = vadd.f32 %v1526_v4, %v1462_v7  ;;  %v1385_v14 = vmul.f32 %v1164_v11, %v1164_v11  ;;  %v1166_v16 = vpop.f32.mrb[5].mxu0  ;;  %1574 = vst [vmem:[#allocation2 + $0x8] sm:$0xff] %v1542_v9  ;;  %v1246_v22 = vpop.f32.mrb[5].mxu1  ;;  %v1609_v5 = vld [vmem:[#allocation3 + $0x20] sm:$0xff] }
 0x229   : > { %v1654_v18 = vadd.f32 %v1622_v8, %v1494_v10  ;;  %v1417_v19 = vmul.f32 %v1244_v15, %v1244_v15  ;;  %v1386_v20 = vmul.f32 %v1166_v16, %v1166_v16  ;;  %v1447_v21 = vadd.f32 %v1166_v16, %v1164_v11  ;;  %v1168_v24 = vpop.f32.mrb[6].mxu0  ;;  %v1248_v30 = vpop.f32.mrb[6].mxu1 }
 0x22a   : > { %1670 = vst [vmem:[#allocation3 + $0x8] sm:$0xff] %v1638_v12  ;;  %1590 = vst [vmem:[#allocation2 + $0x88] sm:$0xff] %v1558_v13  ;;  %v1418_v26 = vmul.f32 %v1246_v22, %v1246_v22  ;;  %v1463_v27 = vadd.f32 %v1246_v22, %v1244_v15  ;;  %v1315_v28 = vpack.c.bf16 %v1168_v24, %v1164_v11  ;;  %v1170_v31 = vpop.f32.mrb[7].mxu0  ;;  %v1250_v37 = vpop.f32.mrb[7].mxu1 }
 0x22b   : > { %v1387_v29 = vmul.f32 %v1168_v24, %v1168_v24  ;;  %1686 = vst [vmem:[#allocation3 + $0x88] sm:$0xff] %v1654_v18  ;;  %v1479_v32 = vadd.f32 %v1386_v20, %v1385_v14  ;;  %v1543_v33 = vadd.f32 %v1511_v17, %v1447_v21  ;;  %v1331_v35 = vpack.c.bf16 %v1248_v30, %v1244_v15  ;;  %v1625_v14 = vld [vmem:[#allocation3 + $0xa0] sm:$0xff] }
 0x22c   : > { %v1419_v36 = vmul.f32 %v1248_v30, %v1248_v30  ;;  %v1495_v38 = vadd.f32 %v1418_v26, %v1417_v19  ;;  %v1559_v39 = vadd.f32 %v1527_v23, %v1463_v27  ;;  %1351 = vst [vmem:[%s4735_s11 + $0x10] sm:$0xff] %v1315_v28  ;;  %v1316_v40 = vpack.c.bf16 %v1170_v31, %v1166_v16  ;;  %v1530_v28 = vld [vmem:[#allocation2 + $0xa8] sm:$0xff] }
 0x22d   : > { %v1388_v41 = vmul.f32 %v1170_v31, %v1170_v31  ;;  %1575 = vst [vmem:[#allocation2 + $0x10] sm:$0xff] %v1543_v33  ;;  %v1639_v43 = vadd.f32 %v1607_v25, %v1479_v32  ;;  %1367 = vst [vmem:[%s4735_s11 + $0x90] sm:$0xff] %v1331_v35  ;;  %v1448_v44 = vadd.f32 %v1170_v31, %v1168_v24  ;;  %v1610_v25 = vld [vmem:[#allocation3 + $0x28] sm:$0xff] }
 0x22e   : > { %v1332_v46 = vpack.c.bf16 %v1250_v37, %v1246_v22  ;;  %v1420_v47 = vmul.f32 %v1250_v37, %v1250_v37  ;;  %1591 = vst [vmem:[#allocation2 + $0x90] sm:$0xff] %v1559_v39  ;;  %v1655_v49 = vadd.f32 %v1623_v34, %v1495_v38  ;;  %1352 = vst [vmem:[%s4735_s11 + $0x18] sm:$0xff] %v1316_v40  ;;  %v1514_v22 = vld [vmem:[#allocation2 + $0x28] sm:$0xff] }
 0x22f   : > { %v1480_v50 = vadd.f32 %v1388_v41, %v1387_v29  ;;  %v1464_v51 = vadd.f32 %v1250_v37, %v1248_v30  ;;  %1671 = vst [vmem:[#allocation3 + $0x10] sm:$0xff] %v1639_v43  ;;  %v1544_v53 = vadd.f32 %v1512_v42, %v1448_v44  ;;  %v1174_v55 = vpop.f32.mrb[8].mxu0  ;;  %v1254_v59 = vpop.f32.mrb[8].mxu1  ;;  %v1626_v32 = vld [vmem:[#allocation3 + $0xa8] sm:$0xff]  ;;  %v1515_v41 = vld [vmem:[#allocation2 + $0x30] sm:$0xff] }
 0x230   : > { %1368 = vst [vmem:[%s4735_s11 + $0x98] sm:$0xff] %v1332_v46  ;;  %v1496_v54 = vadd.f32 %v1420_v47, %v1419_v36  ;;  %1687 = vst [vmem:[#allocation3 + $0x90] sm:$0xff] %v1655_v49  ;;  %v1389_v58 = vmul.f32 %v1174_v55, %v1174_v55  ;;  %v1176_v60 = vpop.f32.mrb[9].mxu0  ;;  %v1421_v63 = vmul.f32 %v1254_v59, %v1254_v59  ;;  %v1256_v2 = vpop.f32.mrb[9].mxu1  ;;  %v1531_v47 = vld [vmem:[#allocation2 + $0xb0] sm:$0xff] }
 0x231   : > { %v1640_v56 = vadd.f32 %v1608_v45, %v1480_v50  ;;  %v1560_v57 = vadd.f32 %v1528_v48, %v1464_v51  ;;  %1576 = vst [vmem:[#allocation2 + $0x18] sm:$0xff] %v1544_v53  ;;  %v1390_v0 = vmul.f32 %v1176_v60, %v1176_v60  ;;  %v1449_v1 = vadd.f32 %v1176_v60, %v1174_v55  ;;  %v1178_v4 = vpop.f32.mrb[10].mxu0  ;;  %v1258_v10 = vpop.f32.mrb[10].mxu1  ;;  %v1611_v49 = vld [vmem:[#allocation3 + $0x30] sm:$0xff] }
 0x232   : > { %v1656_v62 = vadd.f32 %v1624_v52, %v1496_v54  ;;  %v1422_v6 = vmul.f32 %v1256_v2, %v1256_v2  ;;  %v1465_v7 = vadd.f32 %v1256_v2, %v1254_v59  ;;  %v1317_v8 = vpack.c.bf16 %v1178_v4, %v1174_v55  ;;  %v1180_v11 = vpop.f32.mrb[11].mxu0  ;;  %v1260_v17 = vpop.f32.mrb[11].mxu1 }
 0x233   : > { %1672 = vst [vmem:[#allocation3 + $0x18] sm:$0xff] %v1640_v56  ;;  %1592 = vst [vmem:[#allocation2 + $0x98] sm:$0xff] %v1560_v57  ;;  %v1391_v9 = vmul.f32 %v1178_v4, %v1178_v4  ;;  %v1481_v12 = vadd.f32 %v1390_v0, %v1389_v58  ;;  %v1545_v13 = vadd.f32 %v1513_v61, %v1449_v1  ;;  %v1627_v58 = vld [vmem:[#allocation3 + $0xb0] sm:$0xff] }
 0x234   : > { %1688 = vst [vmem:[#allocation3 + $0x98] sm:$0xff] %v1656_v62  ;;  %v1333_v15 = vpack.c.bf16 %v1258_v10, %v1254_v59  ;;  %v1423_v16 = vmul.f32 %v1258_v10, %v1258_v10  ;;  %v1497_v18 = vadd.f32 %v1422_v6, %v1421_v63  ;;  %v1561_v19 = vadd.f32 %v1529_v3, %v1465_v7 }
 0x235   : > { %1353 = vst [vmem:[%s4735_s11 + $0x20] sm:$0xff] %v1317_v8  ;;  %v1318_v20 = vpack.c.bf16 %v1180_v11, %v1176_v60  ;;  %v1392_v21 = vmul.f32 %v1180_v11, %v1180_v11  ;;  %1577 = vst [vmem:[#allocation2 + $0x20] sm:$0xff] %v1545_v13  ;;  %v1641_v23 = vadd.f32 %v1609_v5, %v1481_v12  ;;  %v1612_v5 = vld [vmem:[#allocation3 + $0x38] sm:$0xff] }
 0x236   : > { %1369 = vst [vmem:[%s4735_s11 + $0xa0] sm:$0xff] %v1333_v15  ;;  %v1450_v24 = vadd.f32 %v1180_v11, %v1178_v4  ;;  %v1334_v26 = vpack.c.bf16 %v1260_v17, %v1256_v2  ;;  %v1424_v27 = vmul.f32 %v1260_v17, %v1260_v17  ;;  %1593 = vst [vmem:[#allocation2 + $0xa0] sm:$0xff] %v1561_v19  ;;  %v1516_v2 = vld [vmem:[#allocation2 + $0x38] sm:$0xff] }
 0x237   : > { %v1657_v29 = vadd.f32 %v1625_v14, %v1497_v18  ;;  %1354 = vst [vmem:[%s4735_s11 + $0x28] sm:$0xff] %v1318_v20  ;;  %v1482_v30 = vadd.f32 %v1392_v21, %v1391_v9  ;;  %v1466_v31 = vadd.f32 %v1260_v17, %v1258_v10  ;;  %1673 = vst [vmem:[#allocation3 + $0x20] sm:$0xff] %v1641_v23  ;;  %v1184_v35 = vpop.f32.mrb[12].mxu0  ;;  %v1264_v39 = vpop.f32.mrb[12].mxu1  ;;  %v1532_v8 = vld [vmem:[#allocation2 + $0xb8] sm:$0xff]  ;;  %v1517_v21 = vld [vmem:[#allocation2 + $0x40] sm:$0xff] }
 0x238   : > { %v1546_v33 = vadd.f32 %v1514_v22, %v1450_v24  ;;  %1370 = vst [vmem:[%s4735_s11 + $0xa8] sm:$0xff] %v1334_v26  ;;  %v1498_v34 = vadd.f32 %v1424_v27, %v1423_v16  ;;  %v1393_v38 = vmul.f32 %v1184_v35, %v1184_v35  ;;  %v1186_v40 = vpop.f32.mrb[13].mxu0  ;;  %v1425_v43 = vmul.f32 %v1264_v39, %v1264_v39  ;;  %v1266_v46 = vpop.f32.mrb[13].mxu1  ;;  %v1628_v12 = vld [vmem:[#allocation3 + $0xb8] sm:$0xff]  ;;  %v1533_v27 = vld [vmem:[#allocation2 + $0xc0] sm:$0xff] }
 0x239   : > { %1689 = vst [vmem:[#allocation3 + $0xa0] sm:$0xff] %v1657_v29  ;;  %v1642_v36 = vadd.f32 %v1610_v25, %v1482_v30  ;;  %v1562_v37 = vadd.f32 %v1530_v28, %v1466_v31  ;;  %v1394_v44 = vmul.f32 %v1186_v40, %v1186_v40  ;;  %v1451_v45 = vadd.f32 %v1186_v40, %v1184_v35  ;;  %v1188_v48 = vpop.f32.mrb[14].mxu0  ;;  %v1268_v54 = vpop.f32.mrb[14].mxu1  ;;  %v1613_v29 = vld [vmem:[#allocation3 + $0x40] sm:$0xff] }
 0x23a   : > { %1578 = vst [vmem:[#allocation2 + $0x28] sm:$0xff] %v1546_v33  ;;  %v1658_v42 = vadd.f32 %v1626_v32, %v1498_v34  ;;  %v1426_v50 = vmul.f32 %v1266_v46, %v1266_v46  ;;  %v1467_v51 = vadd.f32 %v1266_v46, %v1264_v39  ;;  %v1319_v52 = vpack.c.bf16 %v1188_v48, %v1184_v35  ;;  %v1190_v55 = vpop.f32.mrb[15].mxu0  ;;  %v1270_v61 = vpop.f32.mrb[15].mxu1 }
 0x23b   : > { %1674 = vst [vmem:[#allocation3 + $0x28] sm:$0xff] %v1642_v36  ;;  %1594 = vst [vmem:[#allocation2 + $0xa8] sm:$0xff] %v1562_v37  ;;  %v1395_v53 = vmul.f32 %v1188_v48, %v1188_v48  ;;  %v1483_v56 = vadd.f32 %v1394_v44, %v1393_v38  ;;  %v1547_v57 = vadd.f32 %v1515_v41, %v1451_v45  ;;  %v1629_v38 = vld [vmem:[#allocation3 + $0xc0] sm:$0xff] }
 0x23c   : > { %1690 = vst [vmem:[#allocation3 + $0xa8] sm:$0xff] %v1658_v42  ;;  %v1335_v59 = vpack.c.bf16 %v1268_v54, %v1264_v39  ;;  %v1427_v60 = vmul.f32 %v1268_v54, %v1268_v54  ;;  %v1499_v62 = vadd.f32 %v1426_v50, %v1425_v43  ;;  %v1563_v63 = vadd.f32 %v1531_v47, %v1467_v51 }
 0x23d   : > { %1355 = vst [vmem:[%s4735_s11 + $0x30] sm:$0xff] %v1319_v52  ;;  %v1320_v0 = vpack.c.bf16 %v1190_v55, %v1186_v40  ;;  %v1396_v1 = vmul.f32 %v1190_v55, %v1190_v55  ;;  %1579 = vst [vmem:[#allocation2 + $0x30] sm:$0xff] %v1547_v57  ;;  %v1643_v3 = vadd.f32 %v1611_v49, %v1483_v56  ;;  %v1614_v49 = vld [vmem:[#allocation3 + $0x48] sm:$0xff] }
 0x23e   : > { %1371 = vst [vmem:[%s4735_s11 + $0xb0] sm:$0xff] %v1335_v59  ;;  %v1452_v4 = vadd.f32 %v1190_v55, %v1188_v48  ;;  %v1336_v6 = vpack.c.bf16 %v1270_v61, %v1266_v46  ;;  %v1428_v7 = vmul.f32 %v1270_v61, %v1270_v61  ;;  %1595 = vst [vmem:[#allocation2 + $0xb0] sm:$0xff] %v1563_v63  ;;  %v1518_v46 = vld [vmem:[#allocation2 + $0x48] sm:$0xff] }
 0x23f   : > { %v1659_v9 = vadd.f32 %v1627_v58, %v1499_v62  ;;  %1356 = vst [vmem:[%s4735_s11 + $0x38] sm:$0xff] %v1320_v0  ;;  %v1484_v10 = vadd.f32 %v1396_v1, %v1395_v53  ;;  %v1468_v11 = vadd.f32 %v1270_v61, %v1268_v54  ;;  %1675 = vst [vmem:[#allocation3 + $0x30] sm:$0xff] %v1643_v3  ;;  %v1194_v15 = vpop.f32.mrb[16].mxu0  ;;  %v1274_v19 = vpop.f32.mrb[16].mxu1  ;;  %v1534_v52 = vld [vmem:[#allocation2 + $0xc8] sm:$0xff]  ;;  %v1519_v1 = vld [vmem:[#allocation2 + $0x50] sm:$0xff] }
 0x240   : > { %v1548_v13 = vadd.f32 %v1516_v2, %v1452_v4  ;;  %1372 = vst [vmem:[%s4735_s11 + $0xb8] sm:$0xff] %v1336_v6  ;;  %v1500_v14 = vadd.f32 %v1428_v7, %v1427_v60  ;;  %v1397_v18 = vmul.f32 %v1194_v15, %v1194_v15  ;;  %v1196_v20 = vpop.f32.mrb[17].mxu0  ;;  %v1429_v23 = vmul.f32 %v1274_v19, %v1274_v19  ;;  %v1276_v26 = vpop.f32.mrb[17].mxu1  ;;  %v1630_v56 = vld [vmem:[#allocation3 + $0xc8] sm:$0xff]  ;;  %v1535_v7 = vld [vmem:[#allocation2 + $0xd0] sm:$0xff] }
 0x241   : > { %1691 = vst [vmem:[#allocation3 + $0xb0] sm:$0xff] %v1659_v9  ;;  %v1644_v16 = vadd.f32 %v1612_v5, %v1484_v10  ;;  %v1564_v17 = vadd.f32 %v1532_v8, %v1468_v11  ;;  %v1398_v24 = vmul.f32 %v1196_v20, %v1196_v20  ;;  %v1453_v25 = vadd.f32 %v1196_v20, %v1194_v15  ;;  %v1198_v28 = vpop.f32.mrb[18].mxu0  ;;  %v1278_v34 = vpop.f32.mrb[18].mxu1  ;;  %v1615_v9 = vld [vmem:[#allocation3 + $0x50] sm:$0xff] }
 0x242   : > { %1580 = vst [vmem:[#allocation2 + $0x38] sm:$0xff] %v1548_v13  ;;  %v1660_v22 = vadd.f32 %v1628_v12, %v1500_v14  ;;  %v1430_v30 = vmul.f32 %v1276_v26, %v1276_v26  ;;  %v1469_v31 = vadd.f32 %v1276_v26, %v1274_v19  ;;  %v1321_v32 = vpack.c.bf16 %v1198_v28, %v1194_v15  ;;  %v1200_v35 = vpop.f32.mrb[19].mxu0  ;;  %v1280_v41 = vpop.f32.mrb[19].mxu1 }
 0x243   : > { %1676 = vst [vmem:[#allocation3 + $0x38] sm:$0xff] %v1644_v16  ;;  %1596 = vst [vmem:[#allocation2 + $0xb8] sm:$0xff] %v1564_v17  ;;  %v1399_v33 = vmul.f32 %v1198_v28, %v1198_v28  ;;  %v1485_v36 = vadd.f32 %v1398_v24, %v1397_v18  ;;  %v1549_v37 = vadd.f32 %v1517_v21, %v1453_v25  ;;  %v1631_v18 = vld [vmem:[#allocation3 + $0xd0] sm:$0xff] }
 0x244   : > { %1692 = vst [vmem:[#allocation3 + $0xb8] sm:$0xff] %v1660_v22  ;;  %v1337_v39 = vpack.c.bf16 %v1278_v34, %v1274_v19  ;;  %v1431_v40 = vmul.f32 %v1278_v34, %v1278_v34  ;;  %v1501_v42 = vadd.f32 %v1430_v30, %v1429_v23  ;;  %v1565_v43 = vadd.f32 %v1533_v27, %v1469_v31 }
 0x245   : > { %1357 = vst [vmem:[%s4735_s11 + $0x40] sm:$0xff] %v1321_v32  ;;  %v1322_v44 = vpack.c.bf16 %v1200_v35, %v1196_v20  ;;  %v1400_v45 = vmul.f32 %v1200_v35, %v1200_v35  ;;  %1581 = vst [vmem:[#allocation2 + $0x40] sm:$0xff] %v1549_v37  ;;  %v1645_v47 = vadd.f32 %v1613_v29, %v1485_v36  ;;  %v1616_v29 = vld [vmem:[#allocation3 + $0x58] sm:$0xff] }
 0x246   : > { %1373 = vst [vmem:[%s4735_s11 + $0xc0] sm:$0xff] %v1337_v39  ;;  %v1454_v48 = vadd.f32 %v1200_v35, %v1198_v28  ;;  %v1338_v50 = vpack.c.bf16 %v1280_v41, %v1276_v26  ;;  %v1432_v51 = vmul.f32 %v1280_v41, %v1280_v41  ;;  %1597 = vst [vmem:[#allocation2 + $0xc0] sm:$0xff] %v1565_v43  ;;  %v1520_v26 = vld [vmem:[#allocation2 + $0x58] sm:$0xff] }
 0x247   : > { %v1661_v53 = vadd.f32 %v1629_v38, %v1501_v42  ;;  %1358 = vst [vmem:[%s4735_s11 + $0x48] sm:$0xff] %v1322_v44  ;;  %v1486_v54 = vadd.f32 %v1400_v45, %v1399_v33  ;;  %v1470_v55 = vadd.f32 %v1280_v41, %v1278_v34  ;;  %1677 = vst [vmem:[#allocation3 + $0x40] sm:$0xff] %v1645_v47  ;;  %v1204_v59 = vpop.f32.mrb[20].mxu0  ;;  %v1284_v63 = vpop.f32.mrb[20].mxu1  ;;  %v1536_v32 = vld [vmem:[#allocation2 + $0xd8] sm:$0xff]  ;;  %v1521_v45 = vld [vmem:[#allocation2 + $0x60] sm:$0xff] }
 0x248   : > { %v1550_v57 = vadd.f32 %v1518_v46, %v1454_v48  ;;  %1374 = vst [vmem:[%s4735_s11 + $0xc8] sm:$0xff] %v1338_v50  ;;  %v1502_v58 = vadd.f32 %v1432_v51, %v1431_v40  ;;  %v1401_v62 = vmul.f32 %v1204_v59, %v1204_v59  ;;  %v1206_v0 = vpop.f32.mrb[21].mxu0  ;;  %v1433_v3 = vmul.f32 %v1284_v63, %v1284_v63  ;;  %v1286_v6 = vpop.f32.mrb[21].mxu1  ;;  %v1632_v36 = vld [vmem:[#allocation3 + $0xd8] sm:$0xff]  ;;  %v1537_v51 = vld [vmem:[#allocation2 + $0xe0] sm:$0xff] }
 0x249   : > { %1693 = vst [vmem:[#allocation3 + $0xc0] sm:$0xff] %v1661_v53  ;;  %v1646_v60 = vadd.f32 %v1614_v49, %v1486_v54  ;;  %v1566_v61 = vadd.f32 %v1534_v52, %v1470_v55  ;;  %v1402_v4 = vmul.f32 %v1206_v0, %v1206_v0  ;;  %v1455_v5 = vadd.f32 %v1206_v0, %v1204_v59  ;;  %v1208_v8 = vpop.f32.mrb[22].mxu0  ;;  %v1288_v14 = vpop.f32.mrb[22].mxu1  ;;  %v1617_v53 = vld [vmem:[#allocation3 + $0x60] sm:$0xff] }
 0x24a   : > { %1582 = vst [vmem:[#allocation2 + $0x48] sm:$0xff] %v1550_v57  ;;  %v1662_v2 = vadd.f32 %v1630_v56, %v1502_v58  ;;  %v1434_v10 = vmul.f32 %v1286_v6, %v1286_v6  ;;  %v1471_v11 = vadd.f32 %v1286_v6, %v1284_v63  ;;  %v1323_v12 = vpack.c.bf16 %v1208_v8, %v1204_v59  ;;  %v1210_v15 = vpop.f32.mrb[23].mxu0  ;;  %v1290_v21 = vpop.f32.mrb[23].mxu1 }
 0x24b   : > { %1678 = vst [vmem:[#allocation3 + $0x48] sm:$0xff] %v1646_v60  ;;  %1598 = vst [vmem:[#allocation2 + $0xc8] sm:$0xff] %v1566_v61  ;;  %v1403_v13 = vmul.f32 %v1208_v8, %v1208_v8  ;;  %v1487_v16 = vadd.f32 %v1402_v4, %v1401_v62  ;;  %v1551_v17 = vadd.f32 %v1519_v1, %v1455_v5  ;;  %v1633_v62 = vld [vmem:[#allocation3 + $0xe0] sm:$0xff] }
 0x24c   : > { %1694 = vst [vmem:[#allocation3 + $0xc8] sm:$0xff] %v1662_v2  ;;  %v1339_v19 = vpack.c.bf16 %v1288_v14, %v1284_v63  ;;  %v1435_v20 = vmul.f32 %v1288_v14, %v1288_v14  ;;  %v1503_v22 = vadd.f32 %v1434_v10, %v1433_v3  ;;  %v1567_v23 = vadd.f32 %v1535_v7, %v1471_v11 }
 0x24d   : > { %1359 = vst [vmem:[%s4735_s11 + $0x50] sm:$0xff] %v1323_v12  ;;  %v1324_v24 = vpack.c.bf16 %v1210_v15, %v1206_v0  ;;  %v1404_v25 = vmul.f32 %v1210_v15, %v1210_v15  ;;  %1583 = vst [vmem:[#allocation2 + $0x50] sm:$0xff] %v1551_v17  ;;  %v1647_v27 = vadd.f32 %v1615_v9, %v1487_v16  ;;  %v1618_v9 = vld [vmem:[#allocation3 + $0x68] sm:$0xff] }
 0x24e   : > { %1375 = vst [vmem:[%s4735_s11 + $0xd0] sm:$0xff] %v1339_v19  ;;  %v1456_v28 = vadd.f32 %v1210_v15, %v1208_v8  ;;  %v1340_v30 = vpack.c.bf16 %v1290_v21, %v1286_v6  ;;  %v1436_v31 = vmul.f32 %v1290_v21, %v1290_v21  ;;  %1599 = vst [vmem:[#allocation2 + $0xd0] sm:$0xff] %v1567_v23  ;;  %v1522_v6 = vld [vmem:[#allocation2 + $0x68] sm:$0xff] }
 0x24f   : > { %v1663_v33 = vadd.f32 %v1631_v18, %v1503_v22  ;;  %1360 = vst [vmem:[%s4735_s11 + $0x58] sm:$0xff] %v1324_v24  ;;  %v1488_v34 = vadd.f32 %v1404_v25, %v1403_v13  ;;  %v1472_v35 = vadd.f32 %v1290_v21, %v1288_v14  ;;  %1679 = vst [vmem:[#allocation3 + $0x50] sm:$0xff] %v1647_v27  ;;  %v1214_v39 = vpop.f32.mrb[24].mxu0  ;;  %v1294_v43 = vpop.f32.mrb[24].mxu1  ;;  %v1538_v12 = vld [vmem:[#allocation2 + $0xe8] sm:$0xff]  ;;  %v1523_v25 = vld [vmem:[#allocation2 + $0x70] sm:$0xff] }
 0x250   : > { %v1552_v37 = vadd.f32 %v1520_v26, %v1456_v28  ;;  %1376 = vst [vmem:[%s4735_s11 + $0xd8] sm:$0xff] %v1340_v30  ;;  %v1504_v38 = vadd.f32 %v1436_v31, %v1435_v20  ;;  %v1405_v42 = vmul.f32 %v1214_v39, %v1214_v39  ;;  %v1216_v44 = vpop.f32.mrb[25].mxu0  ;;  %v1437_v47 = vmul.f32 %v1294_v43, %v1294_v43  ;;  %v1296_v50 = vpop.f32.mrb[25].mxu1  ;;  %v1634_v16 = vld [vmem:[#allocation3 + $0xe8] sm:$0xff]  ;;  %v1539_v31 = vld [vmem:[#allocation2 + $0xf0] sm:$0xff] }
 0x251   : > { %1695 = vst [vmem:[#allocation3 + $0xd0] sm:$0xff] %v1663_v33  ;;  %v1648_v40 = vadd.f32 %v1616_v29, %v1488_v34  ;;  %v1568_v41 = vadd.f32 %v1536_v32, %v1472_v35  ;;  %v1406_v48 = vmul.f32 %v1216_v44, %v1216_v44  ;;  %v1457_v49 = vadd.f32 %v1216_v44, %v1214_v39  ;;  %v1218_v52 = vpop.f32.mrb[26].mxu0  ;;  %v1298_v58 = vpop.f32.mrb[26].mxu1  ;;  %v1619_v33 = vld [vmem:[#allocation3 + $0x70] sm:$0xff] }
 0x252   : > { %1584 = vst [vmem:[#allocation2 + $0x58] sm:$0xff] %v1552_v37  ;;  %v1664_v46 = vadd.f32 %v1632_v36, %v1504_v38  ;;  %v1438_v54 = vmul.f32 %v1296_v50, %v1296_v50  ;;  %v1473_v55 = vadd.f32 %v1296_v50, %v1294_v43  ;;  %v1325_v56 = vpack.c.bf16 %v1218_v52, %v1214_v39  ;;  %v1220_v59 = vpop.f32.mrb[27].mxu0  ;;  %v1300_v1 = vpop.f32.mrb[27].mxu1 }
 0x253   : > { %1680 = vst [vmem:[#allocation3 + $0x58] sm:$0xff] %v1648_v40  ;;  %1600 = vst [vmem:[#allocation2 + $0xd8] sm:$0xff] %v1568_v41  ;;  %v1407_v57 = vmul.f32 %v1218_v52, %v1218_v52  ;;  %v1489_v60 = vadd.f32 %v1406_v48, %v1405_v42  ;;  %v1553_v61 = vadd.f32 %v1521_v45, %v1457_v49  ;;  %v1635_v42 = vld [vmem:[#allocation3 + $0xf0] sm:$0xff] }
 0x254   : > { %1696 = vst [vmem:[#allocation3 + $0xd8] sm:$0xff] %v1664_v46  ;;  %v1341_v63 = vpack.c.bf16 %v1298_v58, %v1294_v43  ;;  %v1439_v0 = vmul.f32 %v1298_v58, %v1298_v58  ;;  %v1505_v2 = vadd.f32 %v1438_v54, %v1437_v47  ;;  %v1569_v3 = vadd.f32 %v1537_v51, %v1473_v55 }
 0x255   : > { %1361 = vst [vmem:[%s4735_s11 + $0x60] sm:$0xff] %v1325_v56  ;;  %v1326_v4 = vpack.c.bf16 %v1220_v59, %v1216_v44  ;;  %v1408_v5 = vmul.f32 %v1220_v59, %v1220_v59  ;;  %1585 = vst [vmem:[#allocation2 + $0x60] sm:$0xff] %v1553_v61  ;;  %v1649_v7 = vadd.f32 %v1617_v53, %v1489_v60  ;;  %v1620_v53 = vld [vmem:[#allocation3 + $0x78] sm:$0xff] }
 0x256   : > { %1377 = vst [vmem:[%s4735_s11 + $0xe0] sm:$0xff] %v1341_v63  ;;  %v1458_v8 = vadd.f32 %v1220_v59, %v1218_v52  ;;  %v1342_v10 = vpack.c.bf16 %v1300_v1, %v1296_v50  ;;  %v1440_v11 = vmul.f32 %v1300_v1, %v1300_v1  ;;  %1601 = vst [vmem:[#allocation2 + $0xe0] sm:$0xff] %v1569_v3  ;;  %v1524_v50 = vld [vmem:[#allocation2 + $0x78] sm:$0xff] }
 0x257   : > { %v1665_v13 = vadd.f32 %v1633_v62, %v1505_v2  ;;  %1362 = vst [vmem:[%s4735_s11 + $0x68] sm:$0xff] %v1326_v4  ;;  %v1490_v14 = vadd.f32 %v1408_v5, %v1407_v57  ;;  %v1474_v15 = vadd.f32 %v1300_v1, %v1298_v58  ;;  %1681 = vst [vmem:[#allocation3 + $0x60] sm:$0xff] %v1649_v7  ;;  %v1224_v19 = vpop.f32.mrb[28].mxu0  ;;  %v1304_v23 = vpop.f32.mrb[28].mxu1  ;;  %v1540_v56 = vld [vmem:[#allocation2 + $0xf8] sm:$0xff] }
 0x258   : > { %v1554_v17 = vadd.f32 %v1522_v6, %v1458_v8  ;;  %1378 = vst [vmem:[%s4735_s11 + $0xe8] sm:$0xff] %v1342_v10  ;;  %v1506_v18 = vadd.f32 %v1440_v11, %v1439_v0  ;;  %v1409_v22 = vmul.f32 %v1224_v19, %v1224_v19  ;;  %v1226_v24 = vpop.f32.mrb[29].mxu0  ;;  %v1441_v27 = vmul.f32 %v1304_v23, %v1304_v23  ;;  %v1306_v30 = vpop.f32.mrb[29].mxu1  ;;  %v1636_v60 = vld [vmem:[#allocation3 + $0xf8] sm:$0xff] }
 0x259   : > { %1697 = vst [vmem:[#allocation3 + $0xe0] sm:$0xff] %v1665_v13  ;;  %v1650_v20 = vadd.f32 %v1618_v9, %v1490_v14  ;;  %v1570_v21 = vadd.f32 %v1538_v12, %v1474_v15  ;;  %v1410_v28 = vmul.f32 %v1226_v24, %v1226_v24  ;;  %v1459_v29 = vadd.f32 %v1226_v24, %v1224_v19  ;;  %v1228_v32 = vpop.f32.mrb[30].mxu0  ;;  %v1308_v38 = vpop.f32.mrb[30].mxu1 }
 0x25a   : > { %1586 = vst [vmem:[#allocation2 + $0x68] sm:$0xff] %v1554_v17  ;;  %v1666_v26 = vadd.f32 %v1634_v16, %v1506_v18  ;;  %v1442_v34 = vmul.f32 %v1306_v30, %v1306_v30  ;;  %v1475_v35 = vadd.f32 %v1306_v30, %v1304_v23  ;;  %v1327_v36 = vpack.c.bf16 %v1228_v32, %v1224_v19  ;;  %v1230_v39 = vpop.f32.mrb[31].mxu0  ;;  %v1310_v45 = vpop.f32.mrb[31].mxu1 }
 0x25b   : > { %1682 = vst [vmem:[#allocation3 + $0x68] sm:$0xff] %v1650_v20  ;;  %1602 = vst [vmem:[#allocation2 + $0xe8] sm:$0xff] %v1570_v21  ;;  %v1411_v37 = vmul.f32 %v1228_v32, %v1228_v32  ;;  %v1491_v40 = vadd.f32 %v1410_v28, %v1409_v22  ;;  %v1555_v41 = vadd.f32 %v1523_v25, %v1459_v29 }
 0x25c   : > { %1698 = vst [vmem:[#allocation3 + $0xe8] sm:$0xff] %v1666_v26  ;;  %v1343_v43 = vpack.c.bf16 %v1308_v38, %v1304_v23  ;;  %v1443_v44 = vmul.f32 %v1308_v38, %v1308_v38  ;;  %v1507_v46 = vadd.f32 %v1442_v34, %v1441_v27  ;;  %v1571_v47 = vadd.f32 %v1539_v31, %v1475_v35 }
 0x25d   : > { %1363 = vst [vmem:[%s4735_s11 + $0x70] sm:$0xff] %v1327_v36  ;;  %v1328_v48 = vpack.c.bf16 %v1230_v39, %v1226_v24  ;;  %v1412_v49 = vmul.f32 %v1230_v39, %v1230_v39  ;;  %1587 = vst [vmem:[#allocation2 + $0x70] sm:$0xff] %v1555_v41  ;;  %v1651_v51 = vadd.f32 %v1619_v33, %v1491_v40 }
 0x25e   : > { %1379 = vst [vmem:[%s4735_s11 + $0xf0] sm:$0xff] %v1343_v43  ;;  %v1460_v52 = vadd.f32 %v1230_v39, %v1228_v32  ;;  %v1344_v54 = vpack.c.bf16 %v1310_v45, %v1306_v30  ;;  %v1444_v55 = vmul.f32 %v1310_v45, %v1310_v45  ;;  %1603 = vst [vmem:[#allocation2 + $0xf0] sm:$0xff] %v1571_v47 }
 0x25f   : > { %v1667_v57 = vadd.f32 %v1635_v42, %v1507_v46  ;;  %1364 = vst [vmem:[%s4735_s11 + $0x78] sm:$0xff] %v1328_v48  ;;  %v1492_v58 = vadd.f32 %v1412_v49, %v1411_v37  ;;  %v1476_v59 = vadd.f32 %v1310_v45, %v1308_v38  ;;  %1683 = vst [vmem:[#allocation3 + $0x70] sm:$0xff] %v1651_v51 }
 0x260   : > { %v1556_v61 = vadd.f32 %v1524_v50, %v1460_v52  ;;  %1380 = vst [vmem:[%s4735_s11 + $0xf8] sm:$0xff] %v1344_v54  ;;  %v1508_v62 = vadd.f32 %v1444_v55, %v1443_v44 }
 0x261   : > { %1699 = vst [vmem:[#allocation3 + $0xf0] sm:$0xff] %v1667_v57  ;;  %v1652_v63 = vadd.f32 %v1620_v53, %v1492_v58  ;;  %v1572_v0 = vadd.f32 %v1540_v56, %v1476_v59 }
 0x262   : > { %1588 = vst [vmem:[#allocation2 + $0x78] sm:$0xff] %v1556_v61  ;;  %v1668_v1 = vadd.f32 %v1636_v60, %v1508_v62 }
 0x263   : > { %1684 = vst [vmem:[#allocation3 + $0x78] sm:$0xff] %v1652_v63  ;;  %1604 = vst [vmem:[#allocation2 + $0xf8] sm:$0xff] %v1572_v0 }
 0x264   : > { %1700 = vst [vmem:[#allocation3 + $0xf8] sm:$0xff] %v1668_v1 }
 0x265 PF: > { %p3850_p1 = scmp.ne.s32.totalorder %s4372_s28, 1 }
 0x266   : > { %p1705_p3 = scmp.eq.s32.totalorder (!%p3850_p1), %s4368_s27, 0 }
 0x267   : > { %1704 = sbr.rel (%p3850_p1) target bundleno = 1459 (0x5b3), region = 68 }
 0x26e   : > { %1710 = sbr.rel (!%p1705_p3) target bundleno = 921 (0x399), region = 72 }
 0x275   : > { %v1713_v2 = vld [vmem:[#allocation2 + $0x10] sm:$0xff]  ;;  %v1711_v3 = vld [vmem:[#allocation2] sm:$0xff]  ;;  %v1714_v4 = vld [vmem:[#allocation2 + $0x18] sm:$0xff]  ;;  %vm2159_vm0 = vcmask 7168  }
 0x276   : > { %1747 = vadd.xlane.f32.xlu1 %v1713_v2  ;;  %1743 = vadd.xlane.f32.xlu0 %v1711_v3  ;;  %v1712_v5 = vld [vmem:[#allocation2 + $0x8] sm:$0xff]  ;;  %v1715_v7 = vld [vmem:[#allocation2 + $0x20] sm:$0xff]  ;;  %v1718_v8 = vld [vmem:[#allocation2 + $0x38] sm:$0xff] }
 0x277   : > { %v1716_v6 = vld [vmem:[#allocation2 + $0x28] sm:$0xff]  ;;  %v1717_v9 = vld [vmem:[#allocation2 + $0x30] sm:$0xff]  ;;  %v1719_v11 = vld [vmem:[#allocation2 + $0x40] sm:$0xff] }
 0x278   : > { %v1720_v10 = vld [vmem:[#allocation2 + $0x48] sm:$0xff]  ;;  %v1722_v12 = vld [vmem:[#allocation2 + $0x58] sm:$0xff]  ;;  %v1721_v13 = vld [vmem:[#allocation2 + $0x50] sm:$0xff] }
 0x279   : > { %v1724_v14 = vld [vmem:[#allocation2 + $0x68] sm:$0xff]  ;;  %v1723_v15 = vld [vmem:[#allocation2 + $0x60] sm:$0xff]  ;;  %v1726_v16 = vld [vmem:[#allocation2 + $0x78] sm:$0xff] }
 0x27a   : > { %1749 = vadd.xlane.f32.xlu1 %v1714_v4  ;;  %1745 = vadd.xlane.f32.xlu0 %v1712_v5  ;;  %v1725_v17 = vld [vmem:[#allocation2 + $0x70] sm:$0xff]  ;;  %v1728_v18 = vld [vmem:[#allocation2 + $0x88] sm:$0xff]  ;;  %v1727_v19 = vld [vmem:[#allocation2 + $0x80] sm:$0xff] }
 0x27b   : > { %v1730_v20 = vld [vmem:[#allocation2 + $0x98] sm:$0xff]  ;;  %v1729_v21 = vld [vmem:[#allocation2 + $0x90] sm:$0xff]  ;;  %v1732_v22 = vld [vmem:[#allocation2 + $0xa8] sm:$0xff] }
 0x27c   : > { %v1731_v23 = vld [vmem:[#allocation2 + $0xa0] sm:$0xff]  ;;  %v1734_v24 = vld [vmem:[#allocation2 + $0xb8] sm:$0xff]  ;;  %v1733_v25 = vld [vmem:[#allocation2 + $0xb0] sm:$0xff] }
 0x27d   : > { %v1736_v26 = vld [vmem:[#allocation2 + $0xc8] sm:$0xff]  ;;  %v1735_v27 = vld [vmem:[#allocation2 + $0xc0] sm:$0xff]  ;;  %v1738_v28 = vld [vmem:[#allocation2 + $0xd8] sm:$0xff] }
 0x27e   : > { %1753 = vadd.xlane.f32.xlu1 %v1716_v6  ;;  %1751 = vadd.xlane.f32.xlu0 %v1715_v7  ;;  %v1737_v29 = vld [vmem:[#allocation2 + $0xd0] sm:$0xff]  ;;  %v1740_v30 = vld [vmem:[#allocation2 + $0xe8] sm:$0xff]  ;;  %v1739_v31 = vld [vmem:[#allocation2 + $0xe0] sm:$0xff] }
 0x27f   : > { %v1742_v32 = vld [vmem:[#allocation2 + $0xf8] sm:$0xff]  ;;  %v1741_v33 = vld [vmem:[#allocation2 + $0xf0] sm:$0xff]  ;;  %v1808_v34 = vld [vmem:[#allocation3 + $0x8] sm:$0xff] }
 0x280   : > { %v1807_v35 = vld [vmem:[#allocation3] sm:$0xff]  ;;  %v1810_v36 = vld [vmem:[#allocation3 + $0x18] sm:$0xff]  ;;  %v1809_v37 = vld [vmem:[#allocation3 + $0x10] sm:$0xff] }
 0x281   : > { %v1812_v38 = vld [vmem:[#allocation3 + $0x28] sm:$0xff]  ;;  %v1811_v39 = vld [vmem:[#allocation3 + $0x20] sm:$0xff]  ;;  %v1814_v40 = vld [vmem:[#allocation3 + $0x38] sm:$0xff] }
 0x282   : > { %1757 = vadd.xlane.f32.xlu1 %v1718_v8  ;;  %1755 = vadd.xlane.f32.xlu0 %v1717_v9  ;;  %v1813_v41 = vld [vmem:[#allocation3 + $0x30] sm:$0xff]  ;;  %v1816_v42 = vld [vmem:[#allocation3 + $0x48] sm:$0xff]  ;;  %v1815_v43 = vld [vmem:[#allocation3 + $0x40] sm:$0xff] }
 0x283   : > { %v1818_v44 = vld [vmem:[#allocation3 + $0x58] sm:$0xff]  ;;  %v1817_v45 = vld [vmem:[#allocation3 + $0x50] sm:$0xff]  ;;  %v1820_v46 = vld [vmem:[#allocation3 + $0x68] sm:$0xff] }
 0x284   : > { %v1819_v47 = vld [vmem:[#allocation3 + $0x60] sm:$0xff]  ;;  %v1822_v48 = vld [vmem:[#allocation3 + $0x78] sm:$0xff]  ;;  %v1821_v49 = vld [vmem:[#allocation3 + $0x70] sm:$0xff] }
 0x285   : > { %v1824_v50 = vld [vmem:[#allocation3 + $0x88] sm:$0xff]  ;;  %v1823_v51 = vld [vmem:[#allocation3 + $0x80] sm:$0xff]  ;;  %v1826_v52 = vld [vmem:[#allocation3 + $0x98] sm:$0xff] }
 0x286   : > { %1761 = vadd.xlane.f32.xlu1 %v1720_v10  ;;  %1759 = vadd.xlane.f32.xlu0 %v1719_v11  ;;  %v1825_v53 = vld [vmem:[#allocation3 + $0x90] sm:$0xff]  ;;  %v1828_v54 = vld [vmem:[#allocation3 + $0xa8] sm:$0xff]  ;;  %v1827_v55 = vld [vmem:[#allocation3 + $0xa0] sm:$0xff] }
 0x287   : > { %v1830_v56 = vld [vmem:[#allocation3 + $0xb8] sm:$0xff]  ;;  %v1829_v57 = vld [vmem:[#allocation3 + $0xb0] sm:$0xff]  ;;  %v1832_v58 = vld [vmem:[#allocation3 + $0xc8] sm:$0xff] }
 0x288   : > { %v1831_v59 = vld [vmem:[#allocation3 + $0xc0] sm:$0xff]  ;;  %v1834_v60 = vld [vmem:[#allocation3 + $0xd8] sm:$0xff]  ;;  %v1833_v61 = vld [vmem:[#allocation3 + $0xd0] sm:$0xff] }
 0x289   : > { %v1836_v62 = vld [vmem:[#allocation3 + $0xe8] sm:$0xff]  ;;  %v1835_v63 = vld [vmem:[#allocation3 + $0xe0] sm:$0xff]  ;;  %v1838_v0 = vld [vmem:[#allocation3 + $0xf8] sm:$0xff] }
 0x28a   : > { %1765 = vadd.xlane.f32.xlu1 %v1722_v12  ;;  %1763 = vadd.xlane.f32.xlu0 %v1721_v13  ;;  %v1837_v1 = vld [vmem:[#allocation3 + $0xf0] sm:$0xff] }
 0x28e   : > { %1769 = vadd.xlane.f32.xlu1 %v1724_v14  ;;  %1767 = vadd.xlane.f32.xlu0 %v1723_v15 }
 0x292   : > { %1773 = vadd.xlane.f32.xlu1 %v1726_v16  ;;  %1771 = vadd.xlane.f32.xlu0 %v1725_v17 }
 0x296   : > { %1777 = vadd.xlane.f32.xlu1 %v1728_v18  ;;  %1775 = vadd.xlane.f32.xlu0 %v1727_v19 }
 0x29a   : > { %1781 = vadd.xlane.f32.xlu1 %v1730_v20  ;;  %1779 = vadd.xlane.f32.xlu0 %v1729_v21 }
 0x29e   : > { %1785 = vadd.xlane.f32.xlu1 %v1732_v22  ;;  %1783 = vadd.xlane.f32.xlu0 %v1731_v23 }
 0x2a2   : > { %1789 = vadd.xlane.f32.xlu1 %v1734_v24  ;;  %1787 = vadd.xlane.f32.xlu0 %v1733_v25 }
 0x2a6   : > { %1793 = vadd.xlane.f32.xlu1 %v1736_v26  ;;  %1791 = vadd.xlane.f32.xlu0 %v1735_v27 }
 0x2aa   : > { %1797 = vadd.xlane.f32.xlu1 %v1738_v28  ;;  %1795 = vadd.xlane.f32.xlu0 %v1737_v29 }
 0x2ae   : > { %1801 = vadd.xlane.f32.xlu1 %v1740_v30  ;;  %1799 = vadd.xlane.f32.xlu0 %v1739_v31 }
 0x2b2   : > { %1805 = vadd.xlane.f32.xlu1 %v1742_v32  ;;  %1803 = vadd.xlane.f32.xlu0 %v1741_v33 }
 0x2b6   : > { %1841 = vadd.xlane.f32.xlu1 %v1808_v34  ;;  %1839 = vadd.xlane.f32.xlu0 %v1807_v35 }
 0x2ba   : > { %1845 = vadd.xlane.f32.xlu1 %v1810_v36  ;;  %1843 = vadd.xlane.f32.xlu0 %v1809_v37 }
 0x2be   : > { %1849 = vadd.xlane.f32.xlu1 %v1812_v38  ;;  %1847 = vadd.xlane.f32.xlu0 %v1811_v39 }
 0x2c2   : > { %1853 = vadd.xlane.f32.xlu1 %v1814_v40  ;;  %1851 = vadd.xlane.f32.xlu0 %v1813_v41 }
 0x2c6   : > { %1857 = vadd.xlane.f32.xlu1 %v1816_v42  ;;  %1855 = vadd.xlane.f32.xlu0 %v1815_v43 }
 0x2ca   : > { %1861 = vadd.xlane.f32.xlu1 %v1818_v44  ;;  %1859 = vadd.xlane.f32.xlu0 %v1817_v45 }
 0x2ce   : > { %1865 = vadd.xlane.f32.xlu1 %v1820_v46  ;;  %1863 = vadd.xlane.f32.xlu0 %v1819_v47 }
 0x2d2   : > { %1869 = vadd.xlane.f32.xlu1 %v1822_v48  ;;  %1867 = vadd.xlane.f32.xlu0 %v1821_v49 }
 0x2d6   : > { %1873 = vadd.xlane.f32.xlu1 %v1824_v50  ;;  %1871 = vadd.xlane.f32.xlu0 %v1823_v51 }
 0x2da   : > { %1877 = vadd.xlane.f32.xlu1 %v1826_v52  ;;  %1875 = vadd.xlane.f32.xlu0 %v1825_v53 }
 0x2de   : > { %1881 = vadd.xlane.f32.xlu1 %v1828_v54  ;;  %1879 = vadd.xlane.f32.xlu0 %v1827_v55 }
 0x2e2   : > { %1885 = vadd.xlane.f32.xlu1 %v1830_v56  ;;  %1883 = vadd.xlane.f32.xlu0 %v1829_v57 }
 0x2e6   : > { %1889 = vadd.xlane.f32.xlu1 %v1832_v58  ;;  %1887 = vadd.xlane.f32.xlu0 %v1831_v59 }
 0x2ea   : > { %1893 = vadd.xlane.f32.xlu1 %v1834_v60  ;;  %1891 = vadd.xlane.f32.xlu0 %v1833_v61 }
 0x2ee   : > { %1897 = vadd.xlane.f32.xlu1 %v1836_v62  ;;  %1895 = vadd.xlane.f32.xlu0 %v1835_v63 }
 0x2f2   : > { %1901 = vadd.xlane.f32.xlu1 %v1838_v0  ;;  %1899 = vadd.xlane.f32.xlu0 %v1837_v1 }
 0x303   : > { %v1748_v2 = vpop.xlane.xlu1 %1747  ;;  %v1744_v3 = vpop.xlane.xlu0 %1743 }
 0x304   : > { %v4809_v34 = vmul.f32 0.001953125, %v1744_v3  ;;  %v4813_v36 = vmul.f32 0.001953125, %v1748_v2 }
 0x306   : > { %v1967_v41 = vmul.f32 %v4809_v34, %v4809_v34  ;;  %v1969_v50 = vmul.f32 %v4813_v36, %v4813_v36 }
 0x307   : > { %v1750_v4 = vpop.xlane.xlu1 %1749  ;;  %v1746_v5 = vpop.xlane.xlu0 %1745 }
 0x308   : > { %v4811_v35 = vmul.f32 0.001953125, %v1746_v5  ;;  %v4815_v37 = vmul.f32 0.001953125, %v1750_v4 }
 0x30a   : > { %v1968_v42 = vmul.f32 %v4811_v35, %v4811_v35  ;;  %v1970_v51 = vmul.f32 %v4815_v37, %v4815_v37 }
 0x30b   : > { %v1754_v6 = vpop.xlane.xlu1 %1753  ;;  %v1752_v7 = vpop.xlane.xlu0 %1751 }
 0x30c   : > { %v4817_v38 = vmul.f32 0.001953125, %v1754_v6  ;;  %v4823_v45 = vmul.f32 0.001953125, %v1752_v7 }
 0x30e   : > { %v1972_v52 = vmul.f32 %v4817_v38, %v4817_v38  ;;  %v1971_v60 = vmul.f32 %v4823_v45, %v4823_v45 }
 0x30f   : > { %v1758_v8 = vpop.xlane.xlu1 %1757  ;;  %v1756_v9 = vpop.xlane.xlu0 %1755 }
 0x310   : > { %v4825_v46 = vmul.f32 0.001953125, %v1758_v8  ;;  %v4827_v47 = vmul.f32 0.001953125, %v1756_v9 }
 0x312   : > { %v1974_v61 = vmul.f32 %v4825_v46, %v4825_v46  ;;  %v1973_v0 = vmul.f32 %v4827_v47, %v4827_v47 }
 0x313   : > { %v1762_v10 = vpop.xlane.xlu1 %1761  ;;  %v1760_v11 = vpop.xlane.xlu0 %1759 }
 0x314   : > { %v4835_v53 = vmul.f32 0.001953125, %v1762_v10  ;;  %v4841_v62 = vmul.f32 0.001953125, %v1760_v11 }
 0x316   : > { %v4849_v3 = vmul.f32 %v4835_v53, %v4835_v53 }
 0x317   : > { %v1766_v12 = vpop.xlane.xlu1 %1765  ;;  %v1764_v13 = vpop.xlane.xlu0 %1763 }
 0x318   : > { %v4843_v63 = vmul.f32 0.001953125, %v1766_v12  ;;  %v4851_v4 = vmul.f32 0.001953125, %v1764_v13  ;;  %v4857_v12 = vmul.f32 %v4841_v62, %v4841_v62 }
 0x31b   : > { %v1770_v14 = vpop.xlane.xlu1 %1769  ;;  %v4771_v15 = vpop.xlane.xlu0 %1767 }
 0x31c   : > { %v4853_v5 = vmul.f32 0.001953125, %v1770_v14  ;;  %v4864_v13 = vmul.f32 0.001953125, %v4771_v15 }
 0x31f   : > { %v4773_v16 = vpop.xlane.xlu1 %1773  ;;  %v4775_v17 = vpop.xlane.xlu0 %1771 }
 0x320   : > { %v4867_v14 = vmul.f32 0.001953125, %v4773_v16 }
 0x323   : > { %v4777_v18 = vpop.xlane.xlu1 %1777  ;;  %v4779_v19 = vpop.xlane.xlu0 %1775 }
 0x324   : > { %v4881_v15 = vmul.f32 0.001953125, %v4777_v18 }
 0x327   : > { %v4781_v20 = vpop.xlane.xlu1 %1781  ;;  %v4783_v21 = vpop.xlane.xlu0 %1779 }
 0x328   : > { %v4895_v18 = vmul.f32 0.001953125, %v4781_v20 }
 0x32b   : > { %v4785_v22 = vpop.xlane.xlu1 %1785  ;;  %v4787_v23 = vpop.xlane.xlu0 %1783 }
 0x32c   : > { %v4912_v20 = vmul.f32 0.001953125, %v4785_v22  ;;  %v4923_v22 = vmul.f32 %v4895_v18, %v4895_v18 }
 0x32e   : > { %5533 = vst [vmem:[#allocation22_spill] sm:$0xff] %v4912_v20 }
 0x32f   : > { %v4789_v24 = vpop.xlane.xlu1 %1789  ;;  %v4791_v25 = vpop.xlane.xlu0 %1787 }
 0x333   : > { %v4793_v26 = vpop.xlane.xlu1 %1793  ;;  %v4795_v27 = vpop.xlane.xlu0 %1791 }
 0x337   : > { %v4797_v28 = vpop.xlane.xlu1 %1797  ;;  %v4799_v29 = vpop.xlane.xlu0 %1795 }
 0x33b   : > { %v4801_v30 = vpop.xlane.xlu1 %1801  ;;  %v4803_v31 = vpop.xlane.xlu0 %1799 }
 0x33f   : > { %v4805_v32 = vpop.xlane.xlu1 %1805  ;;  %v4807_v33 = vpop.xlane.xlu0 %1803 }
 0x343   : > { %v1842_v39 = vpop.xlane.xlu1 %1841  ;;  %v1840_v40 = vpop.xlane.xlu0 %1839 }
 0x344   : > { %v1936_v43 = vmul.f32 0.001953125, %v1842_v39  ;;  %v1935_v44 = vmul.f32 0.001953125, %v1840_v40  ;;  %v4861_v39 = vmul.f32 %v4843_v63, %v4843_v63  ;;  %v4870_v40 = vmul.f32 0.001953125, %v4775_v17 }
 0x346   : > { %v2000_v48 = vsub.f32 %v1936_v43, %v1968_v42  ;;  %v1999_v49 = vsub.f32 %v1935_v44, %v1967_v41  ;;  %v4874_v43 = vmul.f32 %v4851_v4, %v4851_v4  ;;  %v4878_v44 = vmul.f32 %v4853_v5, %v4853_v5 }
 0x347   : > { %v1846_v54 = vpop.xlane.xlu1 %1845  ;;  %v1844_v55 = vpop.xlane.xlu0 %1843 }
 0x348   : > { %v2064_v56 = vadd.f32 1e-05, %v2000_v48  ;;  %v2063_v57 = vadd.f32 1e-05, %v1999_v49  ;;  %v1938_v58 = vmul.f32 0.001953125, %v1846_v54  ;;  %v1937_v59 = vmul.f32 0.001953125, %v1844_v55 }
 0x349   : > { %v4889_v54 = vmul.f32 %v4867_v14, %v4867_v14  ;;  %v4892_v55 = vmul.f32 0.001953125, %v4779_v19  ;;  %v4909_v19 = vmul.f32 0.001953125, %v4783_v21 }
 0x34a   : > { %4112 = vrsqrt.f32 %v2064_v56  ;;  %v2002_v1 = vsub.f32 %v1938_v58, %v1970_v51  ;;  %v2001_v2 = vsub.f32 %v1937_v59, %v1969_v50  ;;  %v4899_v56 = vmul.f32 %v4870_v40, %v4870_v40 }
 0x34b   : > { %4114 = vrsqrt.f32 %v2063_v57  ;;  %v1850_v6 = vpop.xlane.xlu1 %1849  ;;  %v1848_v7 = vpop.xlane.xlu0 %1847  ;;  %v2032_v57 = vld [vmem:[%s5506_s5 + $0x8] sm:$0xff]  ;;  %v4919_v21 = vmul.f32 %v4892_v55, %v4892_v55 }
 0x34c   : > { %v2066_v8 = vadd.f32 1e-05, %v2002_v1  ;;  %v2065_v9 = vadd.f32 1e-05, %v2001_v2  ;;  %v1940_v10 = vmul.f32 0.001953125, %v1850_v6  ;;  %v1939_v11 = vmul.f32 0.001953125, %v1848_v7 }
 0x34d   : > { %v2031_v1 = vld [vmem:[%s5506_s5] sm:$0xff] }
 0x34e   : > { %4116 = vrsqrt.f32 %v2066_v8  ;;  %v2004_v41 = vsub.f32 %v1940_v10, %v1972_v52  ;;  %v2003_v42 = vsub.f32 %v1939_v11, %v1971_v60  ;;  %v4885_v52 = vmul.f32 %v4864_v13, %v4864_v13 }
 0x34f   : > { %4118 = vrsqrt.f32 %v2065_v9  ;;  %v1854_v16 = vpop.xlane.xlu1 %1853  ;;  %v1852_v48 = vpop.xlane.xlu0 %1851  ;;  %v4906_v60 = vmul.f32 %v4881_v15, %v4881_v15  ;;  %v4926_v11 = vmul.f32 0.001953125, %v4787_v23  ;;  %v4942_v23 = vmul.f32 %v4912_v20, %v4912_v20 }
 0x350   : > { %v2068_v49 = vadd.f32 1e-05, %v2004_v41  ;;  %v2067_v17 = vadd.f32 1e-05, %v2003_v42  ;;  %v1942_v50 = vmul.f32 0.001953125, %v1854_v16  ;;  %v1941_v51 = vmul.f32 0.001953125, %v1852_v48 }
 0x351   : > { %v2193_v42 = vld [vmem:[%s5507_s6 + $0x8] sm:$0xff]  ;;  %v2034_v48 = vld [vmem:[%s5506_s5 + $0x18] sm:$0xff] }
 0x352   : > { %4120 = vrsqrt.f32 %v2068_v49  ;;  %v2006_v58 = vsub.f32 %v1942_v50, %v1974_v61  ;;  %v2005_v59 = vsub.f32 %v1941_v51, %v1973_v0  ;;  %v4938_v50 = vmul.f32 %v4909_v19, %v4909_v19 }
 0x353   : > { %4122 = vrsqrt.f32 %v2067_v17  ;;  %v1858_v2 = vpop.xlane.xlu1 %1857  ;;  %v1856_v6 = vpop.xlane.xlu0 %1855 }
 0x354   : > { %v4113_v7 = vpop.eup %4112  ;;  %v2070_v61 = vadd.f32 1e-05, %v2006_v58  ;;  %v2069_v0 = vadd.f32 1e-05, %v2005_v59  ;;  %v1944_v8 = vmul.f32 0.001953125, %v1858_v2  ;;  %v1943_v9 = vmul.f32 0.001953125, %v1856_v6 }
 0x355   : > { %v4115_v10 = vpop.eup %4114  ;;  %v2128_v41 = vmul.f32 %v4113_v7, %v2032_v57  ;;  %v2192_v57 = vld [vmem:[%s5507_s6] sm:$0xff] }
 0x356   : > { %v2127_v16 = vmul.f32 %v4115_v10, %v2031_v1  ;;  %4124 = vrsqrt.f32 %v2070_v61  ;;  %v2008_v49 = vsub.f32 %v1944_v8, %v4849_v3  ;;  %v2007_v17 = vsub.f32 %v1943_v9, %v4857_v12  ;;  %v2033_v3 = vld [vmem:[%s5506_s5 + $0x10] sm:$0xff] }
 0x357   : > { %2161 = vst.msk [vmem:[#allocation4 + $0x8] sm:$0xff] %vm2159_vm0, %v2128_v41  ;;  %v2225_v51 = vmul.f32 %v2128_v41, %v4811_v35  ;;  %4126 = vrsqrt.f32 %v2069_v0  ;;  %v1862_v12 = vpop.xlane.xlu1 %1861  ;;  %v1860_v58 = vpop.xlane.xlu0 %1859  ;;  %v4956_v61 = vmul.f32 %v4926_v11, %v4926_v11  ;;  %v2195_v0 = vld [vmem:[%s5507_s6 + $0x18] sm:$0xff] }
 0x358   : > { %v4117_v59 = vpop.eup %4116  ;;  %2160 = vst.msk [vmem:[#allocation4] sm:$0xff] %vm2159_vm0, %v2127_v16  ;;  %v2224_v1 = vmul.f32 %v2127_v16, %v4809_v34  ;;  %v2072_v2 = vadd.f32 1e-05, %v2008_v49  ;;  %v2071_v6 = vadd.f32 1e-05, %v2007_v17  ;;  %v1946_v7 = vmul.f32 0.001953125, %v1862_v12 }
 0x359   : > { %v4119_v35 = vpop.eup %4118  ;;  %v2257_v8 = vsub.f32 %v2193_v42, %v2225_v51  ;;  %v2130_v9 = vmul.f32 %v4117_v59, %v2034_v48  ;;  %v1945_v10 = vmul.f32 0.001953125, %v1860_v58  ;;  %v2036_v34 = vld [vmem:[%s5506_s5 + $0x28] sm:$0xff]  ;;  %v4966_v49 = vmul.f32 0.001953125, %v4789_v24  ;;  %v2194_v48 = vld [vmem:[%s5507_s6 + $0x10] sm:$0xff]  ;;  %v2035_v17 = vld [vmem:[%s5506_s5 + $0x20] sm:$0xff] }
 0x35a   : > { %v2256_v41 = vsub.f32 %v2192_v57, %v2224_v1  ;;  %v2129_v20 = vmul.f32 %v4119_v35, %v2033_v3  ;;  %4128 = vrsqrt.f32 %v2072_v2  ;;  %v2010_v16 = vsub.f32 %v1946_v7, %v4861_v39  ;;  %v2197_v35 = vld [vmem:[%s5507_s6 + $0x28] sm:$0xff] }
 0x35b   : > { %2289 = vst.msk [vmem:[#allocation5 + $0x8] sm:$0xff] %vm2159_vm0, %v2257_v8  ;;  %2163 = vst.msk [vmem:[#allocation4 + $0x18] sm:$0xff] %vm2159_vm0, %v2130_v9  ;;  %v2227_v42 = vmul.f32 %v2130_v9, %v4815_v37  ;;  %4130 = vrsqrt.f32 %v2071_v6  ;;  %v2009_v39 = vsub.f32 %v1945_v10, %v4874_v43  ;;  %v1866_v51 = vpop.xlane.xlu1 %1865  ;;  %v1864_v24 = vpop.xlane.xlu0 %1863  ;;  %v4982_v1 = vmul.f32 0.001953125, %v4791_v25  ;;  %v2196_v10 = vld [vmem:[%s5507_s6 + $0x20] sm:$0xff] }
 0x35c   : > { %v4121_v57 = vpop.eup %4120  ;;  %2288 = vst.msk [vmem:[#allocation5] sm:$0xff] %vm2159_vm0, %v2256_v41  ;;  %2162 = vst.msk [vmem:[#allocation4 + $0x10] sm:$0xff] %vm2159_vm0, %v2129_v20  ;;  %v2226_v37 = vmul.f32 %v2129_v20, %v4813_v36  ;;  %v2074_v3 = vadd.f32 1e-05, %v2010_v16  ;;  %v1948_v12 = vmul.f32 0.001953125, %v1866_v51  ;;  %v1947_v58 = vmul.f32 0.001953125, %v1864_v24 }
 0x35d   : > { %v4123_v59 = vpop.eup %4122  ;;  %v2259_v2 = vsub.f32 %v2195_v0, %v2227_v42  ;;  %v2132_v6 = vmul.f32 %v4121_v57, %v2036_v34  ;;  %v2073_v7 = vadd.f32 1e-05, %v2009_v39  ;;  %v2038_v36 = vld [vmem:[%s5506_s5 + $0x38] sm:$0xff]  ;;  %v4993_v25 = vmul.f32 %v4966_v49, %v4966_v49  ;;  %v2037_v41 = vld [vmem:[%s5506_s5 + $0x30] sm:$0xff] }
 0x35e   : > { %v2258_v43 = vsub.f32 %v2194_v48, %v2226_v37  ;;  %v2131_v8 = vmul.f32 %v4123_v59, %v2035_v17  ;;  %4132 = vrsqrt.f32 %v2074_v3  ;;  %v2012_v20 = vsub.f32 %v1948_v12, %v4878_v44  ;;  %v2199_v3 = vld [vmem:[%s5507_s6 + $0x38] sm:$0xff] }
 0x35f   : > { %2291 = vst.msk [vmem:[#allocation5 + $0x18] sm:$0xff] %vm2159_vm0, %v2259_v2  ;;  %2165 = vst.msk [vmem:[#allocation4 + $0x28] sm:$0xff] %vm2159_vm0, %v2132_v6  ;;  %v2229_v9 = vmul.f32 %v2132_v6, %v4817_v38  ;;  %4134 = vrsqrt.f32 %v2073_v7  ;;  %v2011_v44 = vsub.f32 %v1947_v58, %v4885_v52  ;;  %v1870_v0 = vpop.xlane.xlu1 %1869  ;;  %v1868_v34 = vpop.xlane.xlu0 %1867  ;;  %v5010_v51 = vmul.f32 %v4982_v1, %v4982_v1  ;;  %v2198_v6 = vld [vmem:[%s5507_s6 + $0x30] sm:$0xff]  ;;  %v2039_v7 = vld [vmem:[%s5506_s5 + $0x40] sm:$0xff] }
 0x360   : > { %v4125_v16 = vpop.eup %4124  ;;  %2290 = vst.msk [vmem:[#allocation5 + $0x10] sm:$0xff] %vm2159_vm0, %v2258_v43  ;;  %2164 = vst.msk [vmem:[#allocation4 + $0x20] sm:$0xff] %vm2159_vm0, %v2131_v8  ;;  %v2228_v38 = vmul.f32 %v2131_v8, %v4823_v45  ;;  %v2076_v42 = vadd.f32 1e-05, %v2012_v20  ;;  %v1950_v48 = vmul.f32 0.001953125, %v1870_v0  ;;  %v1949_v17 = vmul.f32 0.001953125, %v1868_v34 }
 0x361   : > { %v4127_v39 = vpop.eup %4126  ;;  %v2261_v24 = vsub.f32 %v2197_v35, %v2229_v9  ;;  %v2134_v57 = vmul.f32 %v4125_v16, %v2038_v36  ;;  %v2075_v52 = vadd.f32 1e-05, %v2011_v44  ;;  %v2040_v45 = vld [vmem:[%s5506_s5 + $0x48] sm:$0xff]  ;;  %v5020_v59 = vmul.f32 0.001953125, %v4793_v26 }
 0x362   : > { %v2260_v37 = vsub.f32 %v2196_v10, %v2228_v38  ;;  %v2133_v12 = vmul.f32 %v4127_v39, %v2037_v41  ;;  %4136 = vrsqrt.f32 %v2076_v42  ;;  %v2014_v58 = vsub.f32 %v1950_v48, %v4889_v54  ;;  %v2201_v34 = vld [vmem:[%s5507_s6 + $0x48] sm:$0xff]  ;;  %v2200_v48 = vld [vmem:[%s5507_s6 + $0x40] sm:$0xff] }
 0x363   : > { %2293 = vst.msk [vmem:[#allocation5 + $0x28] sm:$0xff] %vm2159_vm0, %v2261_v24  ;;  %2167 = vst.msk [vmem:[#allocation4 + $0x38] sm:$0xff] %vm2159_vm0, %v2134_v57  ;;  %v2231_v2 = vmul.f32 %v2134_v57, %v4825_v46  ;;  %4138 = vrsqrt.f32 %v2075_v52  ;;  %v2013_v54 = vsub.f32 %v1949_v17, %v4899_v56  ;;  %v1874_v43 = vpop.xlane.xlu1 %1873  ;;  %v1872_v26 = vpop.xlane.xlu0 %1871  ;;  %v5036_v10 = vmul.f32 0.001953125, %v4795_v27  ;;  %v2041_v17 = vld [vmem:[%s5506_s5 + $0x50] sm:$0xff] }
 0x364   : > { %v4129_v35 = vpop.eup %4128  ;;  %2292 = vst.msk [vmem:[#allocation5 + $0x20] sm:$0xff] %vm2159_vm0, %v2260_v37  ;;  %2166 = vst.msk [vmem:[#allocation4 + $0x30] sm:$0xff] %vm2159_vm0, %v2133_v12  ;;  %v2230_v46 = vmul.f32 %v2133_v12, %v4827_v47  ;;  %v2078_v8 = vadd.f32 1e-05, %v2014_v58  ;;  %v1952_v36 = vmul.f32 0.001953125, %v1874_v43  ;;  %v1951_v20 = vmul.f32 0.001953125, %v1872_v26 }
 0x365   : > { %v4131_v9 = vpop.eup %4130  ;;  %v2263_v41 = vsub.f32 %v2199_v3, %v2231_v2  ;;  %v2136_v44 = vmul.f32 %v4129_v35, %v2040_v45  ;;  %v2077_v0 = vadd.f32 1e-05, %v2013_v54  ;;  %v2042_v47 = vld [vmem:[%s5506_s5 + $0x58] sm:$0xff]  ;;  %v5047_v27 = vmul.f32 %v5020_v59, %v5020_v59 }
 0x366   : > { %v2262_v56 = vsub.f32 %v2198_v6, %v2230_v46  ;;  %v2135_v16 = vmul.f32 %v4131_v9, %v2039_v7  ;;  %4140 = vrsqrt.f32 %v2078_v8  ;;  %v2016_v38 = vsub.f32 %v1952_v36, %v4906_v60  ;;  %v2203_v7 = vld [vmem:[%s5507_s6 + $0x58] sm:$0xff]  ;;  %v2202_v46 = vld [vmem:[%s5507_s6 + $0x50] sm:$0xff]  ;;  %v2043_v8 = vld [vmem:[%s5506_s5 + $0x60] sm:$0xff] }
 0x367   : > { %2295 = vst.msk [vmem:[#allocation5 + $0x38] sm:$0xff] %vm2159_vm0, %v2263_v41  ;;  %2169 = vst.msk [vmem:[#allocation4 + $0x48] sm:$0xff] %vm2159_vm0, %v2136_v44  ;;  %v2233_v42 = vmul.f32 %v2136_v44, %v4835_v53  ;;  %4142 = vrsqrt.f32 %v2077_v0  ;;  %v2015_v60 = vsub.f32 %v1951_v20, %v4919_v21  ;;  %v1878_v39 = vpop.xlane.xlu1 %1877  ;;  %v1876_v24 = vpop.xlane.xlu0 %1875  ;;  %v5064_v45 = vmul.f32 %v5036_v10, %v5036_v10 }
 0x368   : > { %v4133_v57 = vpop.eup %4132  ;;  %2294 = vst.msk [vmem:[#allocation5 + $0x30] sm:$0xff] %vm2159_vm0, %v2262_v56  ;;  %2168 = vst.msk [vmem:[#allocation4 + $0x40] sm:$0xff] %vm2159_vm0, %v2135_v16  ;;  %v2232_v53 = vmul.f32 %v2135_v16, %v4841_v62  ;;  %v2080_v52 = vadd.f32 1e-05, %v2016_v38  ;;  %v1954_v37 = vmul.f32 0.001953125, %v1878_v39  ;;  %v1953_v3 = vmul.f32 0.001953125, %v1876_v24 }
 0x369   : > { %v4135_v12 = vpop.eup %4134  ;;  %v2265_v58 = vsub.f32 %v2201_v34, %v2233_v42  ;;  %v2138_v2 = vmul.f32 %v4133_v57, %v2042_v47  ;;  %v2079_v21 = vadd.f32 1e-05, %v2015_v60  ;;  %v2044_v62 = vld [vmem:[%s5506_s5 + $0x68] sm:$0xff]  ;;  %v5074_v26 = vmul.f32 0.001953125, %v4797_v28  ;;  %v2204_v60 = vld [vmem:[%s5507_s6 + $0x60] sm:$0xff]  ;;  %v2045_v39 = vld [vmem:[%s5506_s5 + $0x70] sm:$0xff] }
 0x36a   : > { %v2264_v6 = vsub.f32 %v2200_v48, %v2232_v53  ;;  %v2137_v54 = vmul.f32 %v4135_v12, %v2041_v17  ;;  %4144 = vrsqrt.f32 %v2080_v52  ;;  %v2018_v43 = vsub.f32 %v1954_v37, %v4923_v22  ;;  %v2205_v38 = vld [vmem:[%s5507_s6 + $0x68] sm:$0xff] }
 0x36b   : > { %2297 = vst.msk [vmem:[#allocation5 + $0x48] sm:$0xff] %vm2159_vm0, %v2265_v58  ;;  %2171 = vst.msk [vmem:[#allocation4 + $0x58] sm:$0xff] %vm2159_vm0, %v2138_v2  ;;  %v2235_v35 = vmul.f32 %v2138_v2, %v4843_v63  ;;  %4146 = vrsqrt.f32 %v2079_v21  ;;  %v2017_v22 = vsub.f32 %v1953_v3, %v4938_v50  ;;  %v1882_v36 = vpop.xlane.xlu1 %1881  ;;  %v1880_v28 = vpop.xlane.xlu0 %1879  ;;  %v5090_v56 = vmul.f32 0.001953125, %v4799_v29 }
 0x36c   : > { %v4137_v20 = vpop.eup %4136  ;;  %2296 = vst.msk [vmem:[#allocation5 + $0x40] sm:$0xff] %vm2159_vm0, %v2264_v6  ;;  %2170 = vst.msk [vmem:[#allocation4 + $0x50] sm:$0xff] %vm2159_vm0, %v2137_v54  ;;  %v2234_v63 = vmul.f32 %v2137_v54, %v4851_v4  ;;  %v2082_v9 = vadd.f32 1e-05, %v2018_v43  ;;  %v1956_v41 = vmul.f32 0.001953125, %v1882_v36  ;;  %v1955_v44 = vmul.f32 0.001953125, %v1880_v28 }
 0x36d   : > { %v4139_v0 = vpop.eup %4138  ;;  %v2267_v34 = vsub.f32 %v2203_v7, %v2235_v35  ;;  %v2140_v16 = vmul.f32 %v4137_v20, %v2044_v62  ;;  %v2081_v47 = vadd.f32 1e-05, %v2017_v22  ;;  %v2046_v4 = vld [vmem:[%s5506_s5 + $0x78] sm:$0xff]  ;;  %v5101_v29 = vmul.f32 %v5074_v26, %v5074_v26 }
 0x36e   : > { %v2266_v50 = vsub.f32 %v2202_v46, %v2234_v63  ;;  %v2139_v42 = vmul.f32 %v4139_v0, %v2043_v8  ;;  %4148 = vrsqrt.f32 %v2082_v9  ;;  %v2020_v48 = vsub.f32 %v1956_v41, %v4942_v23  ;;  %v2207_v7 = vld [vmem:[%s5507_s6 + $0x78] sm:$0xff]  ;;  %v2206_v46 = vld [vmem:[%s5507_s6 + $0x70] sm:$0xff]  ;;  %v2047_v8 = vld [vmem:[%s5506_s5 + $0x80] sm:$0xff] }
 0x36f   : > { %2299 = vst.msk [vmem:[#allocation5 + $0x58] sm:$0xff] %vm2159_vm0, %v2267_v34  ;;  %2173 = vst.msk [vmem:[#allocation4 + $0x68] sm:$0xff] %vm2159_vm0, %v2140_v16  ;;  %v2237_v17 = vmul.f32 %v2140_v16, %v4853_v5  ;;  %4150 = vrsqrt.f32 %v2081_v47  ;;  %v2019_v23 = vsub.f32 %v1955_v44, %v4956_v61  ;;  %v1886_v24 = vpop.xlane.xlu1 %1885  ;;  %v1884_v57 = vpop.xlane.xlu0 %1883  ;;  %v5118_v58 = vmul.f32 %v5090_v56, %v5090_v56  ;;  %v2209_v16 = vld [vmem:[%s5507_s6 + $0x88] sm:$0xff] }
 0x370   : > { %v4141_v53 = vpop.eup %4140  ;;  %2298 = vst.msk [vmem:[#allocation5 + $0x50] sm:$0xff] %vm2159_vm0, %v2266_v50  ;;  %2172 = vst.msk [vmem:[#allocation4 + $0x60] sm:$0xff] %vm2159_vm0, %v2139_v42  ;;  %v2236_v5 = vmul.f32 %v2139_v42, %v4864_v13  ;;  %v2084_v52 = vadd.f32 1e-05, %v2020_v48  ;;  %v1958_v37 = vmul.f32 0.001953125, %v1886_v24  ;;  %v1957_v3 = vmul.f32 0.001953125, %v1884_v57 }
 0x371   : > { %v4143_v12 = vpop.eup %4142  ;;  %v2269_v2 = vsub.f32 %v2205_v38, %v2237_v17  ;;  %v2142_v21 = vmul.f32 %v4141_v53, %v2046_v4  ;;  %v2083_v61 = vadd.f32 1e-05, %v2019_v23  ;;  %v2048_v13 = vld [vmem:[%s5506_s5 + $0x88] sm:$0xff]  ;;  %v5128_v43 = vmul.f32 0.001953125, %v4801_v30  ;;  %v2208_v42 = vld [vmem:[%s5507_s6 + $0x80] sm:$0xff]  ;;  %v2049_v4 = vld [vmem:[%s5506_s5 + $0x90] sm:$0xff] }
 0x372   : > { %v2268_v6 = vsub.f32 %v2204_v60, %v2236_v5  ;;  %v2141_v54 = vmul.f32 %v4143_v12, %v2045_v39  ;;  %4152 = vrsqrt.f32 %v2084_v52  ;;  %v2022_v62 = vsub.f32 %v1958_v37, %v4993_v25 }
 0x373   : > { %2301 = vst.msk [vmem:[#allocation5 + $0x68] sm:$0xff] %vm2159_vm0, %v2269_v2  ;;  %2175 = vst.msk [vmem:[#allocation4 + $0x78] sm:$0xff] %vm2159_vm0, %v2142_v21  ;;  %v2239_v35 = vmul.f32 %v2142_v21, %v4867_v14  ;;  %4154 = vrsqrt.f32 %v2083_v61  ;;  %v2021_v25 = vsub.f32 %v1957_v3, %v5010_v51  ;;  %v1890_v22 = vpop.xlane.xlu1 %1889  ;;  %v1888_v30 = vpop.xlane.xlu0 %1887  ;;  %v5144_v41 = vmul.f32 0.001953125, %v4803_v31  ;;  %v2211_v3 = vld [vmem:[%s5507_s6 + $0x98] sm:$0xff] }
 0x374   : > { %v4145_v36 = vpop.eup %4144  ;;  %2300 = vst.msk [vmem:[#allocation5 + $0x60] sm:$0xff] %vm2159_vm0, %v2268_v6  ;;  %2174 = vst.msk [vmem:[#allocation4 + $0x70] sm:$0xff] %vm2159_vm0, %v2141_v54  ;;  %v2238_v14 = vmul.f32 %v2141_v54, %v4870_v40  ;;  %v2086_v28 = vadd.f32 1e-05, %v2022_v62  ;;  %v1960_v20 = vmul.f32 0.001953125, %v1890_v22  ;;  %v1959_v63 = vmul.f32 0.001953125, %v1888_v30 }
 0x375   : > { %v4147_v9 = vpop.eup %4146  ;;  %v2271_v44 = vsub.f32 %v2207_v7, %v2239_v35  ;;  %v2144_v0 = vmul.f32 %v4145_v36, %v2048_v13  ;;  %v2085_v34 = vadd.f32 1e-05, %v2021_v25  ;;  %v2050_v40 = vld [vmem:[%s5506_s5 + $0x98] sm:$0xff]  ;;  %v5155_v31 = vmul.f32 %v5128_v43, %v5128_v43  ;;  %v2210_v6 = vld [vmem:[%s5507_s6 + $0x90] sm:$0xff]  ;;  %v2051_v7 = vld [vmem:[%s5506_s5 + $0xa0] sm:$0xff] }
 0x376   : > { %v2270_v51 = vsub.f32 %v2206_v46, %v2238_v14  ;;  %v2143_v47 = vmul.f32 %v4147_v9, %v2047_v8  ;;  %4156 = vrsqrt.f32 %v2086_v28  ;;  %v2024_v50 = vsub.f32 %v1960_v20, %v5047_v27  ;;  %v2213_v14 = vld [vmem:[%s5507_s6 + $0xa8] sm:$0xff] }
 0x377   : > { %2303 = vst.msk [vmem:[#allocation5 + $0x78] sm:$0xff] %vm2159_vm0, %v2271_v44  ;;  %2177 = vst.msk [vmem:[#allocation4 + $0x88] sm:$0xff] %vm2159_vm0, %v2144_v0  ;;  %v2241_v38 = vmul.f32 %v2144_v0, %v4881_v15  ;;  %4158 = vrsqrt.f32 %v2085_v34  ;;  %v2023_v27 = vsub.f32 %v1959_v63, %v5064_v45  ;;  %v1894_v48 = vpop.xlane.xlu1 %1893  ;;  %v1892_v17 = vpop.xlane.xlu0 %1891  ;;  %v1995_v53 = vmul.f32 %v5144_v41, %v5144_v41  ;;  %v5534_v63 = vld [vmem:[#allocation22_spill] sm:$0xff]  ;;  %v2053_v0 = vld [vmem:[%s5506_s5 + $0xb0] sm:$0xff] }
 0x378   : > { %v4149_v60 = vpop.eup %4148  ;;  %2302 = vst.msk [vmem:[#allocation5 + $0x70] sm:$0xff] %vm2159_vm0, %v2270_v51  ;;  %2176 = vst.msk [vmem:[#allocation4 + $0x80] sm:$0xff] %vm2159_vm0, %v2143_v47  ;;  %v2240_v15 = vmul.f32 %v2143_v47, %v4892_v55  ;;  %v2088_v39 = vadd.f32 1e-05, %v2024_v50  ;;  %v1962_v23 = vmul.f32 0.001953125, %v1894_v48  ;;  %v1961_v24 = vmul.f32 0.001953125, %v1892_v17 }
 0x379   : > { %v4151_v57 = vpop.eup %4150  ;;  %v2273_v5 = vsub.f32 %v2209_v16, %v2241_v38  ;;  %v2146_v52 = vmul.f32 %v4149_v60, %v2050_v40  ;;  %v2087_v37 = vadd.f32 1e-05, %v2023_v27  ;;  %v2052_v55 = vld [vmem:[%s5506_s5 + $0xa8] sm:$0xff]  ;;  %v5180_v21 = vmul.f32 0.001953125, %v4805_v32  ;;  %v2212_v44 = vld [vmem:[%s5507_s6 + $0xa0] sm:$0xff] }
 0x37a   : > { %v2272_v45 = vsub.f32 %v2208_v42, %v2240_v15  ;;  %v2145_v12 = vmul.f32 %v4151_v57, %v2049_v4  ;;  %4160 = vrsqrt.f32 %v2088_v39  ;;  %v2026_v2 = vsub.f32 %v1962_v23, %v5101_v29  ;;  %v2215_v15 = vld [vmem:[%s5507_s6 + $0xb8] sm:$0xff]  ;;  %v2214_v57 = vld [vmem:[%s5507_s6 + $0xb0] sm:$0xff] }
 0x37b   : > { %2305 = vst.msk [vmem:[#allocation5 + $0x88] sm:$0xff] %vm2159_vm0, %v2273_v5  ;;  %2179 = vst.msk [vmem:[#allocation4 + $0x98] sm:$0xff] %vm2159_vm0, %v2146_v52  ;;  %v2243_v61 = vmul.f32 %v2146_v52, %v4895_v18  ;;  %4162 = vrsqrt.f32 %v2087_v37  ;;  %v2025_v29 = vsub.f32 %v1961_v24, %v5118_v58  ;;  %v1898_v54 = vpop.xlane.xlu1 %1897  ;;  %v1896_v32 = vpop.xlane.xlu0 %1895  ;;  %v5196_v25 = vmul.f32 0.001953125, %v4807_v33 }
 0x37c   : > { %v4153_v13 = vpop.eup %4152  ;;  %2304 = vst.msk [vmem:[#allocation5 + $0x80] sm:$0xff] %vm2159_vm0, %v2272_v45  ;;  %2178 = vst.msk [vmem:[#allocation4 + $0x90] sm:$0xff] %vm2159_vm0, %v2145_v12  ;;  %v2242_v18 = vmul.f32 %v2145_v12, %v4909_v19  ;;  %v2090_v62 = vadd.f32 1e-05, %v2026_v2  ;;  %v1964_v35 = vmul.f32 0.001953125, %v1898_v54  ;;  %v1963_v46 = vmul.f32 0.001953125, %v1896_v32 }
 0x37d   : > { %v4155_v8 = vpop.eup %4154  ;;  %v2275_v22 = vsub.f32 %v2211_v3, %v2243_v61  ;;  %v2148_v30 = vmul.f32 %v4153_v13, %v2052_v55  ;;  %v2089_v36 = vadd.f32 1e-05, %v2025_v29  ;;  %v2054_v19 = vld [vmem:[%s5506_s5 + $0xb8] sm:$0xff]  ;;  %v1998_v33 = vmul.f32 %v5180_v21, %v5180_v21  ;;  %v2217_v61 = vld [vmem:[%s5507_s6 + $0xc8] sm:$0xff]  ;;  %v2216_v29 = vld [vmem:[%s5507_s6 + $0xc0] sm:$0xff] }
 0x37e   : > { %v2274_v58 = vsub.f32 %v2210_v6, %v2242_v18  ;;  %v2147_v28 = vmul.f32 %v4155_v8, %v2051_v7  ;;  %4164 = vrsqrt.f32 %v2090_v62  ;;  %v2028_v20 = vsub.f32 %v1964_v35, %v5155_v31  ;;  %v2058_v7 = vld [vmem:[%s5506_s5 + $0xd8] sm:$0xff]  ;;  %v2057_v54 = vld [vmem:[%s5506_s5 + $0xd0] sm:$0xff] }
 0x37f   : > { %2307 = vst.msk [vmem:[#allocation5 + $0x98] sm:$0xff] %vm2159_vm0, %v2275_v22  ;;  %2181 = vst.msk [vmem:[#allocation4 + $0xa8] sm:$0xff] %vm2159_vm0, %v2148_v30  ;;  %v2245_v9 = vmul.f32 %v2148_v30, %v5534_v63  ;;  %4166 = vrsqrt.f32 %v2089_v36  ;;  %v2027_v34 = vsub.f32 %v1963_v46, %v1995_v53  ;;  %v1902_v51 = vpop.xlane.xlu1 %1901  ;;  %v1900_v16 = vpop.xlane.xlu0 %1899  ;;  %v1997_v4 = vmul.f32 %v5196_v25, %v5196_v25  ;;  %v2055_v53 = vld [vmem:[%s5506_s5 + $0xc0] sm:$0xff]  ;;  %v2219_v46 = vld [vmem:[%s5507_s6 + $0xd8] sm:$0xff] }
 0x380   : > { %v4157_v47 = vpop.eup %4156  ;;  %2306 = vst.msk [vmem:[#allocation5 + $0x90] sm:$0xff] %vm2159_vm0, %v2274_v58  ;;  %2180 = vst.msk [vmem:[#allocation4 + $0xa0] sm:$0xff] %vm2159_vm0, %v2147_v28  ;;  %v2244_v40 = vmul.f32 %v2147_v28, %v4926_v11  ;;  %v2092_v50 = vadd.f32 1e-05, %v2028_v20  ;;  %v1966_v31 = vmul.f32 0.001953125, %v1902_v51  ;;  %v1965_v38 = vmul.f32 0.001953125, %v1900_v16 }
 0x381   : > { %v4159_v42 = vpop.eup %4158  ;;  %v2277_v27 = vsub.f32 %v2213_v14, %v2245_v9  ;;  %v2150_v48 = vmul.f32 %v4157_v47, %v2054_v19  ;;  %v2091_v17 = vadd.f32 1e-05, %v2027_v34  ;;  %v2056_v11 = vld [vmem:[%s5506_s5 + $0xc8] sm:$0xff]  ;;  %v2059_v36 = vld [vmem:[%s5506_s5 + $0xe0] sm:$0xff]  ;;  %v2062_v9 = vld [vmem:[%s5506_s5 + $0xf8] sm:$0xff] }
 0x382   : > { %v2276_v60 = vsub.f32 %v2212_v44, %v2244_v40  ;;  %v2149_v39 = vmul.f32 %v4159_v42, %v2053_v0  ;;  %4168 = vrsqrt.f32 %v2092_v50  ;;  %v2030_v23 = vsub.f32 %v1966_v31, %v1998_v33  ;;  %v2060_v22 = vld [vmem:[%s5506_s5 + $0xe8] sm:$0xff]  ;;  %v2061_v0 = vld [vmem:[%s5506_s5 + $0xf0] sm:$0xff] }
 0x383   : > { %2309 = vst.msk [vmem:[#allocation5 + $0xa8] sm:$0xff] %vm2159_vm0, %v2277_v27  ;;  %2183 = vst.msk [vmem:[#allocation4 + $0xb8] sm:$0xff] %vm2159_vm0, %v2150_v48  ;;  %v2247_v24 = vmul.f32 %v2150_v48, %v4966_v49  ;;  %4170 = vrsqrt.f32 %v2091_v17  ;;  %v2029_v5 = vsub.f32 %v1965_v38, %v1997_v4  ;;  %v2222_v42 = vld [vmem:[%s5507_s6 + $0xf0] sm:$0xff] }
 0x384   : > { %v4161_v52 = vpop.eup %4160  ;;  %2308 = vst.msk [vmem:[#allocation5 + $0xa0] sm:$0xff] %vm2159_vm0, %v2276_v60  ;;  %2182 = vst.msk [vmem:[#allocation4 + $0xb0] sm:$0xff] %vm2159_vm0, %v2149_v39  ;;  %v2246_v37 = vmul.f32 %v2149_v39, %v4982_v1  ;;  %v2094_v45 = vadd.f32 1e-05, %v2030_v23 }
 0x385   : > { %v4163_v3 = vpop.eup %4162  ;;  %v2279_v49 = vsub.f32 %v2215_v15, %v2247_v24  ;;  %v2152_v12 = vmul.f32 %v4161_v52, %v2056_v11  ;;  %v2093_v55 = vadd.f32 1e-05, %v2029_v5 }
 0x386   : > { %v2278_v2 = vsub.f32 %v2214_v57, %v2246_v37  ;;  %v2151_v6 = vmul.f32 %v4163_v3, %v2055_v53  ;;  %4172 = vrsqrt.f32 %v2094_v45 }
 0x387   : > { %2311 = vst.msk [vmem:[#allocation5 + $0xb8] sm:$0xff] %vm2159_vm0, %v2279_v49  ;;  %2185 = vst.msk [vmem:[#allocation4 + $0xc8] sm:$0xff] %vm2159_vm0, %v2152_v12  ;;  %v2249_v1 = vmul.f32 %v2152_v12, %v5020_v59  ;;  %4174 = vrsqrt.f32 %v2093_v55 }
 0x388   : > { %v4165_v32 = vpop.eup %4164  ;;  %2310 = vst.msk [vmem:[#allocation5 + $0xb0] sm:$0xff] %vm2159_vm0, %v2278_v2  ;;  %2184 = vst.msk [vmem:[#allocation4 + $0xc0] sm:$0xff] %vm2159_vm0, %v2151_v6  ;;  %v2248_v13 = vmul.f32 %v2151_v6, %v5036_v10  ;;  %v2218_v10 = vld [vmem:[%s5507_s6 + $0xd0] sm:$0xff] }
 0x389   : > { %v4167_v18 = vpop.eup %4166  ;;  %v2281_v62 = vsub.f32 %v2217_v61, %v2249_v1  ;;  %v2154_v35 = vmul.f32 %v4165_v32, %v2058_v7 }
 0x38a   : > { %v2280_v59 = vsub.f32 %v2216_v29, %v2248_v13  ;;  %v2153_v8 = vmul.f32 %v4167_v18, %v2057_v54 }
 0x38b   : > { %2313 = vst.msk [vmem:[#allocation5 + $0xc8] sm:$0xff] %vm2159_vm0, %v2281_v62  ;;  %2187 = vst.msk [vmem:[#allocation4 + $0xd8] sm:$0xff] %vm2159_vm0, %v2154_v35  ;;  %v2251_v30 = vmul.f32 %v2154_v35, %v5074_v26  ;;  %v2221_v26 = vld [vmem:[%s5507_s6 + $0xe8] sm:$0xff] }
 0x38c   : > { %v4169_v58 = vpop.eup %4168  ;;  %2312 = vst.msk [vmem:[#allocation5 + $0xc0] sm:$0xff] %vm2159_vm0, %v2280_v59  ;;  %2186 = vst.msk [vmem:[#allocation4 + $0xd0] sm:$0xff] %vm2159_vm0, %v2153_v8  ;;  %v2250_v14 = vmul.f32 %v2153_v8, %v5090_v56  ;;  %v2220_v56 = vld [vmem:[%s5507_s6 + $0xe0] sm:$0xff] }
 0x38d   : > { %v4171_v28 = vpop.eup %4170  ;;  %v2283_v19 = vsub.f32 %v2219_v46, %v2251_v30  ;;  %v2156_v20 = vmul.f32 %v4169_v58, %v2060_v22 }
 0x38e   : > { %v2282_v33 = vsub.f32 %v2218_v10, %v2250_v14  ;;  %v2155_v63 = vmul.f32 %v4171_v28, %v2059_v36 }
 0x38f   : > { %2315 = vst.msk [vmem:[#allocation5 + $0xd8] sm:$0xff] %vm2159_vm0, %v2283_v19  ;;  %2189 = vst.msk [vmem:[#allocation4 + $0xe8] sm:$0xff] %vm2159_vm0, %v2156_v20  ;;  %v2253_v44 = vmul.f32 %v2156_v20, %v5128_v43  ;;  %v2223_v43 = vld [vmem:[%s5507_s6 + $0xf8] sm:$0xff] }
 0x390   : > { %v4173_v34 = vpop.eup %4172  ;;  %2314 = vst.msk [vmem:[#allocation5 + $0xd0] sm:$0xff] %vm2159_vm0, %v2282_v33  ;;  %2188 = vst.msk [vmem:[#allocation4 + $0xe0] sm:$0xff] %vm2159_vm0, %v2155_v63  ;;  %v2252_v51 = vmul.f32 %v2155_v63, %v5144_v41 }
 0x391   : > { %v4175_v16 = vpop.eup %4174  ;;  %v2285_v47 = vsub.f32 %v2221_v26, %v2253_v44  ;;  %v2158_v40 = vmul.f32 %v4173_v34, %v2062_v9 }
 0x392   : > { %v2284_v50 = vsub.f32 %v2220_v56, %v2252_v51  ;;  %v2157_v31 = vmul.f32 %v4175_v16, %v2061_v0 }
 0x393   : > { %2317 = vst.msk [vmem:[#allocation5 + $0xe8] sm:$0xff] %vm2159_vm0, %v2285_v47  ;;  %2191 = vst.msk [vmem:[#allocation4 + $0xf8] sm:$0xff] %vm2159_vm0, %v2158_v40  ;;  %v2255_v38 = vmul.f32 %v2158_v40, %v5180_v21 }
 0x394   : > { %2316 = vst.msk [vmem:[#allocation5 + $0xe0] sm:$0xff] %vm2159_vm0, %v2284_v50  ;;  %2190 = vst.msk [vmem:[#allocation4 + $0xf0] sm:$0xff] %vm2159_vm0, %v2157_v31  ;;  %v2254_v41 = vmul.f32 %v2157_v31, %v5196_v25 }
 0x395   : > { %v2287_v4 = vsub.f32 %v2223_v43, %v2255_v38 }
 0x396   : > { %v2286_v27 = vsub.f32 %v2222_v42, %v2254_v41 }
 0x397   : > { %2319 = vst.msk [vmem:[#allocation5 + $0xf8] sm:$0xff] %vm2159_vm0, %v2287_v4 }
 0x398   : > { %2318 = vst.msk [vmem:[#allocation5 + $0xf0] sm:$0xff] %vm2159_vm0, %v2286_v27 }
 0x399 PF: > { %v2676_v48 = vld [vmem:[#allocation5] sm:$0xff]  ;;  %v4392_v21 = vmov 0   ;;  %v2677_v60 = vld [vmem:[#allocation5 + $0x8] sm:$0xff]  ;;  %v2359_v39 = vld [vmem:[#allocation4 + $0x18] sm:$0xff]  ;;  %s3897_s13 = sshll.u32 %s4368_s27, 8 }
 0x39a   : > { %v2356_v17 = vld [vmem:[#allocation4] sm:$0xff]  ;;  %4177 = vset.pattern.permute.xlu1 %v4392_v21  ;;  %4176 = vset.pattern.permute.xlu0 %v4392_v21  ;;  %v2357_v15 = vld [vmem:[#allocation4 + $0x8] sm:$0xff]  ;;  %v2358_v25 = vld [vmem:[#allocation4 + $0x10] sm:$0xff]  ;;  %s5308_s17 = scalar_lea.vmem [#allocation6], %s3897_s13 }
 0x39b   : > { %2710 = vperm.xlu1 %4177, %v2676_v48   ;;  %2454 = vperm.xlu0 %4176, %v2356_v17   ;;  %v2679_v11 = vld [vmem:[#allocation5 + $0x18] sm:$0xff]  ;;  %v2678_v23 = vld [vmem:[#allocation5 + $0x10] sm:$0xff]  ;;  %v2361_v24 = vld [vmem:[#allocation4 + $0x28] sm:$0xff] }
 0x39c   : > { %v2360_v57 = vld [vmem:[#allocation4 + $0x20] sm:$0xff]  ;;  %v2681_v53 = vld [vmem:[#allocation5 + $0x28] sm:$0xff]  ;;  %v2363_v52 = vld [vmem:[#allocation4 + $0x38] sm:$0xff] }
 0x39d   : > { %v2680_v5 = vld [vmem:[#allocation5 + $0x20] sm:$0xff]  ;;  %v2362_v37 = vld [vmem:[#allocation4 + $0x30] sm:$0xff]  ;;  %v2683_v45 = vld [vmem:[#allocation5 + $0x38] sm:$0xff] }
 0x39e   : > { %v2682_v3 = vld [vmem:[#allocation5 + $0x30] sm:$0xff]  ;;  %v2365_v49 = vld [vmem:[#allocation4 + $0x48] sm:$0xff]  ;;  %v2364_v12 = vld [vmem:[#allocation4 + $0x40] sm:$0xff] }
 0x39f   : > { %2715 = vperm.xlu1 %4177, %v2677_v60   ;;  %2459 = vperm.xlu0 %4176, %v2357_v15   ;;  %v2685_v55 = vld [vmem:[#allocation5 + $0x48] sm:$0xff]  ;;  %v2684_v2 = vld [vmem:[#allocation5 + $0x40] sm:$0xff]  ;;  %v2367_v61 = vld [vmem:[#allocation4 + $0x58] sm:$0xff] }
 0x3a0   : > { %v2366_v6 = vld [vmem:[#allocation4 + $0x50] sm:$0xff]  ;;  %v2687_v7 = vld [vmem:[#allocation5 + $0x58] sm:$0xff]  ;;  %v2369_v29 = vld [vmem:[#allocation4 + $0x68] sm:$0xff] }
 0x3a1   : > { %v2686_v1 = vld [vmem:[#allocation5 + $0x50] sm:$0xff]  ;;  %v2368_v54 = vld [vmem:[#allocation4 + $0x60] sm:$0xff]  ;;  %v2689_v32 = vld [vmem:[#allocation5 + $0x68] sm:$0xff] }
 0x3a2   : > { %v2688_v13 = vld [vmem:[#allocation5 + $0x60] sm:$0xff]  ;;  %v2371_v18 = vld [vmem:[#allocation4 + $0x78] sm:$0xff]  ;;  %v2370_v62 = vld [vmem:[#allocation4 + $0x70] sm:$0xff] }
 0x3a3   : > { %2469 = vperm.xlu1 %4177, %v2359_v39   ;;  %2464 = vperm.xlu0 %4176, %v2358_v25   ;;  %v2691_v35 = vld [vmem:[#allocation5 + $0x78] sm:$0xff]  ;;  %v2690_v59 = vld [vmem:[#allocation5 + $0x70] sm:$0xff]  ;;  %v2373_v46 = vld [vmem:[#allocation4 + $0x88] sm:$0xff] }
 0x3a4   : > { %v2372_v8 = vld [vmem:[#allocation4 + $0x80] sm:$0xff]  ;;  %v2693_v22 = vld [vmem:[#allocation5 + $0x88] sm:$0xff]  ;;  %v2375_v10 = vld [vmem:[#allocation4 + $0x98] sm:$0xff] }
 0x3a5   : > { %v2692_v30 = vld [vmem:[#allocation5 + $0x80] sm:$0xff]  ;;  %v2374_v36 = vld [vmem:[#allocation4 + $0x90] sm:$0xff]  ;;  %v2695_v58 = vld [vmem:[#allocation5 + $0x98] sm:$0xff] }
 0x3a6   : > { %v2694_v14 = vld [vmem:[#allocation5 + $0x90] sm:$0xff]  ;;  %v2377_v28 = vld [vmem:[#allocation4 + $0xa8] sm:$0xff]  ;;  %v2376_v19 = vld [vmem:[#allocation4 + $0xa0] sm:$0xff] }
 0x3a7   : > { %2725 = vperm.xlu1 %4177, %v2679_v11   ;;  %2720 = vperm.xlu0 %4176, %v2678_v23   ;;  %v2697_v20 = vld [vmem:[#allocation5 + $0xa8] sm:$0xff]  ;;  %v2696_v33 = vld [vmem:[#allocation5 + $0xa0] sm:$0xff]  ;;  %v2379_v26 = vld [vmem:[#allocation4 + $0xb8] sm:$0xff] }
 0x3a8   : > { %v2378_v63 = vld [vmem:[#allocation4 + $0xb0] sm:$0xff]  ;;  %v2699_v9 = vld [vmem:[#allocation5 + $0xb8] sm:$0xff]  ;;  %v2381_v56 = vld [vmem:[#allocation4 + $0xc8] sm:$0xff] }
 0x3a9   : > { %v2698_v44 = vld [vmem:[#allocation5 + $0xb0] sm:$0xff]  ;;  %v2380_v0 = vld [vmem:[#allocation4 + $0xc0] sm:$0xff]  ;;  %v2701_v34 = vld [vmem:[#allocation5 + $0xc8] sm:$0xff] }
 0x3aa   : > { %v2700_v51 = vld [vmem:[#allocation5 + $0xc0] sm:$0xff]  ;;  %v2383_v16 = vld [vmem:[#allocation4 + $0xd8] sm:$0xff]  ;;  %v2382_v47 = vld [vmem:[#allocation4 + $0xd0] sm:$0xff] }
 0x3ab   : > { %2479 = vperm.xlu1 %4177, %v2361_v24   ;;  %2474 = vperm.xlu0 %4176, %v2360_v57   ;;  %v2703_v40 = vld [vmem:[#allocation5 + $0xd8] sm:$0xff]  ;;  %v2702_v50 = vld [vmem:[#allocation5 + $0xd0] sm:$0xff]  ;;  %v2385_v43 = vld [vmem:[#allocation4 + $0xe8] sm:$0xff] }
 0x3ac   : > { %v2384_v31 = vld [vmem:[#allocation4 + $0xe0] sm:$0xff]  ;;  %v2705_v38 = vld [vmem:[#allocation5 + $0xe8] sm:$0xff]  ;;  %v2387_v41 = vld [vmem:[#allocation4 + $0xf8] sm:$0xff] }
 0x3ad   : > { %v2704_v42 = vld [vmem:[#allocation5 + $0xe0] sm:$0xff]  ;;  %v2386_v4 = vld [vmem:[#allocation4 + $0xf0] sm:$0xff]  ;;  %v2707_v27 = vld [vmem:[#allocation5 + $0xf8] sm:$0xff] }
 0x3ae   : > { %v2706_v48 = vld [vmem:[#allocation5 + $0xf0] sm:$0xff]  ;;  %v2324_v17 = vld [vmem:[%s5308_s17] sm:$0xff]  ;;  %v2325_v21 = vld [vmem:[%s5308_s17 + $0x8] sm:$0xff] }
 0x3af   : > { %2735 = vperm.xlu1 %4177, %v2681_v53   ;;  %2730 = vperm.xlu0 %4176, %v2680_v5   ;;  %v2388_v60 = vunpack.c.l.bf16 %v2324_v17  ;;  %v2389_v15 = vunpack.c.l.bf16 %v2325_v21  ;;  %v2390_v24 = vunpack.c.h.bf16 %v2324_v17  ;;  %v2391_v57 = vunpack.c.h.bf16 %v2325_v21  ;;  %v2932_v53 = vld [vmem:[%s4600_s10] sm:$0xff]  ;;  %v2326_v5 = vld [vmem:[%s5308_s17 + $0x10] sm:$0xff] }
 0x3b3   : > { %2489 = vperm.xlu1 %4177, %v2363_v52   ;;  %2484 = vperm.xlu0 %4176, %v2362_v37   ;;  %v2327_v52 = vld [vmem:[%s5308_s17 + $0x18] sm:$0xff]  ;;  %v2933_v37 = vld [vmem:[%s4600_s10 + $0x8] sm:$0xff] }
 0x3b7   : > { %2745 = vperm.xlu1 %4177, %v2683_v45   ;;  %2740 = vperm.xlu0 %4176, %v2682_v3  }
 0x3bb   : > { %2499 = vperm.xlu1 %4177, %v2365_v49   ;;  %2494 = vperm.xlu0 %4176, %v2364_v12  }
 0x3bf   : > { %2755 = vperm.xlu1 %4177, %v2685_v55   ;;  %2750 = vperm.xlu0 %4176, %v2684_v2   ;;  %v2965_v55 = vunpack.c.h.bf16 %v2932_v53  ;;  %v2964_v2 = vunpack.c.l.bf16 %v2932_v53 }
 0x3c3   : > { %2509 = vperm.xlu1 %4177, %v2367_v61   ;;  %2504 = vperm.xlu0 %4176, %v2366_v6  }
 0x3c7   : > { %2765 = vperm.xlu1 %4177, %v2687_v7   ;;  %2760 = vperm.xlu0 %4176, %v2686_v1   ;;  %v2394_v7 = vunpack.c.h.bf16 %v2326_v5  ;;  %v2395_v1 = vunpack.c.h.bf16 %v2327_v52 }
 0x3cb   : > { %2519 = vperm.xlu1 %4177, %v2369_v29   ;;  %2514 = vperm.xlu0 %4176, %v2368_v54   ;;  %v2935_v29 = vld [vmem:[%s4600_s10 + $0x18] sm:$0xff]  ;;  %v2934_v54 = vld [vmem:[%s4600_s10 + $0x10] sm:$0xff] }
 0x3cf   : > { %2775 = vperm.xlu1 %4177, %v2689_v32   ;;  %2770 = vperm.xlu0 %4176, %v2688_v13   ;;  %v2967_v32 = vunpack.c.h.bf16 %v2933_v37  ;;  %v2966_v13 = vunpack.c.l.bf16 %v2933_v37 }
 0x3d3   : > { %2529 = vperm.xlu1 %4177, %v2371_v18   ;;  %2524 = vperm.xlu0 %4176, %v2370_v62   ;;  %v4180_v18 = vld [vmem:[#allocation10 + $0x4] ss:$8 sps:$4 sm:$0xff]  }
 0x3d4   : > { %3412 = vmatprep.mubr.bf16.mxu0 %v4180_v18 }
 0x3d7   : > { %2785 = vperm.xlu1 %4177, %v2691_v35   ;;  %2780 = vperm.xlu0 %4176, %v2690_v59   ;;  %v2392_v59 = vunpack.c.l.bf16 %v2326_v5 }
 0x3db   : > { %2539 = vperm.xlu1 %4177, %v2373_v46   ;;  %2534 = vperm.xlu0 %4176, %v2372_v8   ;;  %v2393_v46 = vunpack.c.l.bf16 %v2327_v52  ;;  %v2328_v8 = vld [vmem:[%s5308_s17 + $0x20] sm:$0xff] }
 0x3dc   : > { %v2396_v17 = vunpack.c.l.bf16 %v2328_v8 }
 0x3df   : > { %2795 = vperm.xlu1 %4177, %v2693_v22   ;;  %2790 = vperm.xlu0 %4176, %v2692_v30   ;;  %v2329_v22 = vld [vmem:[%s5308_s17 + $0x28] sm:$0xff] }
 0x3e0   : > { %v4183_v30 = vld [vmem:[#allocation10 + $0x84] ss:$8 sps:$4 sm:$0xff]   ;;  %v2397_v21 = vunpack.c.l.bf16 %v2329_v22 }
 0x3e1   : > { %3492 = vmatprep.mubr.bf16.mxu1 %v4183_v30 }
 0x3e3   : > { %2549 = vperm.xlu1 %4177, %v2375_v10   ;;  %2544 = vperm.xlu0 %4176, %v2374_v36  }
 0x3e7   : > { %2805 = vperm.xlu1 %4177, %v2695_v58   ;;  %2800 = vperm.xlu0 %4176, %v2694_v14  }
 0x3eb   : > { %2559 = vperm.xlu1 %4177, %v2377_v28   ;;  %2554 = vperm.xlu0 %4176, %v2376_v19   ;;  %v2970_v28 = vunpack.c.l.bf16 %v2935_v29  ;;  %v2971_v19 = vunpack.c.h.bf16 %v2935_v29  ;;  %v2330_v29 = vld [vmem:[%s5308_s17 + $0x30] sm:$0xff] }
 0x3ec   : > { %v2400_v30 = vunpack.c.l.bf16 %v2330_v29 }
 0x3ef   : > { %2815 = vperm.xlu1 %4177, %v2697_v20   ;;  %2810 = vperm.xlu0 %4176, %v2696_v33   ;;  %v2968_v20 = vunpack.c.l.bf16 %v2934_v54  ;;  %v2969_v33 = vunpack.c.h.bf16 %v2934_v54  ;;  %v2331_v54 = vld [vmem:[%s5308_s17 + $0x38] sm:$0xff] }
 0x3f3   : > { %2569 = vperm.xlu1 %4177, %v2379_v26   ;;  %2564 = vperm.xlu0 %4176, %v2378_v63   ;;  %v2398_v63 = vunpack.c.h.bf16 %v2328_v8  ;;  %v2402_v8 = vunpack.c.h.bf16 %v2330_v29 }
 0x3f7   : > { %2825 = vperm.xlu1 %4177, %v2699_v9   ;;  %2820 = vperm.xlu0 %4176, %v2698_v44   ;;  %v2399_v9 = vunpack.c.h.bf16 %v2329_v22  ;;  %v2403_v22 = vunpack.c.h.bf16 %v2331_v54 }
 0x3fb   : > { %2579 = vperm.xlu1 %4177, %v2381_v56   ;;  %2574 = vperm.xlu0 %4176, %v2380_v0  }
 0x3ff   : > { %2835 = vperm.xlu1 %4177, %v2701_v34   ;;  %2830 = vperm.xlu0 %4176, %v2700_v51  }
 0x403   : > { %2589 = vperm.xlu1 %4177, %v2383_v16   ;;  %2584 = vperm.xlu0 %4176, %v2382_v47  }
 0x407   : > { %2845 = vperm.xlu1 %4177, %v2703_v40   ;;  %2840 = vperm.xlu0 %4176, %v2702_v50  }
 0x40b   : > { %2599 = vperm.xlu1 %4177, %v2385_v43   ;;  %2594 = vperm.xlu0 %4176, %v2384_v31  }
 0x40f   : > { %2855 = vperm.xlu1 %4177, %v2705_v38   ;;  %2850 = vperm.xlu0 %4176, %v2704_v42  }
 0x413   : > { %2609 = vperm.xlu1 %4177, %v2387_v41   ;;  %2604 = vperm.xlu0 %4176, %v2386_v4  }
 0x417   : > { %2865 = vperm.xlu1 %4177, %v2707_v27   ;;  %2860 = vperm.xlu0 %4176, %v2706_v48   ;;  %v2937_v27 = vld [vmem:[%s4600_s10 + $0x28] sm:$0xff] }
 0x418   : > { %v2974_v53 = vunpack.c.l.bf16 %v2937_v27  ;;  %v2975_v5 = vunpack.c.h.bf16 %v2937_v27 }
 0x41a   : > { %v2711_v39 = vpop.permute.xlu1 %2710  ;;  %v2455_v25 = vpop.permute.xlu0 %2454 }
 0x41b   : > { %v2612_v11 = vmul.f32 %v2455_v25, %v2388_v60  ;;  %v2613_v23 = vmul.f32 %v2455_v25, %v2389_v15 }
 0x41d   : > { %v2868_v45 = vadd.f32 %v2711_v39, %v2612_v11  ;;  %v2869_v3 = vadd.f32 %v2711_v39, %v2613_v23  ;;  %v2936_v23 = vld [vmem:[%s4600_s10 + $0x20] sm:$0xff] }
 0x41e   : > { %v2716_v49 = vpop.permute.xlu1 %2715  ;;  %v2460_v12 = vpop.permute.xlu0 %2459 }
 0x41f   : > { %v2614_v61 = vmul.f32 %v2460_v12, %v2390_v24  ;;  %v2615_v6 = vmul.f32 %v2460_v12, %v2391_v57  ;;  %v3029_v58 = vadd.f32 %v2965_v55, %v2869_v3  ;;  %v3028_v14 = vadd.f32 %v2964_v2, %v2868_v45 }
 0x420   : > { %v2972_v55 = vunpack.c.l.bf16 %v2936_v23  ;;  %v2973_v2 = vunpack.c.h.bf16 %v2936_v23 }
 0x421   : > { %v2870_v62 = vadd.f32 %v2716_v49, %v2614_v61  ;;  %v2871_v35 = vadd.f32 %v2716_v49, %v2615_v6  ;;  %v3093_v40 = vmax.f32 %v3029_v58, 0.0  ;;  %v3092_v43 = vmax.f32 %v3028_v14, 0.0 }
 0x422   : > { %v2470_v10 = vpop.permute.xlu1 %2469  ;;  %v2465_v36 = vpop.permute.xlu0 %2464 }
 0x423   : > { %v3031_v26 = vadd.f32 %v2967_v32, %v2871_v35  ;;  %v3030_v44 = vadd.f32 %v2966_v13, %v2870_v62  ;;  %v2618_v56 = vmul.f32 %v2470_v10, %v2394_v7  ;;  %v2619_v0 = vmul.f32 %v2470_v10, %v2395_v1 }
 0x424   : > { %v2616_v34 = vmul.f32 %v2465_v36, %v2392_v59  ;;  %v2617_v51 = vmul.f32 %v2465_v36, %v2393_v46  ;;  %v2939_v46 = vld [vmem:[%s4600_s10 + $0x38] sm:$0xff]  ;;  %v2401_v10 = vunpack.c.l.bf16 %v2331_v54 }
 0x425   : > { %v3095_v50 = vmax.f32 %v3031_v26, 0.0  ;;  %v3094_v31 = vmax.f32 %v3030_v44, 0.0  ;;  %v2978_v26 = vunpack.c.l.bf16 %v2939_v46 }
 0x426   : > { %v2726_v16 = vpop.permute.xlu1 %2725  ;;  %v2721_v47 = vpop.permute.xlu0 %2720 }
 0x427   : > { %v2874_v38 = vadd.f32 %v2726_v16, %v2618_v56  ;;  %v2875_v42 = vadd.f32 %v2726_v16, %v2619_v0  ;;  %v2872_v41 = vadd.f32 %v2721_v47, %v2616_v34  ;;  %v2873_v4 = vadd.f32 %v2721_v47, %v2617_v51 }
 0x428   : > { %v3157_v48 = vpack.c.bf16 %v3095_v50, %v3093_v40  ;;  %v3156_v60 = vpack.c.bf16 %v3094_v31, %v3092_v43 }
 0x429   : > { %v3034_v15 = vadd.f32 %v2970_v28, %v2874_v38  ;;  %v3035_v39 = vadd.f32 %v2971_v19, %v2875_v42  ;;  %v3032_v25 = vadd.f32 %v2968_v20, %v2872_v41  ;;  %v3033_v11 = vadd.f32 %v2969_v33, %v2873_v4  ;;  %v2938_v19 = vld [vmem:[%s4600_s10 + $0x30] sm:$0xff]  ;;  %v2332_v38 = vld [vmem:[%s5308_s17 + $0x40] sm:$0xff]  ;;  %v2333_v42 = vld [vmem:[%s5308_s17 + $0x48] sm:$0xff] }
 0x42a   : > { %3380 = vmatprep.subr.bf16.mxu0 %v3157_v48  ;;  %3931 = vmatprep.subr.bf16.mxu1 %v3157_v48  ;;  %v2480_v24 = vpop.permute.xlu1 %2479  ;;  %v2475_v57 = vpop.permute.xlu0 %2474  ;;  %v2976_v16 = vunpack.c.l.bf16 %v2938_v19  ;;  %v2977_v47 = vunpack.c.h.bf16 %v2938_v19 }
 0x42b   : > { %v3098_v52 = vmax.f32 %v3034_v15, 0.0  ;;  %v3099_v37 = vmax.f32 %v3035_v39, 0.0  ;;  %v3096_v45 = vmax.f32 %v3032_v25, 0.0  ;;  %v3097_v3 = vmax.f32 %v3033_v11, 0.0  ;;  %3381 = vmatpush1.bf16.msra.mxu0 %v3156_v60  ;;  %3947 = vmatpush1.bf16.msra.mxu1 %v3156_v60  ;;  %v2941_v60 = vld [vmem:[%s4600_s10 + $0x48] sm:$0xff] }
 0x42c   : > { %v2622_v49 = vmul.f32 %v2480_v24, %v2398_v63  ;;  %v2623_v12 = vmul.f32 %v2480_v24, %v2399_v9  ;;  %v2620_v61 = vmul.f32 %v2475_v57, %v2396_v17  ;;  %v2621_v6 = vmul.f32 %v2475_v57, %v2397_v21 }
 0x42d   : > { %v3159_v7 = vpack.c.bf16 %v3099_v37, %v3097_v3  ;;  %v3158_v1 = vpack.c.bf16 %v3098_v52, %v3096_v45  ;;  %v2979_v63 = vunpack.c.h.bf16 %v2939_v46  ;;  %v2406_v15 = vunpack.c.h.bf16 %v2332_v38 }
 0x42e   : > { %v2736_v32 = vpop.permute.xlu1 %2735  ;;  %v2731_v13 = vpop.permute.xlu0 %2730  ;;  %v2407_v39 = vunpack.c.h.bf16 %v2333_v42  ;;  %v2404_v25 = vunpack.c.l.bf16 %v2332_v38  ;;  %v2405_v11 = vunpack.c.l.bf16 %v2333_v42  ;;  %v2982_v45 = vunpack.c.l.bf16 %v2941_v60 }
 0x42f   : > { %v2878_v18 = vadd.f32 %v2736_v32, %v2622_v49  ;;  %v2879_v62 = vadd.f32 %v2736_v32, %v2623_v12  ;;  %v2876_v35 = vadd.f32 %v2731_v13, %v2620_v61  ;;  %v2877_v59 = vadd.f32 %v2731_v13, %v2621_v6  ;;  %3382 = vmatprep.subr.bf16.mxu0 %v3159_v7 }
 0x430   : > { %3932 = vmatprep.subr.bf16.mxu1 %v3159_v7  ;;  %3383 = vmatpush1.bf16.msra.mxu0 %v3158_v1  ;;  %v2983_v3 = vunpack.c.h.bf16 %v2941_v60 }
 0x431   : > { %v3038_v36 = vadd.f32 %v2974_v53, %v2878_v18  ;;  %v3039_v58 = vadd.f32 %v2975_v5, %v2879_v62  ;;  %v3036_v14 = vadd.f32 %v2972_v55, %v2876_v35  ;;  %v3037_v28 = vadd.f32 %v2973_v2, %v2877_v59  ;;  %3948 = vmatpush1.bf16.msra.mxu1 %v3158_v1  ;;  %v2940_v5 = vld [vmem:[%s4600_s10 + $0x40] sm:$0xff]  ;;  %v2334_v18 = vld [vmem:[%s5308_s17 + $0x50] sm:$0xff]  ;;  %v2335_v62 = vld [vmem:[%s5308_s17 + $0x58] sm:$0xff] }
 0x432   : > { %v2490_v20 = vpop.permute.xlu1 %2489  ;;  %v2485_v33 = vpop.permute.xlu0 %2484  ;;  %v2980_v7 = vunpack.c.l.bf16 %v2940_v5  ;;  %v2981_v1 = vunpack.c.h.bf16 %v2940_v5 }
 0x433   : > { %v3102_v9 = vmax.f32 %v3038_v36, 0.0  ;;  %v3103_v44 = vmax.f32 %v3039_v58, 0.0  ;;  %v3100_v56 = vmax.f32 %v3036_v14, 0.0  ;;  %v3101_v0 = vmax.f32 %v3037_v28, 0.0 }
 0x434   : > { %v2626_v34 = vmul.f32 %v2490_v20, %v2402_v8  ;;  %v2627_v51 = vmul.f32 %v2490_v20, %v2403_v22  ;;  %v2624_v40 = vmul.f32 %v2485_v33, %v2400_v30  ;;  %v2625_v50 = vmul.f32 %v2485_v33, %v2401_v10  ;;  %v2943_v10 = vld [vmem:[%s4600_s10 + $0x58] sm:$0xff] }
 0x435   : > { %v3161_v43 = vpack.c.bf16 %v3103_v44, %v3101_v0  ;;  %v3160_v31 = vpack.c.bf16 %v3102_v9, %v3100_v56  ;;  %v2410_v36 = vunpack.c.h.bf16 %v2334_v18  ;;  %v2411_v58 = vunpack.c.h.bf16 %v2335_v62 }
 0x436   : > { %v2746_v41 = vpop.permute.xlu1 %2745  ;;  %v2741_v4 = vpop.permute.xlu0 %2740  ;;  %v2408_v14 = vunpack.c.l.bf16 %v2334_v18  ;;  %v2409_v28 = vunpack.c.l.bf16 %v2335_v62  ;;  %v2986_v56 = vunpack.c.l.bf16 %v2943_v10  ;;  %v2987_v0 = vunpack.c.h.bf16 %v2943_v10 }
 0x437   : > { %v2882_v27 = vadd.f32 %v2746_v41, %v2626_v34  ;;  %v2883_v48 = vadd.f32 %v2746_v41, %v2627_v51  ;;  %v2880_v17 = vadd.f32 %v2741_v4, %v2624_v40  ;;  %v2881_v21 = vadd.f32 %v2741_v4, %v2625_v50  ;;  %3384 = vmatprep.subr.bf16.mxu0 %v3161_v43 }
 0x438   : > { %3933 = vmatprep.subr.bf16.mxu1 %v3161_v43  ;;  %3385 = vmatpush1.bf16.msra.mxu0 %v3160_v31 }
 0x439   : > { %v3042_v23 = vadd.f32 %v2978_v26, %v2882_v27  ;;  %v3043_v24 = vadd.f32 %v2979_v63, %v2883_v48  ;;  %v3040_v57 = vadd.f32 %v2976_v16, %v2880_v17  ;;  %v3041_v53 = vadd.f32 %v2977_v47, %v2881_v21  ;;  %3949 = vmatpush1.bf16.msra.mxu1 %v3160_v31  ;;  %v2942_v63 = vld [vmem:[%s4600_s10 + $0x50] sm:$0xff]  ;;  %v2336_v27 = vld [vmem:[%s5308_s17 + $0x60] sm:$0xff]  ;;  %v2337_v48 = vld [vmem:[%s5308_s17 + $0x68] sm:$0xff] }
 0x43a   : > { %v2500_v52 = vpop.permute.xlu1 %2499  ;;  %v2495_v37 = vpop.permute.xlu0 %2494  ;;  %v2984_v43 = vunpack.c.l.bf16 %v2942_v63  ;;  %v2985_v31 = vunpack.c.h.bf16 %v2942_v63 }
 0x43b   : > { %v3106_v49 = vmax.f32 %v3042_v23, 0.0  ;;  %v3107_v12 = vmax.f32 %v3043_v24, 0.0  ;;  %v3104_v55 = vmax.f32 %v3040_v57, 0.0  ;;  %v3105_v2 = vmax.f32 %v3041_v53, 0.0 }
 0x43c   : > { %v2630_v61 = vmul.f32 %v2500_v52, %v2406_v15  ;;  %v2631_v6 = vmul.f32 %v2500_v52, %v2407_v39  ;;  %v2628_v29 = vmul.f32 %v2495_v37, %v2404_v25  ;;  %v2629_v54 = vmul.f32 %v2495_v37, %v2405_v11  ;;  %v2945_v11 = vld [vmem:[%s4600_s10 + $0x68] sm:$0xff] }
 0x43d   : > { %v3163_v32 = vpack.c.bf16 %v3107_v12, %v3105_v2  ;;  %v3162_v13 = vpack.c.bf16 %v3106_v49, %v3104_v55  ;;  %v2414_v23 = vunpack.c.h.bf16 %v2336_v27  ;;  %v2415_v24 = vunpack.c.h.bf16 %v2337_v48 }
 0x43e   : > { %v2756_v35 = vpop.permute.xlu1 %2755  ;;  %v2751_v59 = vpop.permute.xlu0 %2750  ;;  %v2412_v57 = vunpack.c.l.bf16 %v2336_v27  ;;  %v2413_v53 = vunpack.c.l.bf16 %v2337_v48  ;;  %v2990_v55 = vunpack.c.l.bf16 %v2945_v11  ;;  %v2991_v2 = vunpack.c.h.bf16 %v2945_v11 }
 0x43f   : > { %v2886_v46 = vadd.f32 %v2756_v35, %v2630_v61  ;;  %v2887_v8 = vadd.f32 %v2756_v35, %v2631_v6  ;;  %v2884_v22 = vadd.f32 %v2751_v59, %v2628_v29  ;;  %v2885_v30 = vadd.f32 %v2751_v59, %v2629_v54  ;;  %3386 = vmatprep.subr.bf16.mxu0 %v3163_v32 }
 0x440   : > { %3934 = vmatprep.subr.bf16.mxu1 %v3163_v32  ;;  %3387 = vmatpush1.bf16.msra.mxu0 %v3162_v13 }
 0x441   : > { %v3046_v19 = vadd.f32 %v2982_v45, %v2886_v46  ;;  %v3047_v20 = vadd.f32 %v2983_v3, %v2887_v8  ;;  %v3044_v33 = vadd.f32 %v2980_v7, %v2884_v22  ;;  %v3045_v26 = vadd.f32 %v2981_v1, %v2885_v30  ;;  %3950 = vmatpush1.bf16.msra.mxu1 %v3162_v13  ;;  %v2944_v3 = vld [vmem:[%s4600_s10 + $0x60] sm:$0xff]  ;;  %v2338_v46 = vld [vmem:[%s5308_s17 + $0x70] sm:$0xff]  ;;  %v2339_v8 = vld [vmem:[%s5308_s17 + $0x78] sm:$0xff] }
 0x442   : > { %v2510_v9 = vpop.permute.xlu1 %2509  ;;  %v2505_v44 = vpop.permute.xlu0 %2504  ;;  %v2988_v32 = vunpack.c.l.bf16 %v2944_v3  ;;  %v2989_v13 = vunpack.c.h.bf16 %v2944_v3 }
 0x443   : > { %v3110_v34 = vmax.f32 %v3046_v19, 0.0  ;;  %v3111_v51 = vmax.f32 %v3047_v20, 0.0  ;;  %v3108_v16 = vmax.f32 %v3044_v33, 0.0  ;;  %v3109_v47 = vmax.f32 %v3045_v26, 0.0 }
 0x444   : > { %v2634_v40 = vmul.f32 %v2510_v9, %v2410_v36  ;;  %v2635_v50 = vmul.f32 %v2510_v9, %v2411_v58  ;;  %v2632_v38 = vmul.f32 %v2505_v44, %v2408_v14  ;;  %v2633_v42 = vmul.f32 %v2505_v44, %v2409_v28  ;;  %v2947_v28 = vld [vmem:[%s4600_s10 + $0x78] sm:$0xff] }
 0x445   : > { %v3165_v41 = vpack.c.bf16 %v3111_v51, %v3109_v47  ;;  %v3164_v4 = vpack.c.bf16 %v3110_v34, %v3108_v16  ;;  %v2418_v19 = vunpack.c.h.bf16 %v2338_v46  ;;  %v2419_v20 = vunpack.c.h.bf16 %v2339_v8 }
 0x446   : > { %v2766_v17 = vpop.permute.xlu1 %2765  ;;  %v2761_v21 = vpop.permute.xlu0 %2760  ;;  %v2416_v33 = vunpack.c.l.bf16 %v2338_v46  ;;  %v2417_v26 = vunpack.c.l.bf16 %v2339_v8  ;;  %v2994_v16 = vunpack.c.l.bf16 %v2947_v28  ;;  %v2995_v47 = vunpack.c.h.bf16 %v2947_v28 }
 0x447   : > { %v2890_v60 = vadd.f32 %v2766_v17, %v2634_v40  ;;  %v2891_v15 = vadd.f32 %v2766_v17, %v2635_v50  ;;  %v2888_v39 = vadd.f32 %v2761_v21, %v2632_v38  ;;  %v2889_v25 = vadd.f32 %v2761_v21, %v2633_v42  ;;  %3388 = vmatprep.subr.bf16.mxu0 %v3165_v41 }
 0x448   : > { %3935 = vmatprep.subr.bf16.mxu1 %v3165_v41  ;;  %3389 = vmatpush1.bf16.msra.mxu0 %v3164_v4 }
 0x449   : > { %v3050_v5 = vadd.f32 %v2986_v56, %v2890_v60  ;;  %v3051_v52 = vadd.f32 %v2987_v0, %v2891_v15  ;;  %v3048_v37 = vadd.f32 %v2984_v43, %v2888_v39  ;;  %v3049_v45 = vadd.f32 %v2985_v31, %v2889_v25  ;;  %3951 = vmatpush1.bf16.msra.mxu1 %v3164_v4  ;;  %v2946_v0 = vld [vmem:[%s4600_s10 + $0x70] sm:$0xff]  ;;  %v2340_v60 = vld [vmem:[%s5308_s17 + $0x80] sm:$0xff]  ;;  %v2341_v15 = vld [vmem:[%s5308_s17 + $0x88] sm:$0xff] }
 0x44a   : > { %v2520_v49 = vpop.permute.xlu1 %2519  ;;  %v2515_v12 = vpop.permute.xlu0 %2514  ;;  %v2992_v41 = vunpack.c.l.bf16 %v2946_v0  ;;  %v2993_v4 = vunpack.c.h.bf16 %v2946_v0 }
 0x44b   : > { %v3114_v61 = vmax.f32 %v3050_v5, 0.0  ;;  %v3115_v6 = vmax.f32 %v3051_v52, 0.0  ;;  %v3112_v7 = vmax.f32 %v3048_v37, 0.0  ;;  %v3113_v1 = vmax.f32 %v3049_v45, 0.0 }
 0x44c   : > { %v2638_v29 = vmul.f32 %v2520_v49, %v2414_v23  ;;  %v2639_v54 = vmul.f32 %v2520_v49, %v2415_v24  ;;  %v2636_v18 = vmul.f32 %v2515_v12, %v2412_v57  ;;  %v2637_v62 = vmul.f32 %v2515_v12, %v2413_v53  ;;  %v2949_v53 = vld [vmem:[%s4600_s10 + $0x88] sm:$0xff] }
 0x44d   : > { %v3167_v35 = vpack.c.bf16 %v3115_v6, %v3113_v1  ;;  %v3166_v59 = vpack.c.bf16 %v3114_v61, %v3112_v7  ;;  %v2422_v5 = vunpack.c.h.bf16 %v2340_v60  ;;  %v2423_v52 = vunpack.c.h.bf16 %v2341_v15 }
 0x44e   : > { %v2776_v22 = vpop.permute.xlu1 %2775  ;;  %v2771_v30 = vpop.permute.xlu0 %2770  ;;  %v2420_v37 = vunpack.c.l.bf16 %v2340_v60  ;;  %v2421_v45 = vunpack.c.l.bf16 %v2341_v15  ;;  %v2998_v7 = vunpack.c.l.bf16 %v2949_v53  ;;  %v2999_v1 = vunpack.c.h.bf16 %v2949_v53 }
 0x44f   : > { %v2894_v10 = vadd.f32 %v2776_v22, %v2638_v29  ;;  %v2895_v36 = vadd.f32 %v2776_v22, %v2639_v54  ;;  %v2892_v58 = vadd.f32 %v2771_v30, %v2636_v18  ;;  %v2893_v14 = vadd.f32 %v2771_v30, %v2637_v62  ;;  %3390 = vmatprep.subr.bf16.mxu0 %v3167_v35 }
 0x450   : > { %3936 = vmatprep.subr.bf16.mxu1 %v3167_v35  ;;  %3391 = vmatpush1.bf16.msra.mxu0 %v3166_v59 }
 0x451   : > { %v3054_v63 = vadd.f32 %v2990_v55, %v2894_v10  ;;  %v3055_v9 = vadd.f32 %v2991_v2, %v2895_v36  ;;  %v3052_v44 = vadd.f32 %v2988_v32, %v2892_v58  ;;  %v3053_v56 = vadd.f32 %v2989_v13, %v2893_v14  ;;  %3952 = vmatpush1.bf16.msra.mxu1 %v3166_v59  ;;  %v2948_v2 = vld [vmem:[%s4600_s10 + $0x80] sm:$0xff]  ;;  %v2342_v10 = vld [vmem:[%s5308_s17 + $0x90] sm:$0xff]  ;;  %v2343_v36 = vld [vmem:[%s5308_s17 + $0x98] sm:$0xff] }
 0x452   : > { %v2530_v34 = vpop.permute.xlu1 %2529  ;;  %v2525_v51 = vpop.permute.xlu0 %2524  ;;  %v2996_v35 = vunpack.c.l.bf16 %v2948_v2  ;;  %v2997_v59 = vunpack.c.h.bf16 %v2948_v2 }
 0x453   : > { %v3118_v40 = vmax.f32 %v3054_v63, 0.0  ;;  %v3119_v50 = vmax.f32 %v3055_v9, 0.0  ;;  %v3116_v43 = vmax.f32 %v3052_v44, 0.0  ;;  %v3117_v31 = vmax.f32 %v3053_v56, 0.0 }
 0x454   : > { %v2642_v38 = vmul.f32 %v2530_v34, %v2418_v19  ;;  %v2643_v42 = vmul.f32 %v2530_v34, %v2419_v20  ;;  %v2640_v27 = vmul.f32 %v2525_v51, %v2416_v33  ;;  %v2641_v48 = vmul.f32 %v2525_v51, %v2417_v26  ;;  %v2951_v26 = vld [vmem:[%s4600_s10 + $0x98] sm:$0xff] }
 0x455   : > { %v3169_v17 = vpack.c.bf16 %v3119_v50, %v3117_v31  ;;  %v3168_v21 = vpack.c.bf16 %v3118_v40, %v3116_v43  ;;  %v2426_v63 = vunpack.c.h.bf16 %v2342_v10  ;;  %v2427_v9 = vunpack.c.h.bf16 %v2343_v36 }
 0x456   : > { %v2786_v39 = vpop.permute.xlu1 %2785  ;;  %v2781_v25 = vpop.permute.xlu0 %2780  ;;  %v2424_v44 = vunpack.c.l.bf16 %v2342_v10  ;;  %v2425_v56 = vunpack.c.l.bf16 %v2343_v36  ;;  %v3002_v43 = vunpack.c.l.bf16 %v2951_v26  ;;  %v3003_v31 = vunpack.c.h.bf16 %v2951_v26 }
 0x457   : > { %v2898_v11 = vadd.f32 %v2786_v39, %v2642_v38  ;;  %v2899_v23 = vadd.f32 %v2786_v39, %v2643_v42  ;;  %v2896_v24 = vadd.f32 %v2781_v25, %v2640_v27  ;;  %v2897_v57 = vadd.f32 %v2781_v25, %v2641_v48  ;;  %3392 = vmatprep.subr.bf16.mxu0 %v3169_v17 }
 0x458   : > { %3937 = vmatprep.subr.bf16.mxu1 %v3169_v17  ;;  %3393 = vmatpush1.bf16.msra.mxu0 %v3168_v21 }
 0x459   : > { %v3058_v3 = vadd.f32 %v2994_v16, %v2898_v11  ;;  %v3059_v49 = vadd.f32 %v2995_v47, %v2899_v23  ;;  %v3056_v12 = vadd.f32 %v2992_v41, %v2896_v24  ;;  %v3057_v55 = vadd.f32 %v2993_v4, %v2897_v57  ;;  %3953 = vmatpush1.bf16.msra.mxu1 %v3168_v21  ;;  %v2950_v47 = vld [vmem:[%s4600_s10 + $0x90] sm:$0xff]  ;;  %v2344_v11 = vld [vmem:[%s5308_s17 + $0xa0] sm:$0xff]  ;;  %v2345_v23 = vld [vmem:[%s5308_s17 + $0xa8] sm:$0xff] }
 0x45a   : > { %v2540_v61 = vpop.permute.xlu1 %2539  ;;  %v2535_v6 = vpop.permute.xlu0 %2534  ;;  %v3000_v17 = vunpack.c.l.bf16 %v2950_v47  ;;  %v3001_v21 = vunpack.c.h.bf16 %v2950_v47 }
 0x45b   : > { %v3122_v29 = vmax.f32 %v3058_v3, 0.0  ;;  %v3123_v54 = vmax.f32 %v3059_v49, 0.0  ;;  %v3120_v32 = vmax.f32 %v3056_v12, 0.0  ;;  %v3121_v13 = vmax.f32 %v3057_v55, 0.0 }
 0x45c   : > { %v2646_v18 = vmul.f32 %v2540_v61, %v2422_v5  ;;  %v2647_v62 = vmul.f32 %v2540_v61, %v2423_v52  ;;  %v2644_v46 = vmul.f32 %v2535_v6, %v2420_v37  ;;  %v2645_v8 = vmul.f32 %v2535_v6, %v2421_v45  ;;  %v2953_v45 = vld [vmem:[%s4600_s10 + $0xa8] sm:$0xff] }
 0x45d   : > { %v3171_v22 = vpack.c.bf16 %v3123_v54, %v3121_v13  ;;  %v3170_v30 = vpack.c.bf16 %v3122_v29, %v3120_v32  ;;  %v2430_v3 = vunpack.c.h.bf16 %v2344_v11  ;;  %v2431_v49 = vunpack.c.h.bf16 %v2345_v23 }
 0x45e   : > { %v2796_v58 = vpop.permute.xlu1 %2795  ;;  %v2791_v14 = vpop.permute.xlu0 %2790  ;;  %v2428_v12 = vunpack.c.l.bf16 %v2344_v11  ;;  %v2429_v55 = vunpack.c.l.bf16 %v2345_v23  ;;  %v3006_v32 = vunpack.c.l.bf16 %v2953_v45  ;;  %v3007_v13 = vunpack.c.h.bf16 %v2953_v45 }
 0x45f   : > { %v2902_v28 = vadd.f32 %v2796_v58, %v2646_v18  ;;  %v2903_v19 = vadd.f32 %v2796_v58, %v2647_v62  ;;  %v2900_v20 = vadd.f32 %v2791_v14, %v2644_v46  ;;  %v2901_v33 = vadd.f32 %v2791_v14, %v2645_v8  ;;  %3394 = vmatprep.subr.bf16.mxu0 %v3171_v22 }
 0x460   : > { %3938 = vmatprep.subr.bf16.mxu1 %v3171_v22  ;;  %3395 = vmatpush1.bf16.msra.mxu0 %v3170_v30 }
 0x461   : > { %v3062_v0 = vadd.f32 %v2998_v7, %v2902_v28  ;;  %v3063_v34 = vadd.f32 %v2999_v1, %v2903_v19  ;;  %v3060_v51 = vadd.f32 %v2996_v35, %v2900_v20  ;;  %v3061_v16 = vadd.f32 %v2997_v59, %v2901_v33  ;;  %3954 = vmatpush1.bf16.msra.mxu1 %v3170_v30  ;;  %v2952_v1 = vld [vmem:[%s4600_s10 + $0xa0] sm:$0xff]  ;;  %v2346_v28 = vld [vmem:[%s5308_s17 + $0xb0] sm:$0xff]  ;;  %v2347_v19 = vld [vmem:[%s5308_s17 + $0xb8] sm:$0xff] }
 0x462   : > { %v2550_v40 = vpop.permute.xlu1 %2549  ;;  %v2545_v50 = vpop.permute.xlu0 %2544  ;;  %v3004_v22 = vunpack.c.l.bf16 %v2952_v1  ;;  %v3005_v30 = vunpack.c.h.bf16 %v2952_v1 }
 0x463   : > { %v3126_v38 = vmax.f32 %v3062_v0, 0.0  ;;  %v3127_v42 = vmax.f32 %v3063_v34, 0.0  ;;  %v3124_v41 = vmax.f32 %v3060_v51, 0.0  ;;  %v3125_v4 = vmax.f32 %v3061_v16, 0.0 }
 0x464   : > { %v2650_v27 = vmul.f32 %v2550_v40, %v2426_v63  ;;  %v2651_v48 = vmul.f32 %v2550_v40, %v2427_v9  ;;  %v2648_v60 = vmul.f32 %v2545_v50, %v2424_v44  ;;  %v2649_v15 = vmul.f32 %v2545_v50, %v2425_v56  ;;  %v2955_v56 = vld [vmem:[%s4600_s10 + $0xb8] sm:$0xff] }
 0x465   : > { %v3173_v39 = vpack.c.bf16 %v3127_v42, %v3125_v4  ;;  %v3172_v25 = vpack.c.bf16 %v3126_v38, %v3124_v41  ;;  %v2434_v0 = vunpack.c.h.bf16 %v2346_v28  ;;  %v2435_v34 = vunpack.c.h.bf16 %v2347_v19 }
 0x466   : > { %v2806_v24 = vpop.permute.xlu1 %2805  ;;  %v2801_v57 = vpop.permute.xlu0 %2800  ;;  %v2432_v51 = vunpack.c.l.bf16 %v2346_v28  ;;  %v2433_v16 = vunpack.c.l.bf16 %v2347_v19  ;;  %v3010_v41 = vunpack.c.l.bf16 %v2955_v56  ;;  %v3011_v4 = vunpack.c.h.bf16 %v2955_v56 }
 0x467   : > { %v2906_v53 = vadd.f32 %v2806_v24, %v2650_v27  ;;  %v2907_v5 = vadd.f32 %v2806_v24, %v2651_v48  ;;  %v2904_v52 = vadd.f32 %v2801_v57, %v2648_v60  ;;  %v2905_v37 = vadd.f32 %v2801_v57, %v2649_v15  ;;  %3396 = vmatprep.subr.bf16.mxu0 %v3173_v39 }
 0x468   : > { %3939 = vmatprep.subr.bf16.mxu1 %v3173_v39  ;;  %3397 = vmatpush1.bf16.msra.mxu0 %v3172_v25 }
 0x469   : > { %v3066_v2 = vadd.f32 %v3002_v43, %v2906_v53  ;;  %v3067_v61 = vadd.f32 %v3003_v31, %v2907_v5  ;;  %v3064_v6 = vadd.f32 %v3000_v17, %v2904_v52  ;;  %v3065_v7 = vadd.f32 %v3001_v21, %v2905_v37  ;;  %3955 = vmatpush1.bf16.msra.mxu1 %v3172_v25  ;;  %v2954_v31 = vld [vmem:[%s4600_s10 + $0xb0] sm:$0xff]  ;;  %v2348_v53 = vld [vmem:[%s5308_s17 + $0xc0] sm:$0xff]  ;;  %v2349_v5 = vld [vmem:[%s5308_s17 + $0xc8] sm:$0xff] }
 0x46a   : > { %v2560_v29 = vpop.permute.xlu1 %2559  ;;  %v2555_v54 = vpop.permute.xlu0 %2554  ;;  %v3008_v39 = vunpack.c.l.bf16 %v2954_v31  ;;  %v3009_v25 = vunpack.c.h.bf16 %v2954_v31 }
 0x46b   : > { %v3130_v18 = vmax.f32 %v3066_v2, 0.0  ;;  %v3131_v62 = vmax.f32 %v3067_v61, 0.0  ;;  %v3128_v35 = vmax.f32 %v3064_v6, 0.0  ;;  %v3129_v59 = vmax.f32 %v3065_v7, 0.0 }
 0x46c   : > { %v2654_v46 = vmul.f32 %v2560_v29, %v2430_v3  ;;  %v2655_v8 = vmul.f32 %v2560_v29, %v2431_v49  ;;  %v2652_v10 = vmul.f32 %v2555_v54, %v2428_v12  ;;  %v2653_v36 = vmul.f32 %v2555_v54, %v2429_v55  ;;  %v2957_v55 = vld [vmem:[%s4600_s10 + $0xc8] sm:$0xff] }
 0x46d   : > { %v3175_v58 = vpack.c.bf16 %v3131_v62, %v3129_v59  ;;  %v3174_v14 = vpack.c.bf16 %v3130_v18, %v3128_v35  ;;  %v2438_v2 = vunpack.c.h.bf16 %v2348_v53  ;;  %v2439_v61 = vunpack.c.h.bf16 %v2349_v5 }
 0x46e   : > { %v2816_v20 = vpop.permute.xlu1 %2815  ;;  %v2811_v33 = vpop.permute.xlu0 %2810  ;;  %v2436_v6 = vunpack.c.l.bf16 %v2348_v53  ;;  %v2437_v7 = vunpack.c.l.bf16 %v2349_v5  ;;  %v3014_v35 = vunpack.c.l.bf16 %v2957_v55  ;;  %v3015_v59 = vunpack.c.h.bf16 %v2957_v55 }
 0x46f   : > { %v2910_v26 = vadd.f32 %v2816_v20, %v2654_v46  ;;  %v2911_v63 = vadd.f32 %v2816_v20, %v2655_v8  ;;  %v2908_v9 = vadd.f32 %v2811_v33, %v2652_v10  ;;  %v2909_v44 = vadd.f32 %v2811_v33, %v2653_v36  ;;  %3398 = vmatprep.subr.bf16.mxu0 %v3175_v58 }
 0x470   : > { %3940 = vmatprep.subr.bf16.mxu1 %v3175_v58  ;;  %3399 = vmatpush1.bf16.msra.mxu0 %v3174_v14 }
 0x471   : > { %v3070_v47 = vadd.f32 %v3006_v32, %v2910_v26  ;;  %v3071_v40 = vadd.f32 %v3007_v13, %v2911_v63  ;;  %v3068_v50 = vadd.f32 %v3004_v22, %v2908_v9  ;;  %v3069_v43 = vadd.f32 %v3005_v30, %v2909_v44  ;;  %3956 = vmatpush1.bf16.msra.mxu1 %v3174_v14  ;;  %v2956_v13 = vld [vmem:[%s4600_s10 + $0xc0] sm:$0xff]  ;;  %v2350_v26 = vld [vmem:[%s5308_s17 + $0xd0] sm:$0xff]  ;;  %v2351_v63 = vld [vmem:[%s5308_s17 + $0xd8] sm:$0xff] }
 0x472   : > { %v2570_v38 = vpop.permute.xlu1 %2569  ;;  %v2565_v42 = vpop.permute.xlu0 %2564  ;;  %v3012_v58 = vunpack.c.l.bf16 %v2956_v13  ;;  %v3013_v14 = vunpack.c.h.bf16 %v2956_v13 }
 0x473   : > { %v3134_v27 = vmax.f32 %v3070_v47, 0.0  ;;  %v3135_v48 = vmax.f32 %v3071_v40, 0.0  ;;  %v3132_v17 = vmax.f32 %v3068_v50, 0.0  ;;  %v3133_v21 = vmax.f32 %v3069_v43, 0.0 }
 0x474   : > { %v2658_v60 = vmul.f32 %v2570_v38, %v2434_v0  ;;  %v2659_v15 = vmul.f32 %v2570_v38, %v2435_v34  ;;  %v2656_v11 = vmul.f32 %v2565_v42, %v2432_v51  ;;  %v2657_v23 = vmul.f32 %v2565_v42, %v2433_v16  ;;  %v2959_v16 = vld [vmem:[%s4600_s10 + $0xd8] sm:$0xff] }
 0x475   : > { %v3177_v24 = vpack.c.bf16 %v3135_v48, %v3133_v21  ;;  %v3176_v57 = vpack.c.bf16 %v3134_v27, %v3132_v17  ;;  %v2442_v47 = vunpack.c.h.bf16 %v2350_v26  ;;  %v2443_v40 = vunpack.c.h.bf16 %v2351_v63 }
 0x476   : > { %v2826_v52 = vpop.permute.xlu1 %2825  ;;  %v2821_v37 = vpop.permute.xlu0 %2820  ;;  %v2440_v50 = vunpack.c.l.bf16 %v2350_v26  ;;  %v2441_v43 = vunpack.c.l.bf16 %v2351_v63  ;;  %v3018_v17 = vunpack.c.l.bf16 %v2959_v16  ;;  %v3019_v21 = vunpack.c.h.bf16 %v2959_v16 }
 0x477   : > { %v2914_v45 = vadd.f32 %v2826_v52, %v2658_v60  ;;  %v2915_v3 = vadd.f32 %v2826_v52, %v2659_v15  ;;  %v2912_v49 = vadd.f32 %v2821_v37, %v2656_v11  ;;  %v2913_v12 = vadd.f32 %v2821_v37, %v2657_v23  ;;  %3400 = vmatprep.subr.bf16.mxu0 %v3177_v24 }
 0x478   : > { %3941 = vmatprep.subr.bf16.mxu1 %v3177_v24  ;;  %3401 = vmatpush1.bf16.msra.mxu0 %v3176_v57 }
 0x479   : > { %v3074_v1 = vadd.f32 %v3010_v41, %v2914_v45  ;;  %v3075_v29 = vadd.f32 %v3011_v4, %v2915_v3  ;;  %v3072_v54 = vadd.f32 %v3008_v39, %v2912_v49  ;;  %v3073_v32 = vadd.f32 %v3009_v25, %v2913_v12  ;;  %3957 = vmatpush1.bf16.msra.mxu1 %v3176_v57  ;;  %v2958_v4 = vld [vmem:[%s4600_s10 + $0xd0] sm:$0xff]  ;;  %v2352_v45 = vld [vmem:[%s5308_s17 + $0xe0] sm:$0xff]  ;;  %v2353_v3 = vld [vmem:[%s5308_s17 + $0xe8] sm:$0xff] }
 0x47a   : > { %v2580_v18 = vpop.permute.xlu1 %2579  ;;  %v2575_v62 = vpop.permute.xlu0 %2574  ;;  %v3016_v24 = vunpack.c.l.bf16 %v2958_v4  ;;  %v3017_v57 = vunpack.c.h.bf16 %v2958_v4 }
 0x47b   : > { %v3138_v46 = vmax.f32 %v3074_v1, 0.0  ;;  %v3139_v8 = vmax.f32 %v3075_v29, 0.0  ;;  %v3136_v22 = vmax.f32 %v3072_v54, 0.0  ;;  %v3137_v30 = vmax.f32 %v3073_v32, 0.0 }
 0x47c   : > { %v2662_v10 = vmul.f32 %v2580_v18, %v2438_v2  ;;  %v2663_v36 = vmul.f32 %v2580_v18, %v2439_v61  ;;  %v2660_v28 = vmul.f32 %v2575_v62, %v2436_v6  ;;  %v2661_v19 = vmul.f32 %v2575_v62, %v2437_v7  ;;  %v2961_v7 = vld [vmem:[%s4600_s10 + $0xe8] sm:$0xff] }
 0x47d   : > { %v3179_v20 = vpack.c.bf16 %v3139_v8, %v3137_v30  ;;  %v3178_v33 = vpack.c.bf16 %v3138_v46, %v3136_v22  ;;  %v2446_v1 = vunpack.c.h.bf16 %v2352_v45  ;;  %v2447_v29 = vunpack.c.h.bf16 %v2353_v3 }
 0x47e   : > { %v2836_v9 = vpop.permute.xlu1 %2835  ;;  %v2831_v44 = vpop.permute.xlu0 %2830  ;;  %v2444_v54 = vunpack.c.l.bf16 %v2352_v45  ;;  %v2445_v32 = vunpack.c.l.bf16 %v2353_v3  ;;  %v3022_v22 = vunpack.c.l.bf16 %v2961_v7  ;;  %v3023_v30 = vunpack.c.h.bf16 %v2961_v7 }
 0x47f   : > { %v2918_v56 = vadd.f32 %v2836_v9, %v2662_v10  ;;  %v2919_v0 = vadd.f32 %v2836_v9, %v2663_v36  ;;  %v2916_v34 = vadd.f32 %v2831_v44, %v2660_v28  ;;  %v2917_v51 = vadd.f32 %v2831_v44, %v2661_v19  ;;  %3402 = vmatprep.subr.bf16.mxu0 %v3179_v20 }
 0x480   : > { %3942 = vmatprep.subr.bf16.mxu1 %v3179_v20  ;;  %3403 = vmatpush1.bf16.msra.mxu0 %v3178_v33 }
 0x481   : > { %v3078_v31 = vadd.f32 %v3014_v35, %v2918_v56  ;;  %v3079_v38 = vadd.f32 %v3015_v59, %v2919_v0  ;;  %v3076_v42 = vadd.f32 %v3012_v58, %v2916_v34  ;;  %v3077_v41 = vadd.f32 %v3013_v14, %v2917_v51  ;;  %3958 = vmatpush1.bf16.msra.mxu1 %v3178_v33  ;;  %v2960_v59 = vld [vmem:[%s4600_s10 + $0xe0] sm:$0xff]  ;;  %v2354_v56 = vld [vmem:[%s5308_s17 + $0xf0] sm:$0xff]  ;;  %v2355_v0 = vld [vmem:[%s5308_s17 + $0xf8] sm:$0xff] }
 0x482   : > { %v2590_v27 = vpop.permute.xlu1 %2589  ;;  %v2585_v48 = vpop.permute.xlu0 %2584  ;;  %v3020_v20 = vunpack.c.l.bf16 %v2960_v59  ;;  %v3021_v33 = vunpack.c.h.bf16 %v2960_v59 }
 0x483   : > { %v3142_v60 = vmax.f32 %v3078_v31, 0.0  ;;  %v3143_v15 = vmax.f32 %v3079_v38, 0.0  ;;  %v3140_v39 = vmax.f32 %v3076_v42, 0.0  ;;  %v3141_v25 = vmax.f32 %v3077_v41, 0.0 }
 0x484   : > { %v2666_v11 = vmul.f32 %v2590_v27, %v2442_v47  ;;  %v2667_v23 = vmul.f32 %v2590_v27, %v2443_v40  ;;  %v2664_v53 = vmul.f32 %v2585_v48, %v2440_v50  ;;  %v2665_v5 = vmul.f32 %v2585_v48, %v2441_v43  ;;  %v2963_v43 = vld [vmem:[%s4600_s10 + $0xf8] sm:$0xff] }
 0x485   : > { %v3181_v52 = vpack.c.bf16 %v3143_v15, %v3141_v25  ;;  %v3180_v37 = vpack.c.bf16 %v3142_v60, %v3140_v39  ;;  %v2450_v31 = vunpack.c.h.bf16 %v2354_v56  ;;  %v2451_v38 = vunpack.c.h.bf16 %v2355_v0 }
 0x486   : > { %v2846_v49 = vpop.permute.xlu1 %2845  ;;  %v2841_v12 = vpop.permute.xlu0 %2840  ;;  %v2448_v42 = vunpack.c.l.bf16 %v2354_v56  ;;  %v2449_v41 = vunpack.c.l.bf16 %v2355_v0  ;;  %v3026_v39 = vunpack.c.l.bf16 %v2963_v43  ;;  %v3027_v25 = vunpack.c.h.bf16 %v2963_v43  ;;  %v4202_v56 = vld [vmem:[#allocation10 + $0x44] ss:$8 sps:$4 sm:$0xff]  }
 0x487   : > { %v2922_v55 = vadd.f32 %v2846_v49, %v2666_v11  ;;  %v2923_v2 = vadd.f32 %v2846_v49, %v2667_v23  ;;  %v2920_v61 = vadd.f32 %v2841_v12, %v2664_v53  ;;  %v2921_v6 = vadd.f32 %v2841_v12, %v2665_v5  ;;  %3404 = vmatprep.subr.bf16.mxu0 %v3181_v52  ;;  %v4204_v0 = vld [vmem:[#allocation10 + $0xc4] ss:$8 sps:$4 sm:$0xff]  }
 0x488   : > { %3943 = vmatprep.subr.bf16.mxu1 %v3181_v52  ;;  %3405 = vmatpush1.bf16.msra.mxu0 %v3180_v37  ;;  %v4214_v43 = vld [vmem:[#allocation10 + $0x64] ss:$8 sps:$4 sm:$0xff]  }
 0x489   : > { %v3082_v13 = vadd.f32 %v3018_v17, %v2922_v55  ;;  %v3083_v18 = vadd.f32 %v3019_v21, %v2923_v2  ;;  %v3080_v62 = vadd.f32 %v3016_v24, %v2920_v61  ;;  %v3081_v35 = vadd.f32 %v3017_v57, %v2921_v6  ;;  %3959 = vmatpush1.bf16.msra.mxu1 %v3180_v37  ;;  %v2962_v21 = vld [vmem:[%s4600_s10 + $0xf0] sm:$0xff] }
 0x48a   : > { %v2600_v46 = vpop.permute.xlu1 %2599  ;;  %v2595_v8 = vpop.permute.xlu0 %2594  ;;  %v3024_v52 = vunpack.c.l.bf16 %v2962_v21  ;;  %v3025_v37 = vunpack.c.h.bf16 %v2962_v21 }
 0x48b   : > { %v3146_v10 = vmax.f32 %v3082_v13, 0.0  ;;  %v3147_v36 = vmax.f32 %v3083_v18, 0.0  ;;  %v3144_v58 = vmax.f32 %v3080_v62, 0.0  ;;  %v3145_v14 = vmax.f32 %v3081_v35, 0.0 }
 0x48c   : > { %v2670_v28 = vmul.f32 %v2600_v46, %v2446_v1  ;;  %v2671_v19 = vmul.f32 %v2600_v46, %v2447_v29  ;;  %v2668_v26 = vmul.f32 %v2595_v8, %v2444_v54  ;;  %v2669_v63 = vmul.f32 %v2595_v8, %v2445_v32 }
 0x48d   : > { %v3183_v9 = vpack.c.bf16 %v3147_v36, %v3145_v14  ;;  %v3182_v44 = vpack.c.bf16 %v3146_v10, %v3144_v58  ;;  %v4184_v10 = vld [vmem:[#allocation10 + $0x14] ss:$8 sps:$4 sm:$0xff]   ;;  %v4188_v58 = vld [vmem:[#allocation10 + $0x10] ss:$8 sps:$4 sm:$0xff]  }
 0x48e   : > { %v2856_v34 = vpop.permute.xlu1 %2855  ;;  %v2851_v51 = vpop.permute.xlu0 %2850  ;;  %v4186_v36 = vld [vmem:[#allocation10 + $0x94] ss:$8 sps:$4 sm:$0xff]   ;;  %v4189_v14 = vld [vmem:[#allocation10 + $0x90] ss:$8 sps:$4 sm:$0xff]  }
 0x48f   : > { %v2926_v16 = vadd.f32 %v2856_v34, %v2670_v28  ;;  %v2927_v47 = vadd.f32 %v2856_v34, %v2671_v19  ;;  %v2924_v40 = vadd.f32 %v2851_v51, %v2668_v26  ;;  %v2925_v50 = vadd.f32 %v2851_v51, %v2669_v63  ;;  %3406 = vmatprep.subr.bf16.mxu0 %v3183_v9  ;;  %v4190_v28 = vld [vmem:[#allocation10 + $0x24] ss:$8 sps:$4 sm:$0xff]   ;;  %v4196_v26 = vld [vmem:[#allocation10 + $0x34] ss:$8 sps:$4 sm:$0xff]   ;;  %v4206_v34 = vld [vmem:[#allocation10 + $0x40] ss:$8 sps:$4 sm:$0xff]  }
 0x490   : > { %3944 = vmatprep.subr.bf16.mxu1 %v3183_v9  ;;  %3407 = vmatpush1.bf16.msra.mxu0 %v3182_v44  ;;  %v4192_v19 = vld [vmem:[#allocation10 + $0xa4] ss:$8 sps:$4 sm:$0xff]   ;;  %v4198_v63 = vld [vmem:[#allocation10 + $0xb4] ss:$8 sps:$4 sm:$0xff]   ;;  %v4200_v9 = vld [vmem:[#allocation10 + $0x30] ss:$8 sps:$4 sm:$0xff]  }
 0x491   : > { %v3086_v4 = vadd.f32 %v3022_v22, %v2926_v16  ;;  %v3087_v27 = vadd.f32 %v3023_v30, %v2927_v47  ;;  %v3084_v48 = vadd.f32 %v3020_v20, %v2924_v40  ;;  %v3085_v17 = vadd.f32 %v3021_v33, %v2925_v50  ;;  %3960 = vmatpush1.bf16.msra.mxu1 %v3182_v44  ;;  %v4178_v22 = vld [vmem:[#allocation10] ss:$8 sps:$4 sm:$0xff]   ;;  %v4201_v44 = vld [vmem:[#allocation10 + $0xb0] ss:$8 sps:$4 sm:$0xff]   ;;  %v4208_v16 = vld [vmem:[#allocation10 + $0x54] ss:$8 sps:$4 sm:$0xff]  }
 0x492   : > { %v2610_v60 = vpop.permute.xlu1 %2609  ;;  %v2605_v15 = vpop.permute.xlu0 %2604  ;;  %v4181_v30 = vld [vmem:[#allocation10 + $0x80] ss:$8 sps:$4 sm:$0xff]   ;;  %v4210_v47 = vld [vmem:[#allocation10 + $0xd4] ss:$8 sps:$4 sm:$0xff]   ;;  %v4212_v40 = vld [vmem:[#allocation10 + $0x50] ss:$8 sps:$4 sm:$0xff]  }
 0x493   : > { %v3150_v11 = vmax.f32 %v3086_v4, 0.0  ;;  %v3151_v23 = vmax.f32 %v3087_v27, 0.0  ;;  %v3148_v24 = vmax.f32 %v3084_v48, 0.0  ;;  %v3149_v57 = vmax.f32 %v3085_v17, 0.0  ;;  %v4194_v20 = vld [vmem:[#allocation10 + $0x20] ss:$8 sps:$4 sm:$0xff]  }
 0x494   : > { %v2674_v53 = vmul.f32 %v2610_v60, %v2450_v31  ;;  %v2675_v5 = vmul.f32 %v2610_v60, %v2451_v38  ;;  %v2672_v45 = vmul.f32 %v2605_v15, %v2448_v42  ;;  %v2673_v3 = vmul.f32 %v2605_v15, %v2449_v41  ;;  %v4195_v33 = vld [vmem:[#allocation10 + $0xa0] ss:$8 sps:$4 sm:$0xff]   ;;  %v4213_v50 = vld [vmem:[#allocation10 + $0xd0] ss:$8 sps:$4 sm:$0xff]   ;;  %v4216_v31 = vld [vmem:[#allocation10 + $0xe4] ss:$8 sps:$4 sm:$0xff]  }
 0x495   : > { %v3185_v49 = vpack.c.bf16 %v3151_v23, %v3149_v57  ;;  %v3184_v12 = vpack.c.bf16 %v3150_v11, %v3148_v24  ;;  %v4207_v51 = vld [vmem:[#allocation10 + $0xc0] ss:$8 sps:$4 sm:$0xff]   ;;  %v4220_v41 = vld [vmem:[#allocation10 + $0x74] ss:$8 sps:$4 sm:$0xff]   ;;  %v4224_v27 = vld [vmem:[#allocation10 + $0x70] ss:$8 sps:$4 sm:$0xff]  }
 0x496   : > { %v2866_v55 = vpop.permute.xlu1 %2865  ;;  %v2861_v2 = vpop.permute.xlu0 %2860  ;;  %v4218_v38 = vld [vmem:[#allocation10 + $0x60] ss:$8 sps:$4 sm:$0xff]   ;;  %v4222_v4 = vld [vmem:[#allocation10 + $0xf4] ss:$8 sps:$4 sm:$0xff]   ;;  %v4225_v48 = vld [vmem:[#allocation10 + $0xf0] ss:$8 sps:$4 sm:$0xff]  }
 0x497   : > { %v2930_v61 = vadd.f32 %v2866_v55, %v2674_v53  ;;  %v2931_v6 = vadd.f32 %v2866_v55, %v2675_v5  ;;  %v2928_v7 = vadd.f32 %v2861_v2, %v2672_v45  ;;  %v2929_v1 = vadd.f32 %v2861_v2, %v2673_v3  ;;  %3408 = vmatprep.subr.bf16.mxu0 %v3185_v49  ;;  %v4219_v42 = vld [vmem:[#allocation10 + $0xe0] ss:$8 sps:$4 sm:$0xff]  }
 0x498   : > { %3945 = vmatprep.subr.bf16.mxu1 %v3185_v49  ;;  %3409 = vmatpush1.bf16.msra.mxu0 %v3184_v12 }
 0x499   : > { %v3090_v29 = vadd.f32 %v3026_v39, %v2930_v61  ;;  %v3091_v54 = vadd.f32 %v3027_v25, %v2931_v6  ;;  %v3088_v32 = vadd.f32 %v3024_v52, %v2928_v7  ;;  %v3089_v13 = vadd.f32 %v3025_v37, %v2929_v1  ;;  %3961 = vmatpush1.bf16.msra.mxu1 %v3184_v12 }
 0x49b   : > { %v3154_v18 = vmax.f32 %v3090_v29, 0.0  ;;  %v3155_v62 = vmax.f32 %v3091_v54, 0.0  ;;  %v3152_v35 = vmax.f32 %v3088_v32, 0.0  ;;  %v3153_v59 = vmax.f32 %v3089_v13, 0.0 }
 0x49d   : > { %v3187_v46 = vpack.c.bf16 %v3155_v62, %v3153_v59  ;;  %v3186_v8 = vpack.c.bf16 %v3154_v18, %v3152_v35 }
 0x49f   : > { %3410 = vmatprep.subr.bf16.mxu0 %v3187_v46  ;;  %3946 = vmatprep.subr.bf16.mxu1 %v3187_v46 }
 0x4a0   : > { %3411 = vmatpush1.bf16.msra.mxu0 %v3186_v8  ;;  %3962 = vmatpush1.bf16.msra.mxu1 %v3186_v8 }
 0x4a3   : > { %3413 = vmatmul.mubr.bf16.vlgmr.msra.gmra.mrb[0].mxu0 %v4178_v22  ;;  %3493 = vmatmul.mubr.bf16.vlgmr.msra.gmra.mrb[0].mxu1 %v4181_v30 }
 0x4a4   : > { %3422 = vmatprep.mubr.bf16.mxu0 %v4184_v10  ;;  %3502 = vmatprep.mubr.bf16.mxu1 %v4186_v36 }
 0x4ab   : > { %3423 = vmatmul.mubr.bf16.gmra.mrb[4].mxu0 %v4188_v58  ;;  %3503 = vmatmul.mubr.bf16.gmra.mrb[4].mxu1 %v4189_v14 }
 0x4ac   : > { %3432 = vmatprep.mubr.bf16.mxu0 %v4190_v28  ;;  %3512 = vmatprep.mubr.bf16.mxu1 %v4192_v19 }
 0x4b3   : > { %3433 = vmatmul.mubr.bf16.gmra.mrb[8].mxu0 %v4194_v20  ;;  %3513 = vmatmul.mubr.bf16.gmra.mrb[8].mxu1 %v4195_v33 }
 0x4b4   : > { %3442 = vmatprep.mubr.bf16.mxu0 %v4196_v26  ;;  %3522 = vmatprep.mubr.bf16.mxu1 %v4198_v63 }
 0x4bb   : > { %3443 = vmatmul.mubr.bf16.gmra.mrb[12].mxu0 %v4200_v9  ;;  %3523 = vmatmul.mubr.bf16.gmra.mrb[12].mxu1 %v4201_v44 }
 0x4bc   : > { %3452 = vmatprep.mubr.bf16.mxu0 %v4202_v56  ;;  %3532 = vmatprep.mubr.bf16.mxu1 %v4204_v0 }
 0x4c3   : > { %3453 = vmatmul.mubr.bf16.gmra.mrb[16].mxu0 %v4206_v34  ;;  %3533 = vmatmul.mubr.bf16.gmra.mrb[16].mxu1 %v4207_v51 }
 0x4c4   : > { %3462 = vmatprep.mubr.bf16.mxu0 %v4208_v16  ;;  %3542 = vmatprep.mubr.bf16.mxu1 %v4210_v47 }
 0x4cb   : > { %3463 = vmatmul.mubr.bf16.gmra.mrb[20].mxu0 %v4212_v40  ;;  %3543 = vmatmul.mubr.bf16.gmra.mrb[20].mxu1 %v4213_v50 }
 0x4cc   : > { %3472 = vmatprep.mubr.bf16.mxu0 %v4214_v43  ;;  %3552 = vmatprep.mubr.bf16.mxu1 %v4216_v31 }
 0x4d3   : > { %3473 = vmatmul.mubr.bf16.gmra.mrb[24].mxu0 %v4218_v38  ;;  %3553 = vmatmul.mubr.bf16.gmra.mrb[24].mxu1 %v4219_v42 }
 0x4d4   : > { %3482 = vmatprep.mubr.bf16.mxu0 %v4220_v41  ;;  %3562 = vmatprep.mubr.bf16.mxu1 %v4222_v4 }
 0x4db   : > { %3483 = vmatmul.mubr.bf16.gmra.mrb[28].mxu0 %v4224_v27  ;;  %3563 = vmatmul.mubr.bf16.gmra.mrb[28].mxu1 %v4225_v48 }
 0x576   : > { %v3414_v17 = vpop.f32.mrb[0].mxu0  ;;  %v3494_v21 = vpop.f32.mrb[0].mxu1 }
 0x577   : > { %3573 = vst [vmem:[%s4602_s26] sm:$0xff] %v3414_v17  ;;  %3605 = vst [vmem:[%s4602_s26 + $0x100] sm:$0xff] %v3494_v21  ;;  %v3416_v60 = vpop.f32.mrb[1].mxu0  ;;  %v3496_v15 = vpop.f32.mrb[1].mxu1 }
 0x578   : > { %3574 = vst [vmem:[%s4602_s26 + $0x8] sm:$0xff] %v3416_v60  ;;  %3606 = vst [vmem:[%s4602_s26 + $0x108] sm:$0xff] %v3496_v15  ;;  %v3418_v39 = vpop.f32.mrb[2].mxu0  ;;  %v3498_v25 = vpop.f32.mrb[2].mxu1 }
 0x579   : > { %3575 = vst [vmem:[%s4602_s26 + $0x10] sm:$0xff] %v3418_v39  ;;  %3607 = vst [vmem:[%s4602_s26 + $0x110] sm:$0xff] %v3498_v25  ;;  %v3420_v11 = vpop.f32.mrb[3].mxu0  ;;  %v3500_v23 = vpop.f32.mrb[3].mxu1 }
 0x57a   : > { %3576 = vst [vmem:[%s4602_s26 + $0x18] sm:$0xff] %v3420_v11  ;;  %3608 = vst [vmem:[%s4602_s26 + $0x118] sm:$0xff] %v3500_v23 }
 0x57e   : > { %v3424_v24 = vpop.f32.mrb[4].mxu0  ;;  %v3504_v57 = vpop.f32.mrb[4].mxu1 }
 0x57f   : > { %3577 = vst [vmem:[%s4602_s26 + $0x20] sm:$0xff] %v3424_v24  ;;  %3609 = vst [vmem:[%s4602_s26 + $0x120] sm:$0xff] %v3504_v57  ;;  %v3426_v53 = vpop.f32.mrb[5].mxu0  ;;  %v3506_v5 = vpop.f32.mrb[5].mxu1 }
 0x580   : > { %3578 = vst [vmem:[%s4602_s26 + $0x28] sm:$0xff] %v3426_v53  ;;  %3610 = vst [vmem:[%s4602_s26 + $0x128] sm:$0xff] %v3506_v5  ;;  %v3428_v52 = vpop.f32.mrb[6].mxu0  ;;  %v3508_v37 = vpop.f32.mrb[6].mxu1 }
 0x581   : > { %3579 = vst [vmem:[%s4602_s26 + $0x30] sm:$0xff] %v3428_v52  ;;  %3611 = vst [vmem:[%s4602_s26 + $0x130] sm:$0xff] %v3508_v37  ;;  %v3430_v45 = vpop.f32.mrb[7].mxu0  ;;  %v3510_v3 = vpop.f32.mrb[7].mxu1 }
 0x582   : > { %3580 = vst [vmem:[%s4602_s26 + $0x38] sm:$0xff] %v3430_v45  ;;  %3612 = vst [vmem:[%s4602_s26 + $0x138] sm:$0xff] %v3510_v3 }
 0x586   : > { %v3434_v49 = vpop.f32.mrb[8].mxu0  ;;  %v3514_v12 = vpop.f32.mrb[8].mxu1 }
 0x587   : > { %3581 = vst [vmem:[%s4602_s26 + $0x40] sm:$0xff] %v3434_v49  ;;  %3613 = vst [vmem:[%s4602_s26 + $0x140] sm:$0xff] %v3514_v12  ;;  %v3436_v55 = vpop.f32.mrb[9].mxu0  ;;  %v3516_v2 = vpop.f32.mrb[9].mxu1 }
 0x588   : > { %3582 = vst [vmem:[%s4602_s26 + $0x48] sm:$0xff] %v3436_v55  ;;  %3614 = vst [vmem:[%s4602_s26 + $0x148] sm:$0xff] %v3516_v2  ;;  %v3438_v61 = vpop.f32.mrb[10].mxu0  ;;  %v3518_v6 = vpop.f32.mrb[10].mxu1 }
 0x589   : > { %3583 = vst [vmem:[%s4602_s26 + $0x50] sm:$0xff] %v3438_v61  ;;  %3615 = vst [vmem:[%s4602_s26 + $0x150] sm:$0xff] %v3518_v6  ;;  %v3440_v7 = vpop.f32.mrb[11].mxu0  ;;  %v3520_v1 = vpop.f32.mrb[11].mxu1 }
 0x58a   : > { %3584 = vst [vmem:[%s4602_s26 + $0x58] sm:$0xff] %v3440_v7  ;;  %3616 = vst [vmem:[%s4602_s26 + $0x158] sm:$0xff] %v3520_v1 }
 0x58e   : > { %v3444_v29 = vpop.f32.mrb[12].mxu0  ;;  %v3524_v54 = vpop.f32.mrb[12].mxu1 }
 0x58f   : > { %3585 = vst [vmem:[%s4602_s26 + $0x60] sm:$0xff] %v3444_v29  ;;  %3617 = vst [vmem:[%s4602_s26 + $0x160] sm:$0xff] %v3524_v54  ;;  %v3446_v32 = vpop.f32.mrb[13].mxu0  ;;  %v3526_v13 = vpop.f32.mrb[13].mxu1 }
 0x590   : > { %3586 = vst [vmem:[%s4602_s26 + $0x68] sm:$0xff] %v3446_v32  ;;  %3618 = vst [vmem:[%s4602_s26 + $0x168] sm:$0xff] %v3526_v13  ;;  %v3448_v18 = vpop.f32.mrb[14].mxu0  ;;  %v3528_v62 = vpop.f32.mrb[14].mxu1 }
 0x591   : > { %3587 = vst [vmem:[%s4602_s26 + $0x70] sm:$0xff] %v3448_v18  ;;  %3619 = vst [vmem:[%s4602_s26 + $0x170] sm:$0xff] %v3528_v62  ;;  %v3450_v35 = vpop.f32.mrb[15].mxu0  ;;  %v3530_v59 = vpop.f32.mrb[15].mxu1 }
 0x592   : > { %3588 = vst [vmem:[%s4602_s26 + $0x78] sm:$0xff] %v3450_v35  ;;  %3620 = vst [vmem:[%s4602_s26 + $0x178] sm:$0xff] %v3530_v59 }
 0x596   : > { %v3454_v46 = vpop.f32.mrb[16].mxu0  ;;  %v3534_v8 = vpop.f32.mrb[16].mxu1 }
 0x597   : > { %3589 = vst [vmem:[%s4602_s26 + $0x80] sm:$0xff] %v3454_v46  ;;  %3621 = vst [vmem:[%s4602_s26 + $0x180] sm:$0xff] %v3534_v8  ;;  %v3456_v22 = vpop.f32.mrb[17].mxu0  ;;  %v3536_v30 = vpop.f32.mrb[17].mxu1 }
 0x598   : > { %3590 = vst [vmem:[%s4602_s26 + $0x88] sm:$0xff] %v3456_v22  ;;  %3622 = vst [vmem:[%s4602_s26 + $0x188] sm:$0xff] %v3536_v30  ;;  %v3458_v10 = vpop.f32.mrb[18].mxu0  ;;  %v3538_v36 = vpop.f32.mrb[18].mxu1 }
 0x599   : > { %3591 = vst [vmem:[%s4602_s26 + $0x90] sm:$0xff] %v3458_v10  ;;  %3623 = vst [vmem:[%s4602_s26 + $0x190] sm:$0xff] %v3538_v36  ;;  %v3460_v58 = vpop.f32.mrb[19].mxu0  ;;  %v3540_v14 = vpop.f32.mrb[19].mxu1 }
 0x59a   : > { %3592 = vst [vmem:[%s4602_s26 + $0x98] sm:$0xff] %v3460_v58  ;;  %3624 = vst [vmem:[%s4602_s26 + $0x198] sm:$0xff] %v3540_v14 }
 0x59e   : > { %v3464_v28 = vpop.f32.mrb[20].mxu0  ;;  %v3544_v19 = vpop.f32.mrb[20].mxu1 }
 0x59f   : > { %3593 = vst [vmem:[%s4602_s26 + $0xa0] sm:$0xff] %v3464_v28  ;;  %3625 = vst [vmem:[%s4602_s26 + $0x1a0] sm:$0xff] %v3544_v19  ;;  %v3466_v20 = vpop.f32.mrb[21].mxu0  ;;  %v3546_v33 = vpop.f32.mrb[21].mxu1 }
 0x5a0   : > { %3594 = vst [vmem:[%s4602_s26 + $0xa8] sm:$0xff] %v3466_v20  ;;  %3626 = vst [vmem:[%s4602_s26 + $0x1a8] sm:$0xff] %v3546_v33  ;;  %v3468_v26 = vpop.f32.mrb[22].mxu0  ;;  %v3548_v63 = vpop.f32.mrb[22].mxu1 }
 0x5a1   : > { %3595 = vst [vmem:[%s4602_s26 + $0xb0] sm:$0xff] %v3468_v26  ;;  %3627 = vst [vmem:[%s4602_s26 + $0x1b0] sm:$0xff] %v3548_v63  ;;  %v3470_v9 = vpop.f32.mrb[23].mxu0  ;;  %v3550_v44 = vpop.f32.mrb[23].mxu1 }
 0x5a2   : > { %3596 = vst [vmem:[%s4602_s26 + $0xb8] sm:$0xff] %v3470_v9  ;;  %3628 = vst [vmem:[%s4602_s26 + $0x1b8] sm:$0xff] %v3550_v44 }
 0x5a6   : > { %v3474_v56 = vpop.f32.mrb[24].mxu0  ;;  %v3554_v0 = vpop.f32.mrb[24].mxu1 }
 0x5a7   : > { %3597 = vst [vmem:[%s4602_s26 + $0xc0] sm:$0xff] %v3474_v56  ;;  %3629 = vst [vmem:[%s4602_s26 + $0x1c0] sm:$0xff] %v3554_v0  ;;  %v3476_v34 = vpop.f32.mrb[25].mxu0  ;;  %v3556_v51 = vpop.f32.mrb[25].mxu1 }
 0x5a8   : > { %3598 = vst [vmem:[%s4602_s26 + $0xc8] sm:$0xff] %v3476_v34  ;;  %3630 = vst [vmem:[%s4602_s26 + $0x1c8] sm:$0xff] %v3556_v51  ;;  %v3478_v16 = vpop.f32.mrb[26].mxu0  ;;  %v3558_v47 = vpop.f32.mrb[26].mxu1 }
 0x5a9   : > { %3599 = vst [vmem:[%s4602_s26 + $0xd0] sm:$0xff] %v3478_v16  ;;  %3631 = vst [vmem:[%s4602_s26 + $0x1d0] sm:$0xff] %v3558_v47  ;;  %v3480_v40 = vpop.f32.mrb[27].mxu0  ;;  %v3560_v50 = vpop.f32.mrb[27].mxu1 }
 0x5aa   : > { %3600 = vst [vmem:[%s4602_s26 + $0xd8] sm:$0xff] %v3480_v40  ;;  %3632 = vst [vmem:[%s4602_s26 + $0x1d8] sm:$0xff] %v3560_v50 }
 0x5ae   : > { %v3484_v43 = vpop.f32.mrb[28].mxu0  ;;  %v3564_v31 = vpop.f32.mrb[28].mxu1 }
 0x5af   : > { %3601 = vst [vmem:[%s4602_s26 + $0xe0] sm:$0xff] %v3484_v43  ;;  %3633 = vst [vmem:[%s4602_s26 + $0x1e0] sm:$0xff] %v3564_v31  ;;  %v3486_v38 = vpop.f32.mrb[29].mxu0  ;;  %v3566_v42 = vpop.f32.mrb[29].mxu1 }
 0x5b0   : > { %3602 = vst [vmem:[%s4602_s26 + $0xe8] sm:$0xff] %v3486_v38  ;;  %3634 = vst [vmem:[%s4602_s26 + $0x1e8] sm:$0xff] %v3566_v42  ;;  %v3488_v41 = vpop.f32.mrb[30].mxu0  ;;  %v3568_v4 = vpop.f32.mrb[30].mxu1 }
 0x5b1   : > { %3603 = vst [vmem:[%s4602_s26 + $0xf0] sm:$0xff] %v3488_v41  ;;  %3635 = vst [vmem:[%s4602_s26 + $0x1f0] sm:$0xff] %v3568_v4  ;;  %v3490_v27 = vpop.f32.mrb[31].mxu0  ;;  %v3570_v48 = vpop.f32.mrb[31].mxu1 }
 0x5b2   : > { %3604 = vst [vmem:[%s4602_s26 + $0xf8] sm:$0xff] %v3490_v27  ;;  %3636 = vst [vmem:[%s4602_s26 + $0x1f8] sm:$0xff] %v3570_v48 }
 0x5b3 PF: > { %s3898_s27 = sshll.u32 %s4582_s30, 13  ;;  %s3655_s21 = sshll.u32 %s4602_s26, 4  ;;  %s5445_s21 = int_to_ptr.vmem [resolvable:$true] %s3655_s21 }
 0x5b4   : > { %s5442_s14 = scalar_lea.hbm %s5508_s7, %s3898_s27  ;;  %s5535_s9 = sand.u32 1, %s4360_s25  }
 0x5b5   : > { %s5449_s22 = scalar_lea.sflag [#allocation9], %s5535_s9  ;;  %s4282_s29 = scalar_lea.vmem %s5445_s21, 8192 }
 0x5b6   : > { %p4283_p4 = scmp.ne.s32.totalorder %s5445_s21, %s4282_s29  ;;  %p5536_p5 = scmp.ne.s32.totalorder %s5524_s15, 0 }
 0x5b7   : > { %s4393_s30 = smov [#allocation12]  }
 0x5b8   : > { %p4284_p7 = pnand %p4283_p4, %p5536_p5  ;;  %s4286_s23 = sshll.u32 %s4393_s30, 4  ;;  %s4287_s23 = int_to_ptr.vmem [resolvable:$false] %s4286_s23 }
 0x5b9   : > { %s4288_s12 = scalar_lea.vmem %s4287_s23, 16384  ;;  %p4289_p12 = scmp.lt.s32.totalorder %s5445_s21, %s4287_s23 }
 0x5ba   : > { %p4285_p9 = pneg %p4284_p7  ;;  %p4290_p13 = scmp.lt.s32.totalorder %s4288_s12, %s4282_s29 }
 0x5bc   : > { %p4291_p6 = por %p4290_p13, %p4289_p12 }
 0x5be   : > { %p4292_p8 = pnand %p4291_p6, %p4285_p9 }
 0x5c0   : > { %4295 = shalt.err (!%p4292_p8)
}
 0x5c1   : > { %s4296_s26 = scalar_lea.hbm %s5442_s14, 8192  ;;  %s4300_s28 = scalar_lea.hbm %s5508_s7, 16384 }
 0x5c2   : > { %p4297_p0 = scmp.ne.s32.totalorder %s5442_s14, %s4296_s26  ;;  %p4301_p11 = scmp.lt.u32.totalorder %s5442_s14, %s5508_s7 }
 0x5c3   : > { %p4302_p1 = scmp.lt.u32.totalorder %s4300_s28, %s4296_s26  ;;  %p4304_p4 = scmp.lt.u32.totalorder %s4296_s26, %s5442_s14 }
 0x5c4   : > { %p4298_p2 = pnand %p4297_p0, %p5536_p5 }
 0x5c5   : > { %p4303_p3 = por %p4302_p1, %p4301_p11 }
 0x5c6   : > { %p4299_p10 = pneg %p4298_p2 }
 0x5c7   : > { %p4305_p7 = por %p4304_p4, %p4303_p3 }
 0x5c9   : > { %p4306_p9 = pnand %p4305_p7, %p4299_p10 }
 0x5cb   : > { %4309 = shalt.err (!%p4306_p9)
}
 0x5cc   : > { %s4394_s17 = smov 256   ;;  %s4395_s27 = smov 16  }
 0x5cd   : > { %3971 = dma.vmem_to_hbm [thread:$0]  (%p5536_p5), %s5445_s21, 8192, %s5442_s14, %s5449_s22, %s4394_s17, %s4394_s17, %s4395_s27  }
 0x5ce PF: > { %p3988_p12 = scmp.ge.s32.totalorder %s4384_s8, 2  ;;  %s3670_s10 = sand.u32 1, %s4356_s24  }
 0x5cf   : > { %p5537_p13 = scmp.ne.s32.totalorder %s5526_s16, 0  ;;  %s3671_s20 = scalar_lea.sflag [#allocation9], %s3670_s10 }
 0x5d1   : > { %p3981_p6 = pnand %p3988_p12, %p5537_p13 }
 0x5d3   : > { %4351 = dma.done.wait (!%p3981_p6), %s3671_s20, 8192  }
 0x5d4   : > { %4353 = vsyncadd (!%p3981_p6), %s3671_s20, 4294959104  ;;  %s22_s8 = sadd.s32 1, %s4384_s8   ;;  %s5538_s9 = sld [smem:[#allocation16_spill]] }
 0x5d5   : > { %p19_p8 = scmp.ge.s32.totalorder %s22_s8, 6   ;;  %s5539_s26 = sld [smem:[#allocation21_spill]] }
 0x5d6   : > { %s5540_s27 = sld [smem:[#allocation17_spill]]  ;;  %s5541_s28 = sld [smem:[#allocation18_spill]] }
 0x5d7   : > { %s5542_s29 = sld [smem:[#allocation19_spill]]  ;;  %s5543_s30 = sld [smem:[#allocation20_spill]] }
 0x5d8   : > { %s5544_s24 = smov %s4360_s25  ;;  %21 = sbr.rel (!%p19_p8) target bundleno = 7 (0x7), region = 116 }
 0x5da   : > { %s5545_s25 = smov %s5538_s9 }
 0x5df   :  { %3676 = vsyncpa [#allocation8], 1 }
 0x5e0   :  { %3678 = vsyncpa [#allocation8 + $0x1], 1 }
 0x5e1   :  { %3679 = vsyncpa [#allocation11], 1 }
 0x5e2   :  { %3680 = vsyncpa [#allocation9], 1 }
 0x5e3   :  { %3682 = vsyncpa [#allocation9 + $0x1], 1 }

</bundles_post_ra>
